<compile_context>
chip_gen: v5e
topology: v5e:2x2
jax: 0.10.0
libtpu: 0.0.40
codegen_flags: <defaults>
</compile_context>

<pallas_src>
import jax
import jax.numpy as jnp
from jax import lax
from jax.experimental import pallas as pl
from jax.experimental.pallas import tpu as pltpu

INPUT_SIZE = 1
HIDDEN_SIZE = 50
OUTPUT_SIZE = 1
NUM_LAYERS = 2          # hard-coded 2-layer recurrence in the kernel below

GATE_PAD = 128          # each gate padded to one full lane group
OUT_PAD = 128           # fc output padded to one full lane group
H2_OFF = 64             # lane offset where layer-1 (h2) values live in a slab
ONE_LANE = GATE_PAD - 1  # constant-1 lane in the packed h vector (bias driver)


def _lstm_kernel(x_ref,     # (T, Bp, 1)       f32  time-major input
                 w0_ref,    # (1, 4*GP)        f32  layer-0 input weights (I==1)
                 wrec_ref,  # (GP, 8*GP)       bf16 packed recurrent weights+biases
                 wih1_ref,  # (GP, 4*GP)       bf16 layer-1 input (h1) weights
                 wfc_ref,   # (GP, OUT_PAD)    bf16 final projection
                 bfc_ref,   # (1, OUT_PAD)     f32
                 out_ref):  # (Bp, OUT_PAD)    f32
    T, B, _ = x_ref.shape
    GP = GATE_PAD

    w_rec = wrec_ref[...]                       # bf16, stays resident
    wih1 = wih1_ref[...]                        # bf16
    w0row = w0_ref[...]                         # f32 (1, 4*GP)

    # Constant-1 lane (hoisted): drives the bias row of w_rec every step.
    one_lane = (lax.broadcasted_iota(jnp.int32, (B, GP), 1) == ONE_LANE
                ).astype(jnp.float32)

    def sig(v):
        # single-EUP sigmoid: sigmoid(x) = 0.5*tanh(0.5*x) + 0.5
        return 0.5 * jnp.tanh(0.5 * v) + 0.5

    def cell_update(gates, c_prev):
        # Lane-aligned gate slices; padded lanes have 0 pre-activation, so
        # c stays 0 (0.5*0 + 0.5*tanh(0)) and h stays 0 (o * tanh(0)).
        i = sig(gates[:, 0 * GP:1 * GP])
        f = sig(gates[:, 1 * GP:2 * GP])
        g = jnp.tanh(gates[:, 2 * GP:3 * GP])
        o = sig(gates[:, 3 * GP:4 * GP])
        c_new = f * c_prev + i * g
        h_new = o * jnp.tanh(c_new)
        return h_new, c_new

    h1 = jnp.zeros((B, GP), jnp.float32)        # values in lanes [0, 50)
    h2 = jnp.zeros((B, GP), jnp.float32)        # values in lanes [64, 114)
    c1 = jnp.zeros((B, GP), jnp.float32)
    c2 = jnp.zeros((B, GP), jnp.float32)

    # Fully-unrolled time loop (T static and small).
    for t in range(T):
        # Pack h1 (lanes [0,50)), h2 (lanes [64,114)) and the constant-1 lane
        # into a single K=128 vector; one bf16 MXU dot yields both layers'
        # recurrent contributions plus both biases.
        hp = (h1 + h2 + one_lane).astype(jnp.bfloat16)
        rec = jnp.dot(hp, w_rec, preferred_element_type=jnp.float32)  # (B, 8*GP)

        # Layer 0: input path is a VPU broadcast multiply (I == 1).
        g0 = x_ref[t] * w0row + rec[:, :4 * GP]
        h1, c1 = cell_update(g0, c1)

        # Layer 1: needs the fresh h1 -> one more (small) dot per step.
        g1 = (jnp.dot(h1.astype(jnp.bfloat16), wih1,
                      preferred_element_type=jnp.float32)
              + rec[:, 4 * GP:])
        h2, c2 = cell_update(g1, c2)

    # Final projection: lane-dense padded store.
    out_ref[...] = (jnp.dot(h2.astype(jnp.bfloat16), wfc_ref[...],
                            preferred_element_type=jnp.float32)
                    + bfc_ref[...]).astype(out_ref.dtype)


def _pack_params(params):
    """Host-side packing into the lane layout described above (bf16 weights)."""
    H, GP = HIDDEN_SIZE, GATE_PAD

    # Layer-0 input weights: gate k -> lanes [k*GP, k*GP+H). Stays f32 (VPU path).
    w0 = jnp.zeros((1, 4 * GP), jnp.float32)
    for k in range(4):
        w0 = w0.at[:, k * GP:k * GP + H].set(params["wih0"][:, k * H:(k + 1) * H])

    # Packed recurrent weight (K=128) with folded biases on the ONE_LANE row.
    w_rec = jnp.zeros((GP, 8 * GP), jnp.float32)
    for k in range(4):
        # layer 0: h1 rows [0,H) -> gate cols k*GP + [0,H)
        w_rec = w_rec.at[:H, k * GP:k * GP + H].set(
            params["whh0"][:, k * H:(k + 1) * H])
        # layer 1: h2 rows [H2_OFF, H2_OFF+H) -> gate cols 4*GP + k*GP + H2_OFF + [0,H)
        c0 = 4 * GP + k * GP + H2_OFF
        w_rec = w_rec.at[H2_OFF:H2_OFF + H, c0:c0 + H].set(
            params["whh1"][:, k * H:(k + 1) * H])
        # bias row, driven by the constant-1 lane of the packed h vector
        w_rec = w_rec.at[ONE_LANE, k * GP:k * GP + H].set(
            params["b0"][0, k * H:(k + 1) * H])
        w_rec = w_rec.at[ONE_LANE, c0:c0 + H].set(
            params["b1"][0, k * H:(k + 1) * H])

    # Layer-1 input (h1) weights -> layer-1 gate lanes [k*GP+H2_OFF, +H).
    wih1 = jnp.zeros((GP, 4 * GP), jnp.float32)
    for k in range(4):
        wih1 = wih1.at[:H, k * GP + H2_OFF:k * GP + H2_OFF + H].set(
            params["wih1"][:, k * H:(k + 1) * H])

    # Final projection: h2 lives in lanes [H2_OFF, H2_OFF+H).
    wfc = jnp.zeros((GP, OUT_PAD), jnp.float32)
    wfc = wfc.at[H2_OFF:H2_OFF + H, :OUTPUT_SIZE].set(params["wfc"])
    bfc = jnp.zeros((1, OUT_PAD), jnp.float32).at[:, :OUTPUT_SIZE].set(params["bfc"])

    return (w0,
            w_rec.astype(jnp.bfloat16),
            wih1.astype(jnp.bfloat16),
            wfc.astype(jnp.bfloat16),
            bfc)


def lstm_forward(x, params):
    """x: (B, T, I) float32  ->  (B, O) float32."""
    B, T, _ = x.shape
    B_pad = max(8, ((B + 7) // 8) * 8)          # sublane-multiple batch

    # Time-major, batch-padded input.
    x_tm = jnp.transpose(x, (1, 0, 2))                       # (T, B, I)
    x_tm = jnp.pad(x_tm, ((0, 0), (0, B_pad - B), (0, 0)))   # (T, Bp, I)

    w0, w_rec, wih1, wfc, bfc = _pack_params(params)

    vmem = pl.BlockSpec(memory_space=pltpu.MemorySpace.VMEM)
    out_pad = pl.pallas_call(
        _lstm_kernel,
        out_shape=jax.ShapeDtypeStruct((B_pad, OUT_PAD), jnp.float32),
        in_specs=[vmem] * 6,
        out_specs=vmem,
    )(x_tm, w0, w_rec, wih1, wfc, bfc)

    return out_pad[:B, :OUTPUT_SIZE]


def init_params(key):
    """Deterministic init mimicking PyTorch's U(-1/sqrt(H), 1/sqrt(H))."""
    H, I, O = HIDDEN_SIZE, INPUT_SIZE, OUTPUT_SIZE
    k = 1.0 / jnp.sqrt(jnp.float32(H))
    keys = jax.random.split(key, 12)

    def u(kk, shape):
        return jax.random.uniform(kk, shape, jnp.float32, -k, k)

    # Weights stored already transposed: gates = x @ W_ih^T -> (in, 4H),
    # gate order i | f | g | o (PyTorch convention).
    wih0 = u(keys[0], (I, 4 * H))
    whh0 = u(keys[1], (H, 4 * H))
    b0 = u(keys[2], (1, 4 * H)) + u(keys[3], (1, 4 * H))      # b_ih + b_hh
    wih1 = u(keys[4], (H, 4 * H))
    whh1 = u(keys[5], (H, 4 * H))
    b1 = u(keys[6], (1, 4 * H)) + u(keys[7], (1, 4 * H))
    wfc = jax.random.uniform(keys[8], (H, O), jnp.float32, -k, k)
    bfc = jax.random.uniform(keys[9], (1, O), jnp.float32, -k, k)
    return dict(wih0=wih0, whh0=whh0, b0=b0,
                wih1=wih1, whh1=whh1, b1=b1,
                wfc=wfc, bfc=bfc)


def lstm_reference(x, params):
    """Pure-JAX f32 reference (unpadded weights, same math, no Pallas)."""
    H = HIDDEN_SIZE
    B, T, _ = x.shape

    def cell(gates, c_prev):
        i = jax.nn.sigmoid(gates[:, 0 * H:1 * H])
        f = jax.nn.sigmoid(gates[:, 1 * H:2 * H])
        g = jnp.tanh(gates[:, 2 * H:3 * H])
        o = jax.nn.sigmoid(gates[:, 3 * H:4 * H])
        c = f * c_prev + i * g
        return o * jnp.tanh(c), c

    h1 = c1 = h2 = c2 = jnp.zeros((B, H), jnp.float32)
    for t in range(T):
        x_t = x[:, t, :]
        g0 = x_t @ params["wih0"] + h1 @ params["whh0"] + params["b0"]
        h1, c1 = cell(g0, c1)
        g1 = h1 @ params["wih1"] + h2 @ params["whh1"] + params["b1"]
        h2, c2 = cell(g1, c2)
    return h2 @ params["wfc"] + params["bfc"]


if __name__ == "__main__":
    key = jax.random.PRNGKey(0)
    kx, kp = jax.random.split(key)

    B, T = 2, 8
    x = jax.random.normal(kx, (B, T, INPUT_SIZE), jnp.float32)
    params = init_params(kp)

    out = lstm_forward(x, params)
    out = jax.block_until_ready(out)

    ref = lstm_reference(x, params)
    assert out.shape == (B, OUTPUT_SIZE), out.shape
    # bf16 MXU operands over 8 recurrent steps -> loosened tolerance vs f32 ref.
    assert jnp.allclose(out, ref, atol=2e-2, rtol=2e-2), (out, ref)

    print("KERNEL_OK")
</pallas_src>

<mosaic_0001>
module attributes {stable_mosaic.version = 11 : i64} {
  func.func @_lstm_kernel(%arg0: memref<8x8x1xf32, #tpu.memory_space<vmem>>, %arg1: memref<1x512xf32, #tpu.memory_space<vmem>>, %arg2: memref<128x1024xbf16, #tpu.memory_space<vmem>>, %arg3: memref<128x512xbf16, #tpu.memory_space<vmem>>, %arg4: memref<128x128xbf16, #tpu.memory_space<vmem>>, %arg5: memref<1x128xf32, #tpu.memory_space<vmem>>, %arg6: memref<8x128xf32, #tpu.memory_space<vmem>>) attributes {dimension_semantics = [], scalar_prefetch = 0 : i64, scratch_operands = 0 : i64, tpu.core_type = #tpu.core_type<tc>} {
    %c0 = arith.constant 0 : index
    %c0_0 = arith.constant 0 : index
    %0 = vector.load %arg2[%c0, %c0_0] : memref<128x1024xbf16, #tpu.memory_space<vmem>>, vector<128x1024xbf16>
    %c0_1 = arith.constant 0 : index
    %c0_2 = arith.constant 0 : index
    %1 = vector.load %arg3[%c0_1, %c0_2] : memref<128x512xbf16, #tpu.memory_space<vmem>>, vector<128x512xbf16>
    %c0_3 = arith.constant 0 : index
    %c0_4 = arith.constant 0 : index
    %2 = vector.load %arg1[%c0_3, %c0_4] : memref<1x512xf32, #tpu.memory_space<vmem>>, vector<1x512xf32>
    %3 = tpu.iota {dimensions = array<i32: 1>} : vector<8x128xi32>
    %c127_i32 = arith.constant 127 : i32
    %4 = vector.broadcast %c127_i32 : i32 to vector<8x128xi32>
    %5 = arith.cmpi eq, %3, %4 : vector<8x128xi32>
    %6 = arith.extui %5 : vector<8x128xi1> to vector<8x128xi32>
    %7 = arith.sitofp %6 : vector<8x128xi32> to vector<8x128xf32>
    %cst = arith.constant 0.000000e+00 : f32
    %8 = vector.broadcast %cst : f32 to vector<8x128xf32>
    %cst_5 = arith.constant 0.000000e+00 : f32
    %9 = vector.broadcast %cst_5 : f32 to vector<8x128xf32>
    %cst_6 = arith.constant 0.000000e+00 : f32
    %10 = vector.broadcast %cst_6 : f32 to vector<8x128xf32>
    %cst_7 = arith.constant 0.000000e+00 : f32
    %11 = vector.broadcast %cst_7 : f32 to vector<8x128xf32>
    %12 = arith.addf %8, %9 : vector<8x128xf32>
    %13 = arith.addf %12, %7 : vector<8x128xf32>
    %14 = arith.truncf %13 : vector<8x128xf32> to vector<8x128xbf16>
    %cst_8 = arith.constant dense<0.000000e+00> : vector<8x1024xf32>
    %15 = tpu.matmul %14, %0, %cst_8 {dimension_numbers = #tpu.dot_dimension_numbers<[1], [0], [0], [1], [0, 0, 1, 1], [], []>} : vector<8x128xbf16>, vector<128x1024xbf16>, vector<8x1024xf32> -> vector<8x1024xf32>
    %c0_9 = arith.constant 0 : index
    %c0_10 = arith.constant 0 : index
    %c0_11 = arith.constant 0 : index
    %16 = vector.load %arg0[%c0_9, %c0_10, %c0_11] : memref<8x8x1xf32, #tpu.memory_space<vmem>>, vector<1x8x1xf32>
    %17 = vector.shape_cast %16 : vector<1x8x1xf32> to vector<8x1xf32>
    %18 = vector.broadcast %17 : vector<8x1xf32> to vector<8x512xf32>
    %19 = vector.broadcast %2 : vector<1x512xf32> to vector<8x512xf32>
    %20 = arith.mulf %18, %19 : vector<8x512xf32>
    %21 = vector.extract_strided_slice %15 {offsets = [0, 0], sizes = [8, 512], strides = [1, 1]} : vector<8x1024xf32> to vector<8x512xf32>
    %22 = arith.addf %20, %21 : vector<8x512xf32>
    %23 = vector.extract_strided_slice %22 {offsets = [0, 0], sizes = [8, 128], strides = [1, 1]} : vector<8x512xf32> to vector<8x128xf32>
    %cst_12 = arith.constant 5.000000e-01 : f32
    %24 = vector.broadcast %cst_12 : f32 to vector<8x128xf32>
    %25 = arith.mulf %24, %23 : vector<8x128xf32>
    %26 = math.tanh %25 : vector<8x128xf32>
    %cst_13 = arith.constant 5.000000e-01 : f32
    %27 = vector.broadcast %cst_13 : f32 to vector<8x128xf32>
    %28 = arith.mulf %27, %26 : vector<8x128xf32>
    %cst_14 = arith.constant 5.000000e-01 : f32
    %29 = vector.broadcast %cst_14 : f32 to vector<8x128xf32>
    %30 = arith.addf %28, %29 : vector<8x128xf32>
    %31 = vector.extract_strided_slice %22 {offsets = [0, 128], sizes = [8, 128], strides = [1, 1]} : vector<8x512xf32> to vector<8x128xf32>
    %cst_15 = arith.constant 5.000000e-01 : f32
    %32 = vector.broadcast %cst_15 : f32 to vector<8x128xf32>
    %33 = arith.mulf %32, %31 : vector<8x128xf32>
    %34 = math.tanh %33 : vector<8x128xf32>
    %cst_16 = arith.constant 5.000000e-01 : f32
    %35 = vector.broadcast %cst_16 : f32 to vector<8x128xf32>
    %36 = arith.mulf %35, %34 : vector<8x128xf32>
    %cst_17 = arith.constant 5.000000e-01 : f32
    %37 = vector.broadcast %cst_17 : f32 to vector<8x128xf32>
    %38 = arith.addf %36, %37 : vector<8x128xf32>
    %39 = vector.extract_strided_slice %22 {offsets = [0, 256], sizes = [8, 128], strides = [1, 1]} : vector<8x512xf32> to vector<8x128xf32>
    %40 = math.tanh %39 : vector<8x128xf32>
    %41 = vector.extract_strided_slice %22 {offsets = [0, 384], sizes = [8, 128], strides = [1, 1]} : vector<8x512xf32> to vector<8x128xf32>
    %cst_18 = arith.constant 5.000000e-01 : f32
    %42 = vector.broadcast %cst_18 : f32 to vector<8x128xf32>
    %43 = arith.mulf %42, %41 : vector<8x128xf32>
    %44 = math.tanh %43 : vector<8x128xf32>
    %cst_19 = arith.constant 5.000000e-01 : f32
    %45 = vector.broadcast %cst_19 : f32 to vector<8x128xf32>
    %46 = arith.mulf %45, %44 : vector<8x128xf32>
    %cst_20 = arith.constant 5.000000e-01 : f32
    %47 = vector.broadcast %cst_20 : f32 to vector<8x128xf32>
    %48 = arith.addf %46, %47 : vector<8x128xf32>
    %49 = arith.mulf %38, %10 : vector<8x128xf32>
    %50 = arith.mulf %30, %40 : vector<8x128xf32>
    %51 = arith.addf %49, %50 : vector<8x128xf32>
    %52 = math.tanh %51 : vector<8x128xf32>
    %53 = arith.mulf %48, %52 : vector<8x128xf32>
    %54 = arith.truncf %53 : vector<8x128xf32> to vector<8x128xbf16>
    %cst_21 = arith.constant dense<0.000000e+00> : vector<8x512xf32>
    %55 = tpu.matmul %54, %1, %cst_21 {dimension_numbers = #tpu.dot_dimension_numbers<[1], [0], [0], [1], [0, 0, 1, 1], [], []>} : vector<8x128xbf16>, vector<128x512xbf16>, vector<8x512xf32> -> vector<8x512xf32>
    %56 = vector.extract_strided_slice %15 {offsets = [0, 512], sizes = [8, 512], strides = [1, 1]} : vector<8x1024xf32> to vector<8x512xf32>
    %57 = arith.addf %55, %56 : vector<8x512xf32>
    %58 = vector.extract_strided_slice %57 {offsets = [0, 0], sizes = [8, 128], strides = [1, 1]} : vector<8x512xf32> to vector<8x128xf32>
    %cst_22 = arith.constant 5.000000e-01 : f32
    %59 = vector.broadcast %cst_22 : f32 to vector<8x128xf32>
    %60 = arith.mulf %59, %58 : vector<8x128xf32>
    %61 = math.tanh %60 : vector<8x128xf32>
    %cst_23 = arith.constant 5.000000e-01 : f32
    %62 = vector.broadcast %cst_23 : f32 to vector<8x128xf32>
    %63 = arith.mulf %62, %61 : vector<8x128xf32>
    %cst_24 = arith.constant 5.000000e-01 : f32
    %64 = vector.broadcast %cst_24 : f32 to vector<8x128xf32>
    %65 = arith.addf %63, %64 : vector<8x128xf32>
    %66 = vector.extract_strided_slice %57 {offsets = [0, 128], sizes = [8, 128], strides = [1, 1]} : vector<8x512xf32> to vector<8x128xf32>
    %cst_25 = arith.constant 5.000000e-01 : f32
    %67 = vector.broadcast %cst_25 : f32 to vector<8x128xf32>
    %68 = arith.mulf %67, %66 : vector<8x128xf32>
    %69 = math.tanh %68 : vector<8x128xf32>
    %cst_26 = arith.constant 5.000000e-01 : f32
    %70 = vector.broadcast %cst_26 : f32 to vector<8x128xf32>
    %71 = arith.mulf %70, %69 : vector<8x128xf32>
    %cst_27 = arith.constant 5.000000e-01 : f32
    %72 = vector.broadcast %cst_27 : f32 to vector<8x128xf32>
    %73 = arith.addf %71, %72 : vector<8x128xf32>
    %74 = vector.extract_strided_slice %57 {offsets = [0, 256], sizes = [8, 128], strides = [1, 1]} : vector<8x512xf32> to vector<8x128xf32>
    %75 = math.tanh %74 : vector<8x128xf32>
    %76 = vector.extract_strided_slice %57 {offsets = [0, 384], sizes = [8, 128], strides = [1, 1]} : vector<8x512xf32> to vector<8x128xf32>
    %cst_28 = arith.constant 5.000000e-01 : f32
    %77 = vector.broadcast %cst_28 : f32 to vector<8x128xf32>
    %78 = arith.mulf %77, %76 : vector<8x128xf32>
    %79 = math.tanh %78 : vector<8x128xf32>
    %cst_29 = arith.constant 5.000000e-01 : f32
    %80 = vector.broadcast %cst_29 : f32 to vector<8x128xf32>
    %81 = arith.mulf %80, %79 : vector<8x128xf32>
    %cst_30 = arith.constant 5.000000e-01 : f32
    %82 = vector.broadcast %cst_30 : f32 to vector<8x128xf32>
    %83 = arith.addf %81, %82 : vector<8x128xf32>
    %84 = arith.mulf %73, %11 : vector<8x128xf32>
    %85 = arith.mulf %65, %75 : vector<8x128xf32>
    %86 = arith.addf %84, %85 : vector<8x128xf32>
    %87 = math.tanh %86 : vector<8x128xf32>
    %88 = arith.mulf %83, %87 : vector<8x128xf32>
    %89 = arith.addf %53, %88 : vector<8x128xf32>
    %90 = arith.addf %89, %7 : vector<8x128xf32>
    %91 = arith.truncf %90 : vector<8x128xf32> to vector<8x128xbf16>
    %cst_31 = arith.constant dense<0.000000e+00> : vector<8x1024xf32>
    %92 = tpu.matmul %91, %0, %cst_31 {dimension_numbers = #tpu.dot_dimension_numbers<[1], [0], [0], [1], [0, 0, 1, 1], [], []>} : vector<8x128xbf16>, vector<128x1024xbf16>, vector<8x1024xf32> -> vector<8x1024xf32>
    %c1 = arith.constant 1 : index
    %c0_32 = arith.constant 0 : index
    %c0_33 = arith.constant 0 : index
    %93 = vector.load %arg0[%c1, %c0_32, %c0_33] : memref<8x8x1xf32, #tpu.memory_space<vmem>>, vector<1x8x1xf32>
    %94 = vector.shape_cast %93 : vector<1x8x1xf32> to vector<8x1xf32>
    %95 = vector.broadcast %94 : vector<8x1xf32> to vector<8x512xf32>
    %96 = vector.broadcast %2 : vector<1x512xf32> to vector<8x512xf32>
    %97 = arith.mulf %95, %96 : vector<8x512xf32>
    %98 = vector.extract_strided_slice %92 {offsets = [0, 0], sizes = [8, 512], strides = [1, 1]} : vector<8x1024xf32> to vector<8x512xf32>
    %99 = arith.addf %97, %98 : vector<8x512xf32>
    %100 = vector.extract_strided_slice %99 {offsets = [0, 0], sizes = [8, 128], strides = [1, 1]} : vector<8x512xf32> to vector<8x128xf32>
    %cst_34 = arith.constant 5.000000e-01 : f32
    %101 = vector.broadcast %cst_34 : f32 to vector<8x128xf32>
    %102 = arith.mulf %101, %100 : vector<8x128xf32>
    %103 = math.tanh %102 : vector<8x128xf32>
    %cst_35 = arith.constant 5.000000e-01 : f32
    %104 = vector.broadcast %cst_35 : f32 to vector<8x128xf32>
    %105 = arith.mulf %104, %103 : vector<8x128xf32>
    %cst_36 = arith.constant 5.000000e-01 : f32
    %106 = vector.broadcast %cst_36 : f32 to vector<8x128xf32>
    %107 = arith.addf %105, %106 : vector<8x128xf32>
    %108 = vector.extract_strided_slice %99 {offsets = [0, 128], sizes = [8, 128], strides = [1, 1]} : vector<8x512xf32> to vector<8x128xf32>
    %cst_37 = arith.constant 5.000000e-01 : f32
    %109 = vector.broadcast %cst_37 : f32 to vector<8x128xf32>
    %110 = arith.mulf %109, %108 : vector<8x128xf32>
    %111 = math.tanh %110 : vector<8x128xf32>
    %cst_38 = arith.constant 5.000000e-01 : f32
    %112 = vector.broadcast %cst_38 : f32 to vector<8x128xf32>
    %113 = arith.mulf %112, %111 : vector<8x128xf32>
    %cst_39 = arith.constant 5.000000e-01 : f32
    %114 = vector.broadcast %cst_39 : f32 to vector<8x128xf32>
    %115 = arith.addf %113, %114 : vector<8x128xf32>
    %116 = vector.extract_strided_slice %99 {offsets = [0, 256], sizes = [8, 128], strides = [1, 1]} : vector<8x512xf32> to vector<8x128xf32>
    %117 = math.tanh %116 : vector<8x128xf32>
    %118 = vector.extract_strided_slice %99 {offsets = [0, 384], sizes = [8, 128], strides = [1, 1]} : vector<8x512xf32> to vector<8x128xf32>
    %cst_40 = arith.constant 5.000000e-01 : f32
    %119 = vector.broadcast %cst_40 : f32 to vector<8x128xf32>
    %120 = arith.mulf %119, %118 : vector<8x128xf32>
    %121 = math.tanh %120 : vector<8x128xf32>
    %cst_41 = arith.constant 5.000000e-01 : f32
    %122 = vector.broadcast %cst_41 : f32 to vector<8x128xf32>
    %123 = arith.mulf %122, %121 : vector<8x128xf32>
    %cst_42 = arith.constant 5.000000e-01 : f32
    %124 = vector.broadcast %cst_42 : f32 to vector<8x128xf32>
    %125 = arith.addf %123, %124 : vector<8x128xf32>
    %126 = arith.mulf %115, %51 : vector<8x128xf32>
    %127 = arith.mulf %107, %117 : vector<8x128xf32>
    %128 = arith.addf %126, %127 : vector<8x128xf32>
    %129 = math.tanh %128 : vector<8x128xf32>
    %130 = arith.mulf %125, %129 : vector<8x128xf32>
    %131 = arith.truncf %130 : vector<8x128xf32> to vector<8x128xbf16>
    %cst_43 = arith.constant dense<0.000000e+00> : vector<8x512xf32>
    %132 = tpu.matmul %131, %1, %cst_43 {dimension_numbers = #tpu.dot_dimension_numbers<[1], [0], [0], [1], [0, 0, 1, 1], [], []>} : vector<8x128xbf16>, vector<128x512xbf16>, vector<8x512xf32> -> vector<8x512xf32>
    %133 = vector.extract_strided_slice %92 {offsets = [0, 512], sizes = [8, 512], strides = [1, 1]} : vector<8x1024xf32> to vector<8x512xf32>
    %134 = arith.addf %132, %133 : vector<8x512xf32>
    %135 = vector.extract_strided_slice %134 {offsets = [0, 0], sizes = [8, 128], strides = [1, 1]} : vector<8x512xf32> to vector<8x128xf32>
    %cst_44 = arith.constant 5.000000e-01 : f32
    %136 = vector.broadcast %cst_44 : f32 to vector<8x128xf32>
    %137 = arith.mulf %136, %135 : vector<8x128xf32>
    %138 = math.tanh %137 : vector<8x128xf32>
    %cst_45 = arith.constant 5.000000e-01 : f32
    %139 = vector.broadcast %cst_45 : f32 to vector<8x128xf32>
    %140 = arith.mulf %139, %138 : vector<8x128xf32>
    %cst_46 = arith.constant 5.000000e-01 : f32
    %141 = vector.broadcast %cst_46 : f32 to vector<8x128xf32>
    %142 = arith.addf %140, %141 : vector<8x128xf32>
    %143 = vector.extract_strided_slice %134 {offsets = [0, 128], sizes = [8, 128], strides = [1, 1]} : vector<8x512xf32> to vector<8x128xf32>
    %cst_47 = arith.constant 5.000000e-01 : f32
    %144 = vector.broadcast %cst_47 : f32 to vector<8x128xf32>
    %145 = arith.mulf %144, %143 : vector<8x128xf32>
    %146 = math.tanh %145 : vector<8x128xf32>
    %cst_48 = arith.constant 5.000000e-01 : f32
    %147 = vector.broadcast %cst_48 : f32 to vector<8x128xf32>
    %148 = arith.mulf %147, %146 : vector<8x128xf32>
    %cst_49 = arith.constant 5.000000e-01 : f32
    %149 = vector.broadcast %cst_49 : f32 to vector<8x128xf32>
    %150 = arith.addf %148, %149 : vector<8x128xf32>
    %151 = vector.extract_strided_slice %134 {offsets = [0, 256], sizes = [8, 128], strides = [1, 1]} : vector<8x512xf32> to vector<8x128xf32>
    %152 = math.tanh %151 : vector<8x128xf32>
    %153 = vector.extract_strided_slice %134 {offsets = [0, 384], sizes = [8, 128], strides = [1, 1]} : vector<8x512xf32> to vector<8x128xf32>
    %cst_50 = arith.constant 5.000000e-01 : f32
    %154 = vector.broadcast %cst_50 : f32 to vector<8x128xf32>
    %155 = arith.mulf %154, %153 : vector<8x128xf32>
    %156 = math.tanh %155 : vector<8x128xf32>
    %cst_51 = arith.constant 5.000000e-01 : f32
    %157 = vector.broadcast %cst_51 : f32 to vector<8x128xf32>
    %158 = arith.mulf %157, %156 : vector<8x128xf32>
    %cst_52 = arith.constant 5.000000e-01 : f32
    %159 = vector.broadcast %cst_52 : f32 to vector<8x128xf32>
    %160 = arith.addf %158, %159 : vector<8x128xf32>
    %161 = arith.mulf %150, %86 : vector<8x128xf32>
    %162 = arith.mulf %142, %152 : vector<8x128xf32>
    %163 = arith.addf %161, %162 : vector<8x128xf32>
    %164 = math.tanh %163 : vector<8x128xf32>
    %165 = arith.mulf %160, %164 : vector<8x128xf32>
    %166 = arith.addf %130, %165 : vector<8x128xf32>
    %167 = arith.addf %166, %7 : vector<8x128xf32>
    %168 = arith.truncf %167 : vector<8x128xf32> to vector<8x128xbf16>
    %cst_53 = arith.constant dense<0.000000e+00> : vector<8x1024xf32>
    %169 = tpu.matmul %168, %0, %cst_53 {dimension_numbers = #tpu.dot_dimension_numbers<[1], [0], [0], [1], [0, 0, 1, 1], [], []>} : vector<8x128xbf16>, vector<128x1024xbf16>, vector<8x1024xf32> -> vector<8x1024xf32>
    %c2 = arith.constant 2 : index
    %c0_54 = arith.constant 0 : index
    %c0_55 = arith.constant 0 : index
    %170 = vector.load %arg0[%c2, %c0_54, %c0_55] : memref<8x8x1xf32, #tpu.memory_space<vmem>>, vector<1x8x1xf32>
    %171 = vector.shape_cast %170 : vector<1x8x1xf32> to vector<8x1xf32>
    %172 = vector.broadcast %171 : vector<8x1xf32> to vector<8x512xf32>
    %173 = vector.broadcast %2 : vector<1x512xf32> to vector<8x512xf32>
    %174 = arith.mulf %172, %173 : vector<8x512xf32>
    %175 = vector.extract_strided_slice %169 {offsets = [0, 0], sizes = [8, 512], strides = [1, 1]} : vector<8x1024xf32> to vector<8x512xf32>
    %176 = arith.addf %174, %175 : vector<8x512xf32>
    %177 = vector.extract_strided_slice %176 {offsets = [0, 0], sizes = [8, 128], strides = [1, 1]} : vector<8x512xf32> to vector<8x128xf32>
    %cst_56 = arith.constant 5.000000e-01 : f32
    %178 = vector.broadcast %cst_56 : f32 to vector<8x128xf32>
    %179 = arith.mulf %178, %177 : vector<8x128xf32>
    %180 = math.tanh %179 : vector<8x128xf32>
    %cst_57 = arith.constant 5.000000e-01 : f32
    %181 = vector.broadcast %cst_57 : f32 to vector<8x128xf32>
    %182 = arith.mulf %181, %180 : vector<8x128xf32>
    %cst_58 = arith.constant 5.000000e-01 : f32
    %183 = vector.broadcast %cst_58 : f32 to vector<8x128xf32>
    %184 = arith.addf %182, %183 : vector<8x128xf32>
    %185 = vector.extract_strided_slice %176 {offsets = [0, 128], sizes = [8, 128], strides = [1, 1]} : vector<8x512xf32> to vector<8x128xf32>
    %cst_59 = arith.constant 5.000000e-01 : f32
    %186 = vector.broadcast %cst_59 : f32 to vector<8x128xf32>
    %187 = arith.mulf %186, %185 : vector<8x128xf32>
    %188 = math.tanh %187 : vector<8x128xf32>
    %cst_60 = arith.constant 5.000000e-01 : f32
    %189 = vector.broadcast %cst_60 : f32 to vector<8x128xf32>
    %190 = arith.mulf %189, %188 : vector<8x128xf32>
    %cst_61 = arith.constant 5.000000e-01 : f32
    %191 = vector.broadcast %cst_61 : f32 to vector<8x128xf32>
    %192 = arith.addf %190, %191 : vector<8x128xf32>
    %193 = vector.extract_strided_slice %176 {offsets = [0, 256], sizes = [8, 128], strides = [1, 1]} : vector<8x512xf32> to vector<8x128xf32>
    %194 = math.tanh %193 : vector<8x128xf32>
    %195 = vector.extract_strided_slice %176 {offsets = [0, 384], sizes = [8, 128], strides = [1, 1]} : vector<8x512xf32> to vector<8x128xf32>
    %cst_62 = arith.constant 5.000000e-01 : f32
    %196 = vector.broadcast %cst_62 : f32 to vector<8x128xf32>
    %197 = arith.mulf %196, %195 : vector<8x128xf32>
    %198 = math.tanh %197 : vector<8x128xf32>
    %cst_63 = arith.constant 5.000000e-01 : f32
    %199 = vector.broadcast %cst_63 : f32 to vector<8x128xf32>
    %200 = arith.mulf %199, %198 : vector<8x128xf32>
    %cst_64 = arith.constant 5.000000e-01 : f32
    %201 = vector.broadcast %cst_64 : f32 to vector<8x128xf32>
    %202 = arith.addf %200, %201 : vector<8x128xf32>
    %203 = arith.mulf %192, %128 : vector<8x128xf32>
    %204 = arith.mulf %184, %194 : vector<8x128xf32>
    %205 = arith.addf %203, %204 : vector<8x128xf32>
    %206 = math.tanh %205 : vector<8x128xf32>
    %207 = arith.mulf %202, %206 : vector<8x128xf32>
    %208 = arith.truncf %207 : vector<8x128xf32> to vector<8x128xbf16>
    %cst_65 = arith.constant dense<0.000000e+00> : vector<8x512xf32>
    %209 = tpu.matmul %208, %1, %cst_65 {dimension_numbers = #tpu.dot_dimension_numbers<[1], [0], [0], [1], [0, 0, 1, 1], [], []>} : vector<8x128xbf16>, vector<128x512xbf16>, vector<8x512xf32> -> vector<8x512xf32>
    %210 = vector.extract_strided_slice %169 {offsets = [0, 512], sizes = [8, 512], strides = [1, 1]} : vector<8x1024xf32> to vector<8x512xf32>
    %211 = arith.addf %209, %210 : vector<8x512xf32>
    %212 = vector.extract_strided_slice %211 {offsets = [0, 0], sizes = [8, 128], strides = [1, 1]} : vector<8x512xf32> to vector<8x128xf32>
    %cst_66 = arith.constant 5.000000e-01 : f32
    %213 = vector.broadcast %cst_66 : f32 to vector<8x128xf32>
    %214 = arith.mulf %213, %212 : vector<8x128xf32>
    %215 = math.tanh %214 : vector<8x128xf32>
    %cst_67 = arith.constant 5.000000e-01 : f32
    %216 = vector.broadcast %cst_67 : f32 to vector<8x128xf32>
    %217 = arith.mulf %216, %215 : vector<8x128xf32>
    %cst_68 = arith.constant 5.000000e-01 : f32
    %218 = vector.broadcast %cst_68 : f32 to vector<8x128xf32>
    %219 = arith.addf %217, %218 : vector<8x128xf32>
    %220 = vector.extract_strided_slice %211 {offsets = [0, 128], sizes = [8, 128], strides = [1, 1]} : vector<8x512xf32> to vector<8x128xf32>
    %cst_69 = arith.constant 5.000000e-01 : f32
    %221 = vector.broadcast %cst_69 : f32 to vector<8x128xf32>
    %222 = arith.mulf %221, %220 : vector<8x128xf32>
    %223 = math.tanh %222 : vector<8x128xf32>
    %cst_70 = arith.constant 5.000000e-01 : f32
    %224 = vector.broadcast %cst_70 : f32 to vector<8x128xf32>
    %225 = arith.mulf %224, %223 : vector<8x128xf32>
    %cst_71 = arith.constant 5.000000e-01 : f32
    %226 = vector.broadcast %cst_71 : f32 to vector<8x128xf32>
    %227 = arith.addf %225, %226 : vector<8x128xf32>
    %228 = vector.extract_strided_slice %211 {offsets = [0, 256], sizes = [8, 128], strides = [1, 1]} : vector<8x512xf32> to vector<8x128xf32>
    %229 = math.tanh %228 : vector<8x128xf32>
    %230 = vector.extract_strided_slice %211 {offsets = [0, 384], sizes = [8, 128], strides = [1, 1]} : vector<8x512xf32> to vector<8x128xf32>
    %cst_72 = arith.constant 5.000000e-01 : f32
    %231 = vector.broadcast %cst_72 : f32 to vector<8x128xf32>
    %232 = arith.mulf %231, %230 : vector<8x128xf32>
    %233 = math.tanh %232 : vector<8x128xf32>
    %cst_73 = arith.constant 5.000000e-01 : f32
    %234 = vector.broadcast %cst_73 : f32 to vector<8x128xf32>
    %235 = arith.mulf %234, %233 : vector<8x128xf32>
    %cst_74 = arith.constant 5.000000e-01 : f32
    %236 = vector.broadcast %cst_74 : f32 to vector<8x128xf32>
    %237 = arith.addf %235, %236 : vector<8x128xf32>
    %238 = arith.mulf %227, %163 : vector<8x128xf32>
    %239 = arith.mulf %219, %229 : vector<8x128xf32>
    %240 = arith.addf %238, %239 : vector<8x128xf32>
    %241 = math.tanh %240 : vector<8x128xf32>
    %242 = arith.mulf %237, %241 : vector<8x128xf32>
    %243 = arith.addf %207, %242 : vector<8x128xf32>
    %244 = arith.addf %243, %7 : vector<8x128xf32>
    %245 = arith.truncf %244 : vector<8x128xf32> to vector<8x128xbf16>
    %cst_75 = arith.constant dense<0.000000e+00> : vector<8x1024xf32>
    %246 = tpu.matmul %245, %0, %cst_75 {dimension_numbers = #tpu.dot_dimension_numbers<[1], [0], [0], [1], [0, 0, 1, 1], [], []>} : vector<8x128xbf16>, vector<128x1024xbf16>, vector<8x1024xf32> -> vector<8x1024xf32>
    %c3 = arith.constant 3 : index
    %c0_76 = arith.constant 0 : index
    %c0_77 = arith.constant 0 : index
    %247 = vector.load %arg0[%c3, %c0_76, %c0_77] : memref<8x8x1xf32, #tpu.memory_space<vmem>>, vector<1x8x1xf32>
    %248 = vector.shape_cast %247 : vector<1x8x1xf32> to vector<8x1xf32>
    %249 = vector.broadcast %248 : vector<8x1xf32> to vector<8x512xf32>
    %250 = vector.broadcast %2 : vector<1x512xf32> to vector<8x512xf32>
    %251 = arith.mulf %249, %250 : vector<8x512xf32>
    %252 = vector.extract_strided_slice %246 {offsets = [0, 0], sizes = [8, 512], strides = [1, 1]} : vector<8x1024xf32> to vector<8x512xf32>
    %253 = arith.addf %251, %252 : vector<8x512xf32>
    %254 = vector.extract_strided_slice %253 {offsets = [0, 0], sizes = [8, 128], strides = [1, 1]} : vector<8x512xf32> to vector<8x128xf32>
    %cst_78 = arith.constant 5.000000e-01 : f32
    %255 = vector.broadcast %cst_78 : f32 to vector<8x128xf32>
    %256 = arith.mulf %255, %254 : vector<8x128xf32>
    %257 = math.tanh %256 : vector<8x128xf32>
    %cst_79 = arith.constant 5.000000e-01 : f32
    %258 = vector.broadcast %cst_79 : f32 to vector<8x128xf32>
    %259 = arith.mulf %258, %257 : vector<8x128xf32>
    %cst_80 = arith.constant 5.000000e-01 : f32
    %260 = vector.broadcast %cst_80 : f32 to vector<8x128xf32>
    %261 = arith.addf %259, %260 : vector<8x128xf32>
    %262 = vector.extract_strided_slice %253 {offsets = [0, 128], sizes = [8, 128], strides = [1, 1]} : vector<8x512xf32> to vector<8x128xf32>
    %cst_81 = arith.constant 5.000000e-01 : f32
    %263 = vector.broadcast %cst_81 : f32 to vector<8x128xf32>
    %264 = arith.mulf %263, %262 : vector<8x128xf32>
    %265 = math.tanh %264 : vector<8x128xf32>
    %cst_82 = arith.constant 5.000000e-01 : f32
    %266 = vector.broadcast %cst_82 : f32 to vector<8x128xf32>
    %267 = arith.mulf %266, %265 : vector<8x128xf32>
    %cst_83 = arith.constant 5.000000e-01 : f32
    %268 = vector.broadcast %cst_83 : f32 to vector<8x128xf32>
    %269 = arith.addf %267, %268 : vector<8x128xf32>
    %270 = vector.extract_strided_slice %253 {offsets = [0, 256], sizes = [8, 128], strides = [1, 1]} : vector<8x512xf32> to vector<8x128xf32>
    %271 = math.tanh %270 : vector<8x128xf32>
    %272 = vector.extract_strided_slice %253 {offsets = [0, 384], sizes = [8, 128], strides = [1, 1]} : vector<8x512xf32> to vector<8x128xf32>
    %cst_84 = arith.constant 5.000000e-01 : f32
    %273 = vector.broadcast %cst_84 : f32 to vector<8x128xf32>
    %274 = arith.mulf %273, %272 : vector<8x128xf32>
    %275 = math.tanh %274 : vector<8x128xf32>
    %cst_85 = arith.constant 5.000000e-01 : f32
    %276 = vector.broadcast %cst_85 : f32 to vector<8x128xf32>
    %277 = arith.mulf %276, %275 : vector<8x128xf32>
    %cst_86 = arith.constant 5.000000e-01 : f32
    %278 = vector.broadcast %cst_86 : f32 to vector<8x128xf32>
    %279 = arith.addf %277, %278 : vector<8x128xf32>
    %280 = arith.mulf %269, %205 : vector<8x128xf32>
    %281 = arith.mulf %261, %271 : vector<8x128xf32>
    %282 = arith.addf %280, %281 : vector<8x128xf32>
    %283 = math.tanh %282 : vector<8x128xf32>
    %284 = arith.mulf %279, %283 : vector<8x128xf32>
    %285 = arith.truncf %284 : vector<8x128xf32> to vector<8x128xbf16>
    %cst_87 = arith.constant dense<0.000000e+00> : vector<8x512xf32>
    %286 = tpu.matmul %285, %1, %cst_87 {dimension_numbers = #tpu.dot_dimension_numbers<[1], [0], [0], [1], [0, 0, 1, 1], [], []>} : vector<8x128xbf16>, vector<128x512xbf16>, vector<8x512xf32> -> vector<8x512xf32>
    %287 = vector.extract_strided_slice %246 {offsets = [0, 512], sizes = [8, 512], strides = [1, 1]} : vector<8x1024xf32> to vector<8x512xf32>
    %288 = arith.addf %286, %287 : vector<8x512xf32>
    %289 = vector.extract_strided_slice %288 {offsets = [0, 0], sizes = [8, 128], strides = [1, 1]} : vector<8x512xf32> to vector<8x128xf32>
    %cst_88 = arith.constant 5.000000e-01 : f32
    %290 = vector.broadcast %cst_88 : f32 to vector<8x128xf32>
    %291 = arith.mulf %290, %289 : vector<8x128xf32>
    %292 = math.tanh %291 : vector<8x128xf32>
    %cst_89 = arith.constant 5.000000e-01 : f32
    %293 = vector.broadcast %cst_89 : f32 to vector<8x128xf32>
    %294 = arith.mulf %293, %292 : vector<8x128xf32>
    %cst_90 = arith.constant 5.000000e-01 : f32
    %295 = vector.broadcast %cst_90 : f32 to vector<8x128xf32>
    %296 = arith.addf %294, %295 : vector<8x128xf32>
    %297 = vector.extract_strided_slice %288 {offsets = [0, 128], sizes = [8, 128], strides = [1, 1]} : vector<8x512xf32> to vector<8x128xf32>
    %cst_91 = arith.constant 5.000000e-01 : f32
    %298 = vector.broadcast %cst_91 : f32 to vector<8x128xf32>
    %299 = arith.mulf %298, %297 : vector<8x128xf32>
    %300 = math.tanh %299 : vector<8x128xf32>
    %cst_92 = arith.constant 5.000000e-01 : f32
    %301 = vector.broadcast %cst_92 : f32 to vector<8x128xf32>
    %302 = arith.mulf %301, %300 : vector<8x128xf32>
    %cst_93 = arith.constant 5.000000e-01 : f32
    %303 = vector.broadcast %cst_93 : f32 to vector<8x128xf32>
    %304 = arith.addf %302, %303 : vector<8x128xf32>
    %305 = vector.extract_strided_slice %288 {offsets = [0, 256], sizes = [8, 128], strides = [1, 1]} : vector<8x512xf32> to vector<8x128xf32>
    %306 = math.tanh %305 : vector<8x128xf32>
    %307 = vector.extract_strided_slice %288 {offsets = [0, 384], sizes = [8, 128], strides = [1, 1]} : vector<8x512xf32> to vector<8x128xf32>
    %cst_94 = arith.constant 5.000000e-01 : f32
    %308 = vector.broadcast %cst_94 : f32 to vector<8x128xf32>
    %309 = arith.mulf %308, %307 : vector<8x128xf32>
    %310 = math.tanh %309 : vector<8x128xf32>
    %cst_95 = arith.constant 5.000000e-01 : f32
    %311 = vector.broadcast %cst_95 : f32 to vector<8x128xf32>
    %312 = arith.mulf %311, %310 : vector<8x128xf32>
    %cst_96 = arith.constant 5.000000e-01 : f32
    %313 = vector.broadcast %cst_96 : f32 to vector<8x128xf32>
    %314 = arith.addf %312, %313 : vector<8x128xf32>
    %315 = arith.mulf %304, %240 : vector<8x128xf32>
    %316 = arith.mulf %296, %306 : vector<8x128xf32>
    %317 = arith.addf %315, %316 : vector<8x128xf32>
    %318 = math.tanh %317 : vector<8x128xf32>
    %319 = arith.mulf %314, %318 : vector<8x128xf32>
    %320 = arith.addf %284, %319 : vector<8x128xf32>
    %321 = arith.addf %320, %7 : vector<8x128xf32>
    %322 = arith.truncf %321 : vector<8x128xf32> to vector<8x128xbf16>
    %cst_97 = arith.constant dense<0.000000e+00> : vector<8x1024xf32>
    %323 = tpu.matmul %322, %0, %cst_97 {dimension_numbers = #tpu.dot_dimension_numbers<[1], [0], [0], [1], [0, 0, 1, 1], [], []>} : vector<8x128xbf16>, vector<128x1024xbf16>, vector<8x1024xf32> -> vector<8x1024xf32>
    %c4 = arith.constant 4 : index
    %c0_98 = arith.constant 0 : index
    %c0_99 = arith.constant 0 : index
    %324 = vector.load %arg0[%c4, %c0_98, %c0_99] : memref<8x8x1xf32, #tpu.memory_space<vmem>>, vector<1x8x1xf32>
    %325 = vector.shape_cast %324 : vector<1x8x1xf32> to vector<8x1xf32>
    %326 = vector.broadcast %325 : vector<8x1xf32> to vector<8x512xf32>
    %327 = vector.broadcast %2 : vector<1x512xf32> to vector<8x512xf32>
    %328 = arith.mulf %326, %327 : vector<8x512xf32>
    %329 = vector.extract_strided_slice %323 {offsets = [0, 0], sizes = [8, 512], strides = [1, 1]} : vector<8x1024xf32> to vector<8x512xf32>
    %330 = arith.addf %328, %329 : vector<8x512xf32>
    %331 = vector.extract_strided_slice %330 {offsets = [0, 0], sizes = [8, 128], strides = [1, 1]} : vector<8x512xf32> to vector<8x128xf32>
    %cst_100 = arith.constant 5.000000e-01 : f32
    %332 = vector.broadcast %cst_100 : f32 to vector<8x128xf32>
    %333 = arith.mulf %332, %331 : vector<8x128xf32>
    %334 = math.tanh %333 : vector<8x128xf32>
    %cst_101 = arith.constant 5.000000e-01 : f32
    %335 = vector.broadcast %cst_101 : f32 to vector<8x128xf32>
    %336 = arith.mulf %335, %334 : vector<8x128xf32>
    %cst_102 = arith.constant 5.000000e-01 : f32
    %337 = vector.broadcast %cst_102 : f32 to vector<8x128xf32>
    %338 = arith.addf %336, %337 : vector<8x128xf32>
    %339 = vector.extract_strided_slice %330 {offsets = [0, 128], sizes = [8, 128], strides = [1, 1]} : vector<8x512xf32> to vector<8x128xf32>
    %cst_103 = arith.constant 5.000000e-01 : f32
    %340 = vector.broadcast %cst_103 : f32 to vector<8x128xf32>
    %341 = arith.mulf %340, %339 : vector<8x128xf32>
    %342 = math.tanh %341 : vector<8x128xf32>
    %cst_104 = arith.constant 5.000000e-01 : f32
    %343 = vector.broadcast %cst_104 : f32 to vector<8x128xf32>
    %344 = arith.mulf %343, %342 : vector<8x128xf32>
    %cst_105 = arith.constant 5.000000e-01 : f32
    %345 = vector.broadcast %cst_105 : f32 to vector<8x128xf32>
    %346 = arith.addf %344, %345 : vector<8x128xf32>
    %347 = vector.extract_strided_slice %330 {offsets = [0, 256], sizes = [8, 128], strides = [1, 1]} : vector<8x512xf32> to vector<8x128xf32>
    %348 = math.tanh %347 : vector<8x128xf32>
    %349 = vector.extract_strided_slice %330 {offsets = [0, 384], sizes = [8, 128], strides = [1, 1]} : vector<8x512xf32> to vector<8x128xf32>
    %cst_106 = arith.constant 5.000000e-01 : f32
    %350 = vector.broadcast %cst_106 : f32 to vector<8x128xf32>
    %351 = arith.mulf %350, %349 : vector<8x128xf32>
    %352 = math.tanh %351 : vector<8x128xf32>
    %cst_107 = arith.constant 5.000000e-01 : f32
    %353 = vector.broadcast %cst_107 : f32 to vector<8x128xf32>
    %354 = arith.mulf %353, %352 : vector<8x128xf32>
    %cst_108 = arith.constant 5.000000e-01 : f32
    %355 = vector.broadcast %cst_108 : f32 to vector<8x128xf32>
    %356 = arith.addf %354, %355 : vector<8x128xf32>
    %357 = arith.mulf %346, %282 : vector<8x128xf32>
    %358 = arith.mulf %338, %348 : vector<8x128xf32>
    %359 = arith.addf %357, %358 : vector<8x128xf32>
    %360 = math.tanh %359 : vector<8x128xf32>
    %361 = arith.mulf %356, %360 : vector<8x128xf32>
    %362 = arith.truncf %361 : vector<8x128xf32> to vector<8x128xbf16>
    %cst_109 = arith.constant dense<0.000000e+00> : vector<8x512xf32>
    %363 = tpu.matmul %362, %1, %cst_109 {dimension_numbers = #tpu.dot_dimension_numbers<[1], [0], [0], [1], [0, 0, 1, 1], [], []>} : vector<8x128xbf16>, vector<128x512xbf16>, vector<8x512xf32> -> vector<8x512xf32>
    %364 = vector.extract_strided_slice %323 {offsets = [0, 512], sizes = [8, 512], strides = [1, 1]} : vector<8x1024xf32> to vector<8x512xf32>
    %365 = arith.addf %363, %364 : vector<8x512xf32>
    %366 = vector.extract_strided_slice %365 {offsets = [0, 0], sizes = [8, 128], strides = [1, 1]} : vector<8x512xf32> to vector<8x128xf32>
    %cst_110 = arith.constant 5.000000e-01 : f32
    %367 = vector.broadcast %cst_110 : f32 to vector<8x128xf32>
    %368 = arith.mulf %367, %366 : vector<8x128xf32>
    %369 = math.tanh %368 : vector<8x128xf32>
    %cst_111 = arith.constant 5.000000e-01 : f32
    %370 = vector.broadcast %cst_111 : f32 to vector<8x128xf32>
    %371 = arith.mulf %370, %369 : vector<8x128xf32>
    %cst_112 = arith.constant 5.000000e-01 : f32
    %372 = vector.broadcast %cst_112 : f32 to vector<8x128xf32>
    %373 = arith.addf %371, %372 : vector<8x128xf32>
    %374 = vector.extract_strided_slice %365 {offsets = [0, 128], sizes = [8, 128], strides = [1, 1]} : vector<8x512xf32> to vector<8x128xf32>
    %cst_113 = arith.constant 5.000000e-01 : f32
    %375 = vector.broadcast %cst_113 : f32 to vector<8x128xf32>
    %376 = arith.mulf %375, %374 : vector<8x128xf32>
    %377 = math.tanh %376 : vector<8x128xf32>
    %cst_114 = arith.constant 5.000000e-01 : f32
    %378 = vector.broadcast %cst_114 : f32 to vector<8x128xf32>
    %379 = arith.mulf %378, %377 : vector<8x128xf32>
    %cst_115 = arith.constant 5.000000e-01 : f32
    %380 = vector.broadcast %cst_115 : f32 to vector<8x128xf32>
    %381 = arith.addf %379, %380 : vector<8x128xf32>
    %382 = vector.extract_strided_slice %365 {offsets = [0, 256], sizes = [8, 128], strides = [1, 1]} : vector<8x512xf32> to vector<8x128xf32>
    %383 = math.tanh %382 : vector<8x128xf32>
    %384 = vector.extract_strided_slice %365 {offsets = [0, 384], sizes = [8, 128], strides = [1, 1]} : vector<8x512xf32> to vector<8x128xf32>
    %cst_116 = arith.constant 5.000000e-01 : f32
    %385 = vector.broadcast %cst_116 : f32 to vector<8x128xf32>
    %386 = arith.mulf %385, %384 : vector<8x128xf32>
    %387 = math.tanh %386 : vector<8x128xf32>
    %cst_117 = arith.constant 5.000000e-01 : f32
    %388 = vector.broadcast %cst_117 : f32 to vector<8x128xf32>
    %389 = arith.mulf %388, %387 : vector<8x128xf32>
    %cst_118 = arith.constant 5.000000e-01 : f32
    %390 = vector.broadcast %cst_118 : f32 to vector<8x128xf32>
    %391 = arith.addf %389, %390 : vector<8x128xf32>
    %392 = arith.mulf %381, %317 : vector<8x128xf32>
    %393 = arith.mulf %373, %383 : vector<8x128xf32>
    %394 = arith.addf %392, %393 : vector<8x128xf32>
    %395 = math.tanh %394 : vector<8x128xf32>
    %396 = arith.mulf %391, %395 : vector<8x128xf32>
    %397 = arith.addf %361, %396 : vector<8x128xf32>
    %398 = arith.addf %397, %7 : vector<8x128xf32>
    %399 = arith.truncf %398 : vector<8x128xf32> to vector<8x128xbf16>
    %cst_119 = arith.constant dense<0.000000e+00> : vector<8x1024xf32>
    %400 = tpu.matmul %399, %0, %cst_119 {dimension_numbers = #tpu.dot_dimension_numbers<[1], [0], [0], [1], [0, 0, 1, 1], [], []>} : vector<8x128xbf16>, vector<128x1024xbf16>, vector<8x1024xf32> -> vector<8x1024xf32>
    %c5 = arith.constant 5 : index
    %c0_120 = arith.constant 0 : index
    %c0_121 = arith.constant 0 : index
    %401 = vector.load %arg0[%c5, %c0_120, %c0_121] : memref<8x8x1xf32, #tpu.memory_space<vmem>>, vector<1x8x1xf32>
    %402 = vector.shape_cast %401 : vector<1x8x1xf32> to vector<8x1xf32>
    %403 = vector.broadcast %402 : vector<8x1xf32> to vector<8x512xf32>
    %404 = vector.broadcast %2 : vector<1x512xf32> to vector<8x512xf32>
    %405 = arith.mulf %403, %404 : vector<8x512xf32>
    %406 = vector.extract_strided_slice %400 {offsets = [0, 0], sizes = [8, 512], strides = [1, 1]} : vector<8x1024xf32> to vector<8x512xf32>
    %407 = arith.addf %405, %406 : vector<8x512xf32>
    %408 = vector.extract_strided_slice %407 {offsets = [0, 0], sizes = [8, 128], strides = [1, 1]} : vector<8x512xf32> to vector<8x128xf32>
    %cst_122 = arith.constant 5.000000e-01 : f32
    %409 = vector.broadcast %cst_122 : f32 to vector<8x128xf32>
    %410 = arith.mulf %409, %408 : vector<8x128xf32>
    %411 = math.tanh %410 : vector<8x128xf32>
    %cst_123 = arith.constant 5.000000e-01 : f32
    %412 = vector.broadcast %cst_123 : f32 to vector<8x128xf32>
    %413 = arith.mulf %412, %411 : vector<8x128xf32>
    %cst_124 = arith.constant 5.000000e-01 : f32
    %414 = vector.broadcast %cst_124 : f32 to vector<8x128xf32>
    %415 = arith.addf %413, %414 : vector<8x128xf32>
    %416 = vector.extract_strided_slice %407 {offsets = [0, 128], sizes = [8, 128], strides = [1, 1]} : vector<8x512xf32> to vector<8x128xf32>
    %cst_125 = arith.constant 5.000000e-01 : f32
    %417 = vector.broadcast %cst_125 : f32 to vector<8x128xf32>
    %418 = arith.mulf %417, %416 : vector<8x128xf32>
    %419 = math.tanh %418 : vector<8x128xf32>
    %cst_126 = arith.constant 5.000000e-01 : f32
    %420 = vector.broadcast %cst_126 : f32 to vector<8x128xf32>
    %421 = arith.mulf %420, %419 : vector<8x128xf32>
    %cst_127 = arith.constant 5.000000e-01 : f32
    %422 = vector.broadcast %cst_127 : f32 to vector<8x128xf32>
    %423 = arith.addf %421, %422 : vector<8x128xf32>
    %424 = vector.extract_strided_slice %407 {offsets = [0, 256], sizes = [8, 128], strides = [1, 1]} : vector<8x512xf32> to vector<8x128xf32>
    %425 = math.tanh %424 : vector<8x128xf32>
    %426 = vector.extract_strided_slice %407 {offsets = [0, 384], sizes = [8, 128], strides = [1, 1]} : vector<8x512xf32> to vector<8x128xf32>
    %cst_128 = arith.constant 5.000000e-01 : f32
    %427 = vector.broadcast %cst_128 : f32 to vector<8x128xf32>
    %428 = arith.mulf %427, %426 : vector<8x128xf32>
    %429 = math.tanh %428 : vector<8x128xf32>
    %cst_129 = arith.constant 5.000000e-01 : f32
    %430 = vector.broadcast %cst_129 : f32 to vector<8x128xf32>
    %431 = arith.mulf %430, %429 : vector<8x128xf32>
    %cst_130 = arith.constant 5.000000e-01 : f32
    %432 = vector.broadcast %cst_130 : f32 to vector<8x128xf32>
    %433 = arith.addf %431, %432 : vector<8x128xf32>
    %434 = arith.mulf %423, %359 : vector<8x128xf32>
    %435 = arith.mulf %415, %425 : vector<8x128xf32>
    %436 = arith.addf %434, %435 : vector<8x128xf32>
    %437 = math.tanh %436 : vector<8x128xf32>
    %438 = arith.mulf %433, %437 : vector<8x128xf32>
    %439 = arith.truncf %438 : vector<8x128xf32> to vector<8x128xbf16>
    %cst_131 = arith.constant dense<0.000000e+00> : vector<8x512xf32>
    %440 = tpu.matmul %439, %1, %cst_131 {dimension_numbers = #tpu.dot_dimension_numbers<[1], [0], [0], [1], [0, 0, 1, 1], [], []>} : vector<8x128xbf16>, vector<128x512xbf16>, vector<8x512xf32> -> vector<8x512xf32>
    %441 = vector.extract_strided_slice %400 {offsets = [0, 512], sizes = [8, 512], strides = [1, 1]} : vector<8x1024xf32> to vector<8x512xf32>
    %442 = arith.addf %440, %441 : vector<8x512xf32>
    %443 = vector.extract_strided_slice %442 {offsets = [0, 0], sizes = [8, 128], strides = [1, 1]} : vector<8x512xf32> to vector<8x128xf32>
    %cst_132 = arith.constant 5.000000e-01 : f32
    %444 = vector.broadcast %cst_132 : f32 to vector<8x128xf32>
    %445 = arith.mulf %444, %443 : vector<8x128xf32>
    %446 = math.tanh %445 : vector<8x128xf32>
    %cst_133 = arith.constant 5.000000e-01 : f32
    %447 = vector.broadcast %cst_133 : f32 to vector<8x128xf32>
    %448 = arith.mulf %447, %446 : vector<8x128xf32>
    %cst_134 = arith.constant 5.000000e-01 : f32
    %449 = vector.broadcast %cst_134 : f32 to vector<8x128xf32>
    %450 = arith.addf %448, %449 : vector<8x128xf32>
    %451 = vector.extract_strided_slice %442 {offsets = [0, 128], sizes = [8, 128], strides = [1, 1]} : vector<8x512xf32> to vector<8x128xf32>
    %cst_135 = arith.constant 5.000000e-01 : f32
    %452 = vector.broadcast %cst_135 : f32 to vector<8x128xf32>
    %453 = arith.mulf %452, %451 : vector<8x128xf32>
    %454 = math.tanh %453 : vector<8x128xf32>
    %cst_136 = arith.constant 5.000000e-01 : f32
    %455 = vector.broadcast %cst_136 : f32 to vector<8x128xf32>
    %456 = arith.mulf %455, %454 : vector<8x128xf32>
    %cst_137 = arith.constant 5.000000e-01 : f32
    %457 = vector.broadcast %cst_137 : f32 to vector<8x128xf32>
    %458 = arith.addf %456, %457 : vector<8x128xf32>
    %459 = vector.extract_strided_slice %442 {offsets = [0, 256], sizes = [8, 128], strides = [1, 1]} : vector<8x512xf32> to vector<8x128xf32>
    %460 = math.tanh %459 : vector<8x128xf32>
    %461 = vector.extract_strided_slice %442 {offsets = [0, 384], sizes = [8, 128], strides = [1, 1]} : vector<8x512xf32> to vector<8x128xf32>
    %cst_138 = arith.constant 5.000000e-01 : f32
    %462 = vector.broadcast %cst_138 : f32 to vector<8x128xf32>
    %463 = arith.mulf %462, %461 : vector<8x128xf32>
    %464 = math.tanh %463 : vector<8x128xf32>
    %cst_139 = arith.constant 5.000000e-01 : f32
    %465 = vector.broadcast %cst_139 : f32 to vector<8x128xf32>
    %466 = arith.mulf %465, %464 : vector<8x128xf32>
    %cst_140 = arith.constant 5.000000e-01 : f32
    %467 = vector.broadcast %cst_140 : f32 to vector<8x128xf32>
    %468 = arith.addf %466, %467 : vector<8x128xf32>
    %469 = arith.mulf %458, %394 : vector<8x128xf32>
    %470 = arith.mulf %450, %460 : vector<8x128xf32>
    %471 = arith.addf %469, %470 : vector<8x128xf32>
    %472 = math.tanh %471 : vector<8x128xf32>
    %473 = arith.mulf %468, %472 : vector<8x128xf32>
    %474 = arith.addf %438, %473 : vector<8x128xf32>
    %475 = arith.addf %474, %7 : vector<8x128xf32>
    %476 = arith.truncf %475 : vector<8x128xf32> to vector<8x128xbf16>
    %cst_141 = arith.constant dense<0.000000e+00> : vector<8x1024xf32>
    %477 = tpu.matmul %476, %0, %cst_141 {dimension_numbers = #tpu.dot_dimension_numbers<[1], [0], [0], [1], [0, 0, 1, 1], [], []>} : vector<8x128xbf16>, vector<128x1024xbf16>, vector<8x1024xf32> -> vector<8x1024xf32>
    %c6 = arith.constant 6 : index
    %c0_142 = arith.constant 0 : index
    %c0_143 = arith.constant 0 : index
    %478 = vector.load %arg0[%c6, %c0_142, %c0_143] : memref<8x8x1xf32, #tpu.memory_space<vmem>>, vector<1x8x1xf32>
    %479 = vector.shape_cast %478 : vector<1x8x1xf32> to vector<8x1xf32>
    %480 = vector.broadcast %479 : vector<8x1xf32> to vector<8x512xf32>
    %481 = vector.broadcast %2 : vector<1x512xf32> to vector<8x512xf32>
    %482 = arith.mulf %480, %481 : vector<8x512xf32>
    %483 = vector.extract_strided_slice %477 {offsets = [0, 0], sizes = [8, 512], strides = [1, 1]} : vector<8x1024xf32> to vector<8x512xf32>
    %484 = arith.addf %482, %483 : vector<8x512xf32>
    %485 = vector.extract_strided_slice %484 {offsets = [0, 0], sizes = [8, 128], strides = [1, 1]} : vector<8x512xf32> to vector<8x128xf32>
    %cst_144 = arith.constant 5.000000e-01 : f32
    %486 = vector.broadcast %cst_144 : f32 to vector<8x128xf32>
    %487 = arith.mulf %486, %485 : vector<8x128xf32>
    %488 = math.tanh %487 : vector<8x128xf32>
    %cst_145 = arith.constant 5.000000e-01 : f32
    %489 = vector.broadcast %cst_145 : f32 to vector<8x128xf32>
    %490 = arith.mulf %489, %488 : vector<8x128xf32>
    %cst_146 = arith.constant 5.000000e-01 : f32
    %491 = vector.broadcast %cst_146 : f32 to vector<8x128xf32>
    %492 = arith.addf %490, %491 : vector<8x128xf32>
    %493 = vector.extract_strided_slice %484 {offsets = [0, 128], sizes = [8, 128], strides = [1, 1]} : vector<8x512xf32> to vector<8x128xf32>
    %cst_147 = arith.constant 5.000000e-01 : f32
    %494 = vector.broadcast %cst_147 : f32 to vector<8x128xf32>
    %495 = arith.mulf %494, %493 : vector<8x128xf32>
    %496 = math.tanh %495 : vector<8x128xf32>
    %cst_148 = arith.constant 5.000000e-01 : f32
    %497 = vector.broadcast %cst_148 : f32 to vector<8x128xf32>
    %498 = arith.mulf %497, %496 : vector<8x128xf32>
    %cst_149 = arith.constant 5.000000e-01 : f32
    %499 = vector.broadcast %cst_149 : f32 to vector<8x128xf32>
    %500 = arith.addf %498, %499 : vector<8x128xf32>
    %501 = vector.extract_strided_slice %484 {offsets = [0, 256], sizes = [8, 128], strides = [1, 1]} : vector<8x512xf32> to vector<8x128xf32>
    %502 = math.tanh %501 : vector<8x128xf32>
    %503 = vector.extract_strided_slice %484 {offsets = [0, 384], sizes = [8, 128], strides = [1, 1]} : vector<8x512xf32> to vector<8x128xf32>
    %cst_150 = arith.constant 5.000000e-01 : f32
    %504 = vector.broadcast %cst_150 : f32 to vector<8x128xf32>
    %505 = arith.mulf %504, %503 : vector<8x128xf32>
    %506 = math.tanh %505 : vector<8x128xf32>
    %cst_151 = arith.constant 5.000000e-01 : f32
    %507 = vector.broadcast %cst_151 : f32 to vector<8x128xf32>
    %508 = arith.mulf %507, %506 : vector<8x128xf32>
    %cst_152 = arith.constant 5.000000e-01 : f32
    %509 = vector.broadcast %cst_152 : f32 to vector<8x128xf32>
    %510 = arith.addf %508, %509 : vector<8x128xf32>
    %511 = arith.mulf %500, %436 : vector<8x128xf32>
    %512 = arith.mulf %492, %502 : vector<8x128xf32>
    %513 = arith.addf %511, %512 : vector<8x128xf32>
    %514 = math.tanh %513 : vector<8x128xf32>
    %515 = arith.mulf %510, %514 : vector<8x128xf32>
    %516 = arith.truncf %515 : vector<8x128xf32> to vector<8x128xbf16>
    %cst_153 = arith.constant dense<0.000000e+00> : vector<8x512xf32>
    %517 = tpu.matmul %516, %1, %cst_153 {dimension_numbers = #tpu.dot_dimension_numbers<[1], [0], [0], [1], [0, 0, 1, 1], [], []>} : vector<8x128xbf16>, vector<128x512xbf16>, vector<8x512xf32> -> vector<8x512xf32>
    %518 = vector.extract_strided_slice %477 {offsets = [0, 512], sizes = [8, 512], strides = [1, 1]} : vector<8x1024xf32> to vector<8x512xf32>
    %519 = arith.addf %517, %518 : vector<8x512xf32>
    %520 = vector.extract_strided_slice %519 {offsets = [0, 0], sizes = [8, 128], strides = [1, 1]} : vector<8x512xf32> to vector<8x128xf32>
    %cst_154 = arith.constant 5.000000e-01 : f32
    %521 = vector.broadcast %cst_154 : f32 to vector<8x128xf32>
    %522 = arith.mulf %521, %520 : vector<8x128xf32>
    %523 = math.tanh %522 : vector<8x128xf32>
    %cst_155 = arith.constant 5.000000e-01 : f32
    %524 = vector.broadcast %cst_155 : f32 to vector<8x128xf32>
    %525 = arith.mulf %524, %523 : vector<8x128xf32>
    %cst_156 = arith.constant 5.000000e-01 : f32
    %526 = vector.broadcast %cst_156 : f32 to vector<8x128xf32>
    %527 = arith.addf %525, %526 : vector<8x128xf32>
    %528 = vector.extract_strided_slice %519 {offsets = [0, 128], sizes = [8, 128], strides = [1, 1]} : vector<8x512xf32> to vector<8x128xf32>
    %cst_157 = arith.constant 5.000000e-01 : f32
    %529 = vector.broadcast %cst_157 : f32 to vector<8x128xf32>
    %530 = arith.mulf %529, %528 : vector<8x128xf32>
    %531 = math.tanh %530 : vector<8x128xf32>
    %cst_158 = arith.constant 5.000000e-01 : f32
    %532 = vector.broadcast %cst_158 : f32 to vector<8x128xf32>
    %533 = arith.mulf %532, %531 : vector<8x128xf32>
    %cst_159 = arith.constant 5.000000e-01 : f32
    %534 = vector.broadcast %cst_159 : f32 to vector<8x128xf32>
    %535 = arith.addf %533, %534 : vector<8x128xf32>
    %536 = vector.extract_strided_slice %519 {offsets = [0, 256], sizes = [8, 128], strides = [1, 1]} : vector<8x512xf32> to vector<8x128xf32>
    %537 = math.tanh %536 : vector<8x128xf32>
    %538 = vector.extract_strided_slice %519 {offsets = [0, 384], sizes = [8, 128], strides = [1, 1]} : vector<8x512xf32> to vector<8x128xf32>
    %cst_160 = arith.constant 5.000000e-01 : f32
    %539 = vector.broadcast %cst_160 : f32 to vector<8x128xf32>
    %540 = arith.mulf %539, %538 : vector<8x128xf32>
    %541 = math.tanh %540 : vector<8x128xf32>
    %cst_161 = arith.constant 5.000000e-01 : f32
    %542 = vector.broadcast %cst_161 : f32 to vector<8x128xf32>
    %543 = arith.mulf %542, %541 : vector<8x128xf32>
    %cst_162 = arith.constant 5.000000e-01 : f32
    %544 = vector.broadcast %cst_162 : f32 to vector<8x128xf32>
    %545 = arith.addf %543, %544 : vector<8x128xf32>
    %546 = arith.mulf %535, %471 : vector<8x128xf32>
    %547 = arith.mulf %527, %537 : vector<8x128xf32>
    %548 = arith.addf %546, %547 : vector<8x128xf32>
    %549 = math.tanh %548 : vector<8x128xf32>
    %550 = arith.mulf %545, %549 : vector<8x128xf32>
    %551 = arith.addf %515, %550 : vector<8x128xf32>
    %552 = arith.addf %551, %7 : vector<8x128xf32>
    %553 = arith.truncf %552 : vector<8x128xf32> to vector<8x128xbf16>
    %cst_163 = arith.constant dense<0.000000e+00> : vector<8x1024xf32>
    %554 = tpu.matmul %553, %0, %cst_163 {dimension_numbers = #tpu.dot_dimension_numbers<[1], [0], [0], [1], [0, 0, 1, 1], [], []>} : vector<8x128xbf16>, vector<128x1024xbf16>, vector<8x1024xf32> -> vector<8x1024xf32>
    %c7 = arith.constant 7 : index
    %c0_164 = arith.constant 0 : index
    %c0_165 = arith.constant 0 : index
    %555 = vector.load %arg0[%c7, %c0_164, %c0_165] : memref<8x8x1xf32, #tpu.memory_space<vmem>>, vector<1x8x1xf32>
    %556 = vector.shape_cast %555 : vector<1x8x1xf32> to vector<8x1xf32>
    %557 = vector.broadcast %556 : vector<8x1xf32> to vector<8x512xf32>
    %558 = vector.broadcast %2 : vector<1x512xf32> to vector<8x512xf32>
    %559 = arith.mulf %557, %558 : vector<8x512xf32>
    %560 = vector.extract_strided_slice %554 {offsets = [0, 0], sizes = [8, 512], strides = [1, 1]} : vector<8x1024xf32> to vector<8x512xf32>
    %561 = arith.addf %559, %560 : vector<8x512xf32>
    %562 = vector.extract_strided_slice %561 {offsets = [0, 0], sizes = [8, 128], strides = [1, 1]} : vector<8x512xf32> to vector<8x128xf32>
    %cst_166 = arith.constant 5.000000e-01 : f32
    %563 = vector.broadcast %cst_166 : f32 to vector<8x128xf32>
    %564 = arith.mulf %563, %562 : vector<8x128xf32>
    %565 = math.tanh %564 : vector<8x128xf32>
    %cst_167 = arith.constant 5.000000e-01 : f32
    %566 = vector.broadcast %cst_167 : f32 to vector<8x128xf32>
    %567 = arith.mulf %566, %565 : vector<8x128xf32>
    %cst_168 = arith.constant 5.000000e-01 : f32
    %568 = vector.broadcast %cst_168 : f32 to vector<8x128xf32>
    %569 = arith.addf %567, %568 : vector<8x128xf32>
    %570 = vector.extract_strided_slice %561 {offsets = [0, 128], sizes = [8, 128], strides = [1, 1]} : vector<8x512xf32> to vector<8x128xf32>
    %cst_169 = arith.constant 5.000000e-01 : f32
    %571 = vector.broadcast %cst_169 : f32 to vector<8x128xf32>
    %572 = arith.mulf %571, %570 : vector<8x128xf32>
    %573 = math.tanh %572 : vector<8x128xf32>
    %cst_170 = arith.constant 5.000000e-01 : f32
    %574 = vector.broadcast %cst_170 : f32 to vector<8x128xf32>
    %575 = arith.mulf %574, %573 : vector<8x128xf32>
    %cst_171 = arith.constant 5.000000e-01 : f32
    %576 = vector.broadcast %cst_171 : f32 to vector<8x128xf32>
    %577 = arith.addf %575, %576 : vector<8x128xf32>
    %578 = vector.extract_strided_slice %561 {offsets = [0, 256], sizes = [8, 128], strides = [1, 1]} : vector<8x512xf32> to vector<8x128xf32>
    %579 = math.tanh %578 : vector<8x128xf32>
    %580 = vector.extract_strided_slice %561 {offsets = [0, 384], sizes = [8, 128], strides = [1, 1]} : vector<8x512xf32> to vector<8x128xf32>
    %cst_172 = arith.constant 5.000000e-01 : f32
    %581 = vector.broadcast %cst_172 : f32 to vector<8x128xf32>
    %582 = arith.mulf %581, %580 : vector<8x128xf32>
    %583 = math.tanh %582 : vector<8x128xf32>
    %cst_173 = arith.constant 5.000000e-01 : f32
    %584 = vector.broadcast %cst_173 : f32 to vector<8x128xf32>
    %585 = arith.mulf %584, %583 : vector<8x128xf32>
    %cst_174 = arith.constant 5.000000e-01 : f32
    %586 = vector.broadcast %cst_174 : f32 to vector<8x128xf32>
    %587 = arith.addf %585, %586 : vector<8x128xf32>
    %588 = arith.mulf %577, %513 : vector<8x128xf32>
    %589 = arith.mulf %569, %579 : vector<8x128xf32>
    %590 = arith.addf %588, %589 : vector<8x128xf32>
    %591 = math.tanh %590 : vector<8x128xf32>
    %592 = arith.mulf %587, %591 : vector<8x128xf32>
    %593 = arith.truncf %592 : vector<8x128xf32> to vector<8x128xbf16>
    %cst_175 = arith.constant dense<0.000000e+00> : vector<8x512xf32>
    %594 = tpu.matmul %593, %1, %cst_175 {dimension_numbers = #tpu.dot_dimension_numbers<[1], [0], [0], [1], [0, 0, 1, 1], [], []>} : vector<8x128xbf16>, vector<128x512xbf16>, vector<8x512xf32> -> vector<8x512xf32>
    %595 = vector.extract_strided_slice %554 {offsets = [0, 512], sizes = [8, 512], strides = [1, 1]} : vector<8x1024xf32> to vector<8x512xf32>
    %596 = arith.addf %594, %595 : vector<8x512xf32>
    %597 = vector.extract_strided_slice %596 {offsets = [0, 0], sizes = [8, 128], strides = [1, 1]} : vector<8x512xf32> to vector<8x128xf32>
    %cst_176 = arith.constant 5.000000e-01 : f32
    %598 = vector.broadcast %cst_176 : f32 to vector<8x128xf32>
    %599 = arith.mulf %598, %597 : vector<8x128xf32>
    %600 = math.tanh %599 : vector<8x128xf32>
    %cst_177 = arith.constant 5.000000e-01 : f32
    %601 = vector.broadcast %cst_177 : f32 to vector<8x128xf32>
    %602 = arith.mulf %601, %600 : vector<8x128xf32>
    %cst_178 = arith.constant 5.000000e-01 : f32
    %603 = vector.broadcast %cst_178 : f32 to vector<8x128xf32>
    %604 = arith.addf %602, %603 : vector<8x128xf32>
    %605 = vector.extract_strided_slice %596 {offsets = [0, 128], sizes = [8, 128], strides = [1, 1]} : vector<8x512xf32> to vector<8x128xf32>
    %cst_179 = arith.constant 5.000000e-01 : f32
    %606 = vector.broadcast %cst_179 : f32 to vector<8x128xf32>
    %607 = arith.mulf %606, %605 : vector<8x128xf32>
    %608 = math.tanh %607 : vector<8x128xf32>
    %cst_180 = arith.constant 5.000000e-01 : f32
    %609 = vector.broadcast %cst_180 : f32 to vector<8x128xf32>
    %610 = arith.mulf %609, %608 : vector<8x128xf32>
    %cst_181 = arith.constant 5.000000e-01 : f32
    %611 = vector.broadcast %cst_181 : f32 to vector<8x128xf32>
    %612 = arith.addf %610, %611 : vector<8x128xf32>
    %613 = vector.extract_strided_slice %596 {offsets = [0, 256], sizes = [8, 128], strides = [1, 1]} : vector<8x512xf32> to vector<8x128xf32>
    %614 = math.tanh %613 : vector<8x128xf32>
    %615 = vector.extract_strided_slice %596 {offsets = [0, 384], sizes = [8, 128], strides = [1, 1]} : vector<8x512xf32> to vector<8x128xf32>
    %cst_182 = arith.constant 5.000000e-01 : f32
    %616 = vector.broadcast %cst_182 : f32 to vector<8x128xf32>
    %617 = arith.mulf %616, %615 : vector<8x128xf32>
    %618 = math.tanh %617 : vector<8x128xf32>
    %cst_183 = arith.constant 5.000000e-01 : f32
    %619 = vector.broadcast %cst_183 : f32 to vector<8x128xf32>
    %620 = arith.mulf %619, %618 : vector<8x128xf32>
    %cst_184 = arith.constant 5.000000e-01 : f32
    %621 = vector.broadcast %cst_184 : f32 to vector<8x128xf32>
    %622 = arith.addf %620, %621 : vector<8x128xf32>
    %623 = arith.mulf %612, %548 : vector<8x128xf32>
    %624 = arith.mulf %604, %614 : vector<8x128xf32>
    %625 = arith.addf %623, %624 : vector<8x128xf32>
    %626 = math.tanh %625 : vector<8x128xf32>
    %627 = arith.mulf %622, %626 : vector<8x128xf32>
    %628 = arith.truncf %627 : vector<8x128xf32> to vector<8x128xbf16>
    %c0_185 = arith.constant 0 : index
    %c0_186 = arith.constant 0 : index
    %629 = vector.load %arg4[%c0_185, %c0_186] : memref<128x128xbf16, #tpu.memory_space<vmem>>, vector<128x128xbf16>
    %cst_187 = arith.constant dense<0.000000e+00> : vector<8x128xf32>
    %630 = tpu.matmul %628, %629, %cst_187 {dimension_numbers = #tpu.dot_dimension_numbers<[1], [0], [0], [1], [0, 0, 1, 1], [], []>} : vector<8x128xbf16>, vector<128x128xbf16>, vector<8x128xf32> -> vector<8x128xf32>
    %c0_188 = arith.constant 0 : index
    %c0_189 = arith.constant 0 : index
    %631 = vector.load %arg5[%c0_188, %c0_189] : memref<1x128xf32, #tpu.memory_space<vmem>>, vector<1x128xf32>
    %632 = vector.broadcast %631 : vector<1x128xf32> to vector<8x128xf32>
    %633 = arith.addf %630, %632 : vector<8x128xf32>
    %c0_190 = arith.constant 0 : index
    %c0_191 = arith.constant 0 : index
    %634 = vector.load %arg6[%c0_190, %c0_191] : memref<8x128xf32, #tpu.memory_space<vmem>>, vector<8x128xf32>
    tpu.vector_store %arg6[%c0_190, %c0_191], %633 {strides = array<i32>} : memref<8x128xf32, #tpu.memory_space<vmem>>, vector<8x128xf32>,
    return
  }
}

</mosaic_0001>

<bundles_post_ra>
// kernel: tpu_custom_call.1
= control target key start
LH: loop header
LB: loop body
LE: loop exit
PB: predicated region body
PF: predicated region fallthrough
CT: control target
= control target key end

     0   :  { %11 = vsyncpa [#allocation3], 0  ;;  %s4474_s0 = inlined_call_operand.vmem [shape: f32[8,8,1], index: 0, kind: input, shape index: {}]   ;;  %s4475_s1 = inlined_call_operand.vmem [shape: f32[1,512], index: 1, kind: input, shape index: {}]   ;;  %s4476_s2 = inlined_call_operand.hbm [shape: bf16[128,1024], index: 2, kind: input, shape index: {}]   ;;  %s4477_s3 = inlined_call_operand.hbm [shape: bf16[128,512], index: 3, kind: input, shape index: {}]   ;;  %s4478_s4 = inlined_call_operand.vmem [shape: bf16[128,128], index: 4, kind: input, shape index: {}]   ;;  %s4479_s5 = inlined_call_operand.vmem [shape: f32[1,128], index: 5, kind: input, shape index: {}]   ;;  %s4480_s6 = inlined_call_operand.hbm [shape: f32[8,128], index: 6, kind: output, shape index: {}]  }
   0x1   :  { %12 = vsyncpa [#allocation6], 0 }
   0x2   :  { %13 = vsyncpa [#allocation4], 0  ;;  %s22_s23 = sshll.u32 %s4476_s2, 4  ;;  %s3230_s24 = smov [#allocation2]   ;;  %s23_s23 = int_to_ptr.hbm [resolvable:$true] %s22_s23 }
   0x3   :  { %s24_s25 = sshll.u32 %s3230_s24, 4  ;;  %s35_s28 = sshll.u32 %s4477_s3, 4  ;;  %s25_s25 = int_to_ptr.vmem [resolvable:$true] %s24_s25  ;;  %s36_s28 = int_to_ptr.hbm [resolvable:$true] %s35_s28 }
   0x4   :  { %s3231_s29 = smov 512   ;;  %s3232_s30 = smov 32  }
   0x5   :  { %30 = dma.hbm_to_vmem [thread:$0]  %s23_s23, 8192, %s25_s25, [#allocation3], %s3231_s29, %s3231_s29, %s3232_s30  }
   0x6   :  { %s3233_s7 = smov [#allocation5]   ;;  %s3234_s9 = smov 256  }
   0x7   :  { %s37_s8 = sshll.u32 %s3233_s7, 4  ;;  %s3235_s10 = smov 16   ;;  %s38_s8 = int_to_ptr.vmem [resolvable:$true] %s37_s8 }
   0x8   :  { %43 = dma.hbm_to_vmem [thread:$0]  %s36_s28, 4096, %s38_s8, [#allocation6], %s3234_s9, %s3234_s9, %s3235_s10  }
   0x9   :  { %3224 = dma.done.wait [#allocation3], 8192  }
   0xa   :  { %3225 = vsyncadd [#allocation3], 4294959104 }
   0xb   :  { %3226 = dma.done.wait [#allocation6], 4096  }
   0xc   :  { %3227 = vsyncadd [#allocation6], 4294963200  ;;  %v3236_v0 = vmov 0   ;;  %v2661_v1 = vld [vmem:[#allocation2 + $0x1c0] sm:$0xf]  ;;  %s3239_s16 = smov [#allocation7]  }
   0xd   :  { %2988 = vset.pattern.permute.xlu0 %v3236_v0  ;;  %2989 = vset.pattern.permute.xlu1 %v3236_v0  ;;  %v2934_v2 = vld [vmem:[#allocation2 + $0x1dc] sm:$0xf0]  ;;  %v2930_v3 = vld [vmem:[#allocation2 + $0x1c4] sm:$0xf]  ;;  %v2669_v6 = vld [vmem:[#allocation2 + $0x1c8] sm:$0xf] }
   0xe   :  { %2990 = vset.pattern.permute.xlu2 %v3236_v0  ;;  %v3281_v4 = vor.u32 %v2934_v2, %v2661_v1  ;;  %v2663_v5 = vld [vmem:[#allocation2 + $0x1e0] sm:$0xf0]  ;;  %v2935_v7 = vld [vmem:[#allocation2 + $0x1e4] sm:$0xf0]  ;;  %v2931_v10 = vld [vmem:[#allocation2 + $0x1cc] sm:$0xf]  ;;  %v153_v0 = vlaneseq }
   0xf   :  { %v3283_v8 = vor.u32 %v2930_v3, %v2663_v5  ;;  %v3285_v9 = vor.u32 %v2935_v7, %v2669_v6  ;;  %v2671_v11 = vld [vmem:[#allocation2 + $0x1e8] sm:$0xf0]  ;;  %v2629_v12 = vld [vmem:[#allocation2 + $0x180] sm:$0xf]  ;;  %v2922_v15 = vld [vmem:[#allocation2 + $0x184] sm:$0xf] }
  0x10   :  { %480 = vmatpush.bf16.msra.mxu0 %v3281_v4  ;;  %v3288_v13 = vor.u32 %v2931_v10, %v2671_v11  ;;  %v2926_v14 = vld [vmem:[#allocation2 + $0x19c] sm:$0xf0]  ;;  %v2631_v16 = vld [vmem:[#allocation2 + $0x1a0] sm:$0xf0]  ;;  %v2637_v19 = vld [vmem:[#allocation2 + $0x188] sm:$0xf] }
  0x11   :  { %493 = vmatpush.bf16.msra.mxu1 %v3283_v8  ;;  %506 = vmatpush.bf16.msra.mxu2 %v3285_v9  ;;  %v3292_v17 = vor.u32 %v2926_v14, %v2629_v12  ;;  %v3294_v18 = vor.u32 %v2922_v15, %v2631_v16  ;;  %v2927_v20 = vld [vmem:[#allocation2 + $0x1a4] sm:$0xf0]  ;;  %v2923_v21 = vld [vmem:[#allocation2 + $0x18c] sm:$0xf]  ;;  %v2597_v24 = vld [vmem:[#allocation2 + $0x140] sm:$0xf] }
  0x12   :  { %519 = vmatpush.bf16.msra.mxu3 %v3288_v13  ;;  %v3297_v22 = vor.u32 %v2927_v20, %v2637_v19  ;;  %v2639_v23 = vld [vmem:[#allocation2 + $0x1a8] sm:$0xf0]  ;;  %v2918_v25 = vld [vmem:[#allocation2 + $0x15c] sm:$0xf0]  ;;  %v2914_v27 = vld [vmem:[#allocation2 + $0x144] sm:$0xf] }
  0x13   :  { %4671 = vst [vmem:[#allocation11_spill] sm:$0xff] %v3292_v17  ;;  %v3299_v26 = vor.u32 %v2923_v21, %v2639_v23  ;;  %v2599_v28 = vld [vmem:[#allocation2 + $0x160] sm:$0xf0]  ;;  %v2605_v29 = vld [vmem:[#allocation2 + $0x148] sm:$0xf]  ;;  %v3302_v30 = vor.u32 %v2918_v25, %v2597_v24  ;;  %v3349_v19 = vand.u32 127, %v153_v0 }
  0x14   :  { %4672 = vst [vmem:[#allocation12_spill] sm:$0xff] %v3294_v18  ;;  %481 = vmatpush.bf16.msra.mxu0 %v3292_v17  ;;  %v2919_v31 = vld [vmem:[#allocation2 + $0x164] sm:$0xf0]  ;;  %v2915_v32 = vld [vmem:[#allocation2 + $0x14c] sm:$0xf]  ;;  %v3306_v34 = vor.u32 %v2914_v27, %v2599_v28  ;;  %v584_v63 = vld [vmem:[%s4474_s0] sm:$0xff] }
  0x15   :  { %4673 = vst [vmem:[#allocation13_spill] sm:$0xff] %v3297_v22  ;;  %v2607_v33 = vld [vmem:[#allocation2 + $0x168] sm:$0xf0]  ;;  %494 = vmatpush.bf16.msra.mxu1 %v3294_v18  ;;  %507 = vmatpush.bf16.msra.mxu2 %v3297_v22  ;;  %v3308_v35 = vor.u32 %v2919_v31, %v2605_v29  ;;  %v2565_v36 = vld [vmem:[#allocation2 + $0x100] sm:$0xf]  ;;  %vm155_vm0 = vcmp.eq.s32.totalorder %v3349_v19, 127 }
  0x16   :  { %4674 = vst [vmem:[#allocation14_spill] sm:$0xff] %v3299_v26  ;;  %v2910_v37 = vld [vmem:[#allocation2 + $0x11c] sm:$0xf0]  ;;  %v2906_v38 = vld [vmem:[#allocation2 + $0x104] sm:$0xf]  ;;  %520 = vmatpush.bf16.msra.mxu3 %v3299_v26  ;;  %v3311_v39 = vor.u32 %v2915_v32, %v2607_v33  ;;  %587 = vperm.xlu0 %2988, %v584_v63   ;;  %v2835_v28 = vld [vmem:[%s4474_s0 + $0x8] sm:$0xff] }
  0x17   :  { %4675 = vst [vmem:[#allocation15_spill] sm:$0xff] %v3302_v30  ;;  %v2567_v40 = vld [vmem:[#allocation2 + $0x120] sm:$0xf0]  ;;  %v2573_v41 = vld [vmem:[#allocation2 + $0x108] sm:$0xf]  ;;  %v3314_v45 = vor.u32 %v2910_v37, %v2565_v36  ;;  %vm3382_vm1 = vmpackc.low %vm155_vm0, %vm155_vm0  ;;  %s2423_s19 = sshll.u32 %s4480_s6, 4  ;;  %s2424_s19 = int_to_ptr.hbm [resolvable:$true] %s2423_s19 }
  0x18   :  { %4676 = vst [vmem:[#allocation16_spill] sm:$0xff] %v3306_v34  ;;  %v2911_v42 = vld [vmem:[#allocation2 + $0x124] sm:$0xf0]  ;;  %v2907_v43 = vld [vmem:[#allocation2 + $0x10c] sm:$0xf]  ;;  %482 = vmatpush.bf16.msra.mxu0 %v3302_v30  ;;  %v3318_v46 = vor.u32 %v2906_v38, %v2567_v40 }
  0x19   :  { %4677 = vst [vmem:[#allocation17_spill] sm:$0xff] %v3308_v35  ;;  %v2575_v44 = vld [vmem:[#allocation2 + $0x128] sm:$0xf0]  ;;  %495 = vmatpush.bf16.msra.mxu1 %v3306_v34  ;;  %508 = vmatpush.bf16.msra.mxu2 %v3308_v35  ;;  %v3320_v47 = vor.u32 %v2911_v42, %v2573_v41  ;;  %v2533_v48 = vld [vmem:[#allocation2 + $0xc0] sm:$0xf] }
  0x1a   :  { %4678 = vst [vmem:[#allocation18_spill] sm:$0xff] %v3311_v39  ;;  %v2902_v49 = vld [vmem:[#allocation2 + $0xdc] sm:$0xf0]  ;;  %v2898_v50 = vld [vmem:[#allocation2 + $0xc4] sm:$0xf]  ;;  %521 = vmatpush.bf16.msra.mxu3 %v3311_v39  ;;  %v3323_v51 = vor.u32 %v2907_v43, %v2575_v44 }
  0x1b   :  { %4679 = vst [vmem:[#allocation19_spill] sm:$0xff] %v3314_v45  ;;  %v2535_v52 = vld [vmem:[#allocation2 + $0xe0] sm:$0xf0]  ;;  %v2541_v53 = vld [vmem:[#allocation2 + $0xc8] sm:$0xf]  ;;  %v3326_v57 = vor.u32 %v2902_v49, %v2533_v48 }
  0x1c   :  { %4680 = vst [vmem:[#allocation20_spill] sm:$0xff] %v3318_v46  ;;  %v2903_v54 = vld [vmem:[#allocation2 + $0xe4] sm:$0xf0]  ;;  %v2899_v55 = vld [vmem:[#allocation2 + $0xcc] sm:$0xf]  ;;  %483 = vmatpush.bf16.msra.mxu0 %v3314_v45  ;;  %v3330_v59 = vor.u32 %v2898_v50, %v2535_v52 }
  0x1d   :  { %4681 = vst [vmem:[#allocation21_spill] sm:$0xff] %v3320_v47  ;;  %v2543_v56 = vld [vmem:[#allocation2 + $0xe8] sm:$0xf0]  ;;  %v2501_v58 = vld [vmem:[#allocation2 + $0x80] sm:$0xf]  ;;  %496 = vmatpush.bf16.msra.mxu1 %v3318_v46  ;;  %509 = vmatpush.bf16.msra.mxu2 %v3320_v47  ;;  %v3332_v60 = vor.u32 %v2903_v54, %v2541_v53 }
  0x1e   :  { %4682 = vst [vmem:[#allocation22_spill] sm:$0xff] %v3323_v51  ;;  %v2894_v61 = vld [vmem:[#allocation2 + $0x9c] sm:$0xf0]  ;;  %v2890_v62 = vld [vmem:[#allocation2 + $0x84] sm:$0xf]  ;;  %522 = vmatpush.bf16.msra.mxu3 %v3323_v51  ;;  %v3338_v1 = vor.u32 %v2899_v55, %v2543_v56  ;;  %967 = vperm.xlu0 %2988, %v2835_v28   ;;  %v2840_v55 = vld [vmem:[%s4474_s0 + $0x30] sm:$0xff] }
  0x1f   :  { %4683 = vst [vmem:[#allocation23_spill] sm:$0xff] %v3326_v57  ;;  %v2503_v2 = vld [vmem:[#allocation2 + $0xa0] sm:$0xf0]  ;;  %v2509_v3 = vld [vmem:[#allocation2 + $0x88] sm:$0xf]  ;;  %v3341_v10 = vor.u32 %v2894_v61, %v2501_v58 }
  0x20   :  { %4684 = vst [vmem:[#allocation24_spill] sm:$0xff] %v3330_v59  ;;  %v2895_v5 = vld [vmem:[#allocation2 + $0xa4] sm:$0xf0]  ;;  %v2891_v6 = vld [vmem:[#allocation2 + $0x8c] sm:$0xf]  ;;  %484 = vmatpush.bf16.msra.mxu0 %v3326_v57  ;;  %v3345_v12 = vor.u32 %v2890_v62, %v2503_v2 }
  0x21   :  { %4685 = vst [vmem:[#allocation25_spill] sm:$0xff] %v3332_v60  ;;  %v2511_v7 = vld [vmem:[#allocation2 + $0xa8] sm:$0xf0]  ;;  %v2469_v11 = vld [vmem:[#allocation2 + $0x40] sm:$0xf]  ;;  %497 = vmatpush.bf16.msra.mxu1 %v3330_v59  ;;  %510 = vmatpush.bf16.msra.mxu2 %v3332_v60  ;;  %v3347_v14 = vor.u32 %v2895_v5, %v2509_v3 }
  0x22   :  { %4686 = vst [vmem:[#allocation26_spill] sm:$0xff] %v3338_v1  ;;  %v2886_v15 = vld [vmem:[#allocation2 + $0x5c] sm:$0xf0]  ;;  %v2882_v16 = vld [vmem:[#allocation2 + $0x44] sm:$0xf]  ;;  %523 = vmatpush.bf16.msra.mxu3 %v3338_v1  ;;  %v3352_v20 = vor.u32 %v2891_v6, %v2511_v7 }
  0x23   :  { %4687 = vst [vmem:[#allocation27_spill] sm:$0xff] %v3341_v10  ;;  %v2471_v21 = vld [vmem:[#allocation2 + $0x60] sm:$0xf0]  ;;  %v2477_v23 = vld [vmem:[#allocation2 + $0x48] sm:$0xf]  ;;  %v3358_v29 = vor.u32 %v2886_v15, %v2469_v11 }
  0x24   :  { %4688 = vst [vmem:[#allocation28_spill] sm:$0xff] %v3345_v12  ;;  %v2887_v24 = vld [vmem:[#allocation2 + $0x64] sm:$0xf0]  ;;  %v2883_v25 = vld [vmem:[#allocation2 + $0x4c] sm:$0xf]  ;;  %485 = vmatpush.bf16.msra.mxu0 %v3341_v10  ;;  %v3362_v32 = vor.u32 %v2882_v16, %v2471_v21 }
  0x25   :  { %4689 = vst [vmem:[#allocation29_spill] sm:$0xff] %v3347_v14  ;;  %v2479_v27 = vld [vmem:[#allocation2 + $0x68] sm:$0xf0]  ;;  %v2437_v31 = vld [vmem:[#allocation2] sm:$0xf]  ;;  %498 = vmatpush.bf16.msra.mxu1 %v3345_v12  ;;  %511 = vmatpush.bf16.msra.mxu2 %v3347_v14  ;;  %v3364_v33 = vor.u32 %v2887_v24, %v2477_v23 }
  0x26   :  { %4690 = vst [vmem:[#allocation30_spill] sm:$0xff] %v3349_v19  ;;  %v2878_v36 = vld [vmem:[#allocation2 + $0x1c] sm:$0xf0]  ;;  %v2874_v37 = vld [vmem:[#allocation2 + $0x4] sm:$0xf]  ;;  %524 = vmatpush.bf16.msra.mxu3 %v3352_v20  ;;  %v3367_v40 = vor.u32 %v2883_v25, %v2479_v27  ;;  %2022 = vperm.xlu0 %2988, %v2840_v55  }
  0x27   :  { %4691 = vst [vmem:[#allocation31_spill] sm:$0xff] %v3352_v20  ;;  %v2439_v38 = vld [vmem:[#allocation2 + $0x20] sm:$0xf0]  ;;  %v2445_v41 = vld [vmem:[#allocation2 + $0x8] sm:$0xf]  ;;  %v3371_v48 = vor.u32 %v2878_v36, %v2437_v31 }
  0x28   :  { %4692 = vst [vmem:[#allocation32_spill] sm:$0xff] %v3358_v29  ;;  %v2879_v42 = vld [vmem:[#allocation2 + $0x24] sm:$0xf0]  ;;  %v2875_v43 = vld [vmem:[#allocation2 + $0xc] sm:$0xf]  ;;  %486 = vmatpush.bf16.msra.mxu0 %v3358_v29  ;;  %v3375_v52 = vor.u32 %v2874_v37, %v2439_v38 }
  0x29   :  { %4693 = vst [vmem:[#allocation33_spill] sm:$0xff] %v3362_v32  ;;  %v2447_v44 = vld [vmem:[#allocation2 + $0x28] sm:$0xf0]  ;;  %v2932_v49 = vld [vmem:[#allocation2 + $0x1d4] sm:$0xf]  ;;  %499 = vmatpush.bf16.msra.mxu1 %v3362_v32  ;;  %512 = vmatpush.bf16.msra.mxu2 %v3364_v33  ;;  %v3377_v53 = vor.u32 %v2879_v42, %v2445_v41 }
  0x2a   :  { %4694 = vst [vmem:[#allocation34_spill] sm:$0xff] %v3364_v33  ;;  %v2679_v50 = vld [vmem:[#allocation2 + $0x1f0] sm:$0xf0]  ;;  %525 = vmatpush.bf16.msra.mxu3 %v3367_v40  ;;  %v3390_v56 = vor.u32 %v2875_v43, %v2447_v44  ;;  %v2677_v58 = vld [vmem:[#allocation2 + $0x1d0] sm:$0xf] }
  0x2b   :  { %4695 = vst [vmem:[#allocation35_spill] sm:$0xff] %v3367_v40  ;;  %v2936_v61 = vld [vmem:[#allocation2 + $0x1ec] sm:$0xf0]  ;;  %v2685_v62 = vld [vmem:[#allocation2 + $0x1d8] sm:$0xf]  ;;  %v3392_v63 = vor.u32 %v2932_v49, %v2679_v50 }
  0x2c   :  { %4696 = vst [vmem:[#allocation36_spill] sm:$0xff] %v3371_v48  ;;  %v2937_v0 = vld [vmem:[#allocation2 + $0x1f4] sm:$0xf0]  ;;  %v2933_v2 = vld [vmem:[#allocation2 + $0x1dc] sm:$0xf]  ;;  %487 = vmatpush.bf16.msra.mxu0 %v3371_v48  ;;  %v3397_v7 = vor.u32 %v2936_v61, %v2677_v58 }
  0x2d   :  { %4697 = vst [vmem:[#allocation37_spill] sm:$0xff] %v3375_v52  ;;  %v2687_v3 = vld [vmem:[#allocation2 + $0x1f8] sm:$0xf0]  ;;  %v2924_v5 = vld [vmem:[#allocation2 + $0x194] sm:$0xf]  ;;  %500 = vmatpush.bf16.msra.mxu1 %v3375_v52  ;;  %513 = vmatpush.bf16.msra.mxu2 %v3377_v53  ;;  %v3400_v11 = vor.u32 %v2937_v0, %v2685_v62 }
  0x2e   :  { %4698 = vst [vmem:[#allocation38_spill] sm:$0xff] %v3377_v53  ;;  %v2647_v6 = vld [vmem:[#allocation2 + $0x1b0] sm:$0xf0]  ;;  %526 = vmatpush.bf16.msra.mxu3 %v3390_v56  ;;  %v3402_v15 = vor.u32 %v2933_v2, %v2687_v3  ;;  %v2645_v16 = vld [vmem:[#allocation2 + $0x190] sm:$0xf] }
  0x2f   :  { %4701 = vst [vmem:[#allocation39_spill] sm:$0xff] %v3390_v56  ;;  %v2928_v21 = vld [vmem:[#allocation2 + $0x1ac] sm:$0xf0]  ;;  %v2653_v23 = vld [vmem:[#allocation2 + $0x198] sm:$0xf]  ;;  %v3408_v25 = vor.u32 %v2924_v5, %v2647_v6 }
  0x30   :  { %4702 = vst [vmem:[#allocation40_spill] sm:$0xff] %v3392_v63  ;;  %v4481_v24 = vmov 1.0|1.0   ;;  %v2929_v27 = vld [vmem:[#allocation2 + $0x1b4] sm:$0xf0]  ;;  %532 = vmatpush.bf16.msrb.mxu0 %v3397_v7  ;;  %v3420_v38 = vor.u32 %v2928_v21, %v2645_v16 }
  0x31   :  { %4703 = vst [vmem:[#allocation41_spill] sm:$0xff] %v3397_v7  ;;  %2692 = vmatmul.msk.bf16.vlgmr.msra.gmra.mxu0 %vm3382_vm1, %v4481_v24  ;;  %545 = vmatpush.bf16.msrb.mxu1 %v3392_v63  ;;  %v2925_v28 = vld [vmem:[#allocation2 + $0x19c] sm:$0xf]  ;;  %v2916_v36 = vld [vmem:[#allocation2 + $0x154] sm:$0xf]  ;;  %v3424_v41 = vor.u32 %v2929_v27, %v2653_v23 }
  0x32   :  { %4704 = vst [vmem:[#allocation42_spill] sm:$0xff] %v3400_v11  ;;  %v2655_v31 = vld [vmem:[#allocation2 + $0x1b8] sm:$0xf0]  ;;  %2694 = vmatmul.msk.bf16.vlgmr.msra.gmra.mxu1 %vm3382_vm1, %v4481_v24  ;;  %2696 = vmatmul.msk.bf16.vlgmr.msra.gmra.mxu2 %vm3382_vm1, %v4481_v24  ;;  %v2615_v37 = vld [vmem:[#allocation2 + $0x170] sm:$0xf0] }
  0x33   :  { %4705 = vst [vmem:[#allocation43_spill] sm:$0xff] %v3402_v15  ;;  %2698 = vmatmul.msk.bf16.vlgmr.msra.gmra.mxu3 %vm3382_vm1, %v4481_v24  ;;  %558 = vmatpush.bf16.msrb.mxu2 %v3400_v11  ;;  %v3426_v42 = vor.u32 %v2925_v28, %v2655_v31  ;;  %v2613_v43 = vld [vmem:[#allocation2 + $0x150] sm:$0xf]  ;;  %v2621_v49 = vld [vmem:[#allocation2 + $0x158] sm:$0xf]  ;;  %v3429_v50 = vor.u32 %v2916_v36, %v2615_v37 }
  0x34   :  { %4706 = vst [vmem:[#allocation44_spill] sm:$0xff] %v3408_v25  ;;  %571 = vmatpush.bf16.msrb.mxu3 %v3402_v15  ;;  %v2920_v44 = vld [vmem:[#allocation2 + $0x16c] sm:$0xf0]  ;;  %v2921_v55 = vld [vmem:[#allocation2 + $0x174] sm:$0xf0]  ;;  %533 = vmatpush.bf16.msrb.mxu0 %v3420_v38 }
  0x35   :  { %4707 = vst [vmem:[#allocation45_spill] sm:$0xff] %v3420_v38  ;;  %546 = vmatpush.bf16.msrb.mxu1 %v3408_v25  ;;  %v2917_v58 = vld [vmem:[#allocation2 + $0x15c] sm:$0xf]  ;;  %v3432_v62 = vor.u32 %v2920_v44, %v2613_v43  ;;  %v3436_v0 = vor.u32 %v2921_v55, %v2621_v49  ;;  %v2581_v3 = vld [vmem:[#allocation2 + $0x110] sm:$0xf] }
  0x36   :  { %4708 = vst [vmem:[#allocation46_spill] sm:$0xff] %v3424_v41  ;;  %v2623_v61 = vld [vmem:[#allocation2 + $0x178] sm:$0xf0]  ;;  %v2912_v5 = vld [vmem:[#allocation2 + $0x12c] sm:$0xf0] }
  0x37   :  { %4709 = vst [vmem:[#allocation47_spill] sm:$0xff] %v3426_v42  ;;  %559 = vmatpush.bf16.msrb.mxu2 %v3424_v41  ;;  %v3438_v2 = vor.u32 %v2917_v58, %v2623_v61  ;;  %v2908_v6 = vld [vmem:[#allocation2 + $0x114] sm:$0xf]  ;;  %v3444_v16 = vor.u32 %v2912_v5, %v2581_v3  ;;  %v2589_v23 = vld [vmem:[#allocation2 + $0x118] sm:$0xf] }
  0x38   :  { %4710 = vst [vmem:[#allocation48_spill] sm:$0xff] %v3429_v50  ;;  %572 = vmatpush.bf16.msrb.mxu3 %v3426_v42  ;;  %534 = vmatpush.bf16.msrb.mxu0 %v3432_v62  ;;  %v2583_v21 = vld [vmem:[#allocation2 + $0x130] sm:$0xf0]  ;;  %v2913_v27 = vld [vmem:[#allocation2 + $0x134] sm:$0xf0] }
  0x39   :  { %4711 = vst [vmem:[#allocation49_spill] sm:$0xff] %v3432_v62  ;;  %547 = vmatpush.bf16.msrb.mxu1 %v3429_v50  ;;  %v3446_v28 = vor.u32 %v2908_v6, %v2583_v21  ;;  %v3448_v31 = vor.u32 %v2913_v27, %v2589_v23  ;;  %v2909_v36 = vld [vmem:[#allocation2 + $0x11c] sm:$0xf]  ;;  %v2549_v43 = vld [vmem:[#allocation2 + $0xd0] sm:$0xf] }
  0x3a   :  { %4712 = vst [vmem:[#allocation50_spill] sm:$0xff] %v3436_v0  ;;  %v2591_v37 = vld [vmem:[#allocation2 + $0x138] sm:$0xf0]  ;;  %v2904_v49 = vld [vmem:[#allocation2 + $0xec] sm:$0xf0] }
  0x3b   :  { %4713 = vst [vmem:[#allocation51_spill] sm:$0xff] %v3438_v2  ;;  %560 = vmatpush.bf16.msrb.mxu2 %v3436_v0  ;;  %v3451_v44 = vor.u32 %v2909_v36, %v2591_v37  ;;  %v2900_v55 = vld [vmem:[#allocation2 + $0xd4] sm:$0xf]  ;;  %v3455_v61 = vor.u32 %v2904_v49, %v2549_v43  ;;  %v2557_v5 = vld [vmem:[#allocation2 + $0xd8] sm:$0xf] }
  0x3c   :  { %573 = vmatpush.bf16.msrb.mxu3 %v3438_v2  ;;  %4714 = vst [vmem:[#allocation52_spill] sm:$0xff] %v3444_v16  ;;  %535 = vmatpush.bf16.msrb.mxu0 %v3444_v16  ;;  %v2551_v58 = vld [vmem:[#allocation2 + $0xf0] sm:$0xf0]  ;;  %v2905_v6 = vld [vmem:[#allocation2 + $0xf4] sm:$0xf0] }
  0x3d   :  { %4715 = vst [vmem:[#allocation53_spill] sm:$0xff] %v3446_v28  ;;  %548 = vmatpush.bf16.msrb.mxu1 %v3446_v28  ;;  %v3457_v3 = vor.u32 %v2900_v55, %v2551_v58  ;;  %v2901_v21 = vld [vmem:[#allocation2 + $0xdc] sm:$0xf]  ;;  %v3460_v23 = vor.u32 %v2905_v6, %v2557_v5  ;;  %v2517_v37 = vld [vmem:[#allocation2 + $0x90] sm:$0xf] }
  0x3e   :  { %4716 = vst [vmem:[#allocation54_spill] sm:$0xff] %v3448_v31  ;;  %v2559_v27 = vld [vmem:[#allocation2 + $0xf8] sm:$0xf0]  ;;  %v2896_v43 = vld [vmem:[#allocation2 + $0xac] sm:$0xf0] }
  0x3f   :  { %4717 = vst [vmem:[#allocation55_spill] sm:$0xff] %v3451_v44  ;;  %561 = vmatpush.bf16.msrb.mxu2 %v3448_v31  ;;  %v3462_v36 = vor.u32 %v2901_v21, %v2559_v27  ;;  %v2892_v49 = vld [vmem:[#allocation2 + $0x94] sm:$0xf]  ;;  %v3468_v55 = vor.u32 %v2896_v43, %v2517_v37  ;;  %v2525_v24 = vld [vmem:[#allocation2 + $0x98] sm:$0xf] }
  0x40   :  { %4718 = vst [vmem:[#allocation56_spill] sm:$0xff] %v3455_v61  ;;  %574 = vmatpush.bf16.msrb.mxu3 %v3451_v44  ;;  %536 = vmatpush.bf16.msrb.mxu0 %v3455_v61  ;;  %v2519_v58 = vld [vmem:[#allocation2 + $0xb0] sm:$0xf0]  ;;  %v2897_v5 = vld [vmem:[#allocation2 + $0xb4] sm:$0xf0] }
  0x41   :  { %4719 = vst [vmem:[#allocation57_spill] sm:$0xff] %v3457_v3  ;;  %549 = vmatpush.bf16.msrb.mxu1 %v3457_v3  ;;  %v3470_v6 = vor.u32 %v2892_v49, %v2519_v58  ;;  %v3472_v21 = vor.u32 %v2897_v5, %v2525_v24  ;;  %v2893_v27 = vld [vmem:[#allocation2 + $0x9c] sm:$0xf]  ;;  %v2485_v61 = vld [vmem:[#allocation2 + $0x50] sm:$0xf] }
  0x42   :  { %4720 = vst [vmem:[#allocation58_spill] sm:$0xff] %v3460_v23  ;;  %v2527_v19 = vld [vmem:[#allocation2 + $0xb8] sm:$0xf0]  ;;  %v2888_v3 = vld [vmem:[#allocation2 + $0x6c] sm:$0xf0] }
  0x43   :  { %4721 = vst [vmem:[#allocation59_spill] sm:$0xff] %v3462_v36  ;;  %562 = vmatpush.bf16.msrb.mxu2 %v3460_v23  ;;  %v3475_v23 = vor.u32 %v2893_v27, %v2527_v19  ;;  %v2884_v44 = vld [vmem:[#allocation2 + $0x54] sm:$0xf]  ;;  %v3479_v37 = vor.u32 %v2888_v3, %v2485_v61  ;;  %v2493_v24 = vld [vmem:[#allocation2 + $0x58] sm:$0xf] }
  0x44   :  { %575 = vmatpush.bf16.msrb.mxu3 %v3462_v36  ;;  %4722 = vst [vmem:[#allocation60_spill] sm:$0xff] %v3468_v55  ;;  %537 = vmatpush.bf16.msrb.mxu0 %v3468_v55  ;;  %v2487_v31 = vld [vmem:[#allocation2 + $0x70] sm:$0xf0]  ;;  %v2889_v49 = vld [vmem:[#allocation2 + $0x74] sm:$0xf0] }
  0x45   :  { %4723 = vst [vmem:[#allocation61_spill] sm:$0xff] %v3470_v6  ;;  %550 = vmatpush.bf16.msrb.mxu1 %v3470_v6  ;;  %v3481_v43 = vor.u32 %v2884_v44, %v2487_v31  ;;  %v2885_v58 = vld [vmem:[#allocation2 + $0x5c] sm:$0xf]  ;;  %v3484_v5 = vor.u32 %v2889_v49, %v2493_v24  ;;  %v2453_v61 = vld [vmem:[#allocation2 + $0x10] sm:$0xf] }
  0x46   :  { %4724 = vst [vmem:[#allocation62_spill] sm:$0xff] %v3472_v21  ;;  %v2495_v19 = vld [vmem:[#allocation2 + $0x78] sm:$0xf0]  ;;  %v2880_v3 = vld [vmem:[#allocation2 + $0x2c] sm:$0xf0] }
  0x47   :  { %4725 = vst [vmem:[#allocation63_spill] sm:$0xff] %v3475_v23  ;;  %563 = vmatpush.bf16.msrb.mxu2 %v3472_v21  ;;  %v3486_v27 = vor.u32 %v2885_v58, %v2495_v19  ;;  %v2876_v31 = vld [vmem:[#allocation2 + $0x14] sm:$0xf]  ;;  %v3492_v44 = vor.u32 %v2880_v3, %v2453_v61  ;;  %v2881_v24 = vld [vmem:[#allocation2 + $0x34] sm:$0xf0] }
  0x48   :  { %4726 = vst [vmem:[#allocation64_spill] sm:$0xff] %v3479_v37  ;;  %576 = vmatpush.bf16.msrb.mxu3 %v3475_v23  ;;  %538 = vmatpush.bf16.msrb.mxu0 %v3479_v37  ;;  %v2455_v21 = vld [vmem:[#allocation2 + $0x30] sm:$0xf0]  ;;  %v2461_v23 = vld [vmem:[#allocation2 + $0x18] sm:$0xf] }
  0x49   :  { %4727 = vst [vmem:[#allocation65_spill] sm:$0xff] %v3481_v43  ;;  %551 = vmatpush.bf16.msrb.mxu1 %v3481_v43  ;;  %v3494_v49 = vor.u32 %v2876_v31, %v2455_v21  ;;  %v3496_v58 = vor.u32 %v2881_v24, %v2461_v23  ;;  %v2877_v19 = vld [vmem:[#allocation2 + $0x1c] sm:$0xf]  ;;  %v4734_v61 = vmov 1.0|1.0  }
  0x4a   :  { %4728 = vst [vmem:[#allocation66_spill] sm:$0xff] %v3484_v5  ;;  %v2463_v37 = vld [vmem:[#allocation2 + $0x38] sm:$0xf0]  ;;  %v2821_v23 = vld [vmem:[#allocation5 + $0xe0] sm:$0xf] }
  0x4b   :  { %4729 = vst [vmem:[#allocation67_spill] sm:$0xff] %v3486_v27  ;;  %564 = vmatpush.bf16.msrb.mxu2 %v3484_v5  ;;  %v3499_v43 = vor.u32 %v2877_v19, %v2463_v37  ;;  %v2968_v21 = vld [vmem:[#allocation5 + $0xec] sm:$0xf0]  ;;  %v2966_v3 = vld [vmem:[#allocation5 + $0xe4] sm:$0xf] }
  0x4c   :  { %577 = vmatpush.bf16.msrb.mxu3 %v3486_v27  ;;  %4730 = vst [vmem:[#allocation68_spill] sm:$0xff] %v3492_v44  ;;  %539 = vmatpush.bf16.msrb.mxu0 %v3492_v44  ;;  %v3516_v37 = vor.u32 %v2968_v21, %v2821_v23  ;;  %v2823_v31 = vld [vmem:[#allocation5 + $0xf0] sm:$0xf0]  ;;  %v2829_v24 = vld [vmem:[#allocation5 + $0xe8] sm:$0xf] }
  0x4d   :  { %4731 = vst [vmem:[#allocation69_spill] sm:$0xff] %v3494_v49  ;;  %552 = vmatpush.bf16.msrb.mxu1 %v3494_v49  ;;  %v3518_v19 = vor.u32 %v2966_v3, %v2823_v31  ;;  %v2831_v49 = vld [vmem:[#allocation5 + $0xf8] sm:$0xf0]  ;;  %v2805_v54 = vld [vmem:[#allocation5 + $0xc0] sm:$0xf] }
  0x4e   :  { %4732 = vst [vmem:[#allocation70_spill] sm:$0xff] %v3496_v58  ;;  %v2962_v23 = vld [vmem:[#allocation5 + $0xc4] sm:$0xf]  ;;  %v2807_v3 = vld [vmem:[#allocation5 + $0xd0] sm:$0xf0] }
  0x4f   :  { %4733 = vst [vmem:[#allocation71_spill] sm:$0xff] %v3499_v43  ;;  %565 = vmatpush.bf16.msrb.mxu2 %v3496_v58  ;;  %2700 = vmatmul.msk.bf16.vlgmr.msrb.gmra.mxu0 %vm3382_vm1, %v4734_v61  ;;  %v2967_v58 = vld [vmem:[#allocation5 + $0xec] sm:$0xf]  ;;  %v2813_v31 = vld [vmem:[#allocation5 + $0xc8] sm:$0xf]  ;;  %v3530_v6 = vor.u32 %v2962_v23, %v2807_v3 }
  0x50   :  { %578 = vmatpush.bf16.msrb.mxu3 %v3499_v43  ;;  %2702 = vmatmul.msk.bf16.vlgmr.msrb.gmra.mxu1 %vm3382_vm1, %v4734_v61  ;;  %4735 = vst [vmem:[#allocation72_spill] sm:$0xff] %v3516_v37  ;;  %v2969_v43 = vld [vmem:[#allocation5 + $0xf4] sm:$0xf0]  ;;  %v3523_v27 = vor.u32 %v2967_v58, %v2831_v49  ;;  %v2963_v49 = vld [vmem:[#allocation5 + $0xcc] sm:$0xf] }
  0x51   :  { %4736 = vst [vmem:[#allocation73_spill] sm:$0xff] %v3518_v19  ;;  %786 = vmatpush.bf16.msra.mxu0 %v3516_v37  ;;  %v3521_v44 = vor.u32 %v2969_v43, %v2829_v24  ;;  %799 = vmatpush.bf16.msra.mxu1 %v3518_v19  ;;  %v2965_v5 = vld [vmem:[#allocation5 + $0xd4] sm:$0xf0]  ;;  %v2815_v58 = vld [vmem:[#allocation5 + $0xd8] sm:$0xf0] }
  0x52   :  { %2704 = vmatmul.msk.bf16.vlgmr.msrb.gmra.mxu2 %vm3382_vm1, %v4734_v61  ;;  %4738 = vst [vmem:[#allocation75_spill] sm:$0xff] %v3523_v27  ;;  %v3532_v43 = vor.u32 %v2965_v5, %v2813_v31  ;;  %v3535_v24 = vor.u32 %v2963_v49, %v2815_v58  ;;  %v2960_v19 = vld [vmem:[#allocation5 + $0xac] sm:$0xf0]  ;;  %v2797_v5 = vld [vmem:[#allocation5 + $0xa8] sm:$0xf] }
  0x53   :  { %2706 = vmatmul.msk.bf16.vlgmr.msrb.gmra.mxu3 %vm3382_vm1, %v4734_v61  ;;  %4737 = vst [vmem:[#allocation74_spill] sm:$0xff] %v3521_v44  ;;  %v2964_v61 = vld [vmem:[#allocation5 + $0xcc] sm:$0xf0]  ;;  %812 = vmatpush.bf16.msra.mxu2 %v3521_v44  ;;  %v2789_v44 = vld [vmem:[#allocation5 + $0xa0] sm:$0xf] }
  0x54   :  { %825 = vmatpush.bf16.msra.mxu3 %v3523_v27  ;;  %v3528_v21 = vor.u32 %v2964_v61, %v2805_v54  ;;  %4740 = vst [vmem:[#allocation77_spill] sm:$0xff] %v3530_v6  ;;  %v2958_v27 = vld [vmem:[#allocation5 + $0xa4] sm:$0xf]  ;;  %v3540_v54 = vor.u32 %v2960_v19, %v2789_v44  ;;  %v2791_v61 = vld [vmem:[#allocation5 + $0xb0] sm:$0xf0] }
  0x55   :  { %4741 = vst [vmem:[#allocation78_spill] sm:$0xff] %v3532_v43  ;;  %800 = vmatpush.bf16.msra.mxu1 %v3530_v6  ;;  %v2961_v23 = vld [vmem:[#allocation5 + $0xb4] sm:$0xf0]  ;;  %v3542_v3 = vor.u32 %v2958_v27, %v2791_v61  ;;  %v2959_v49 = vld [vmem:[#allocation5 + $0xac] sm:$0xf] }
  0x56   :  { %4739 = vst [vmem:[#allocation76_spill] sm:$0xff] %v3528_v21  ;;  %787 = vmatpush.bf16.msra.mxu0 %v3528_v21  ;;  %v3544_v31 = vor.u32 %v2961_v23, %v2797_v5  ;;  %v2799_v58 = vld [vmem:[#allocation5 + $0xb8] sm:$0xf0]  ;;  %v2956_v21 = vld [vmem:[#allocation5 + $0x8c] sm:$0xf0] }
  0x57   :  { %4742 = vst [vmem:[#allocation79_spill] sm:$0xff] %v3535_v24  ;;  %813 = vmatpush.bf16.msra.mxu2 %v3532_v43  ;;  %v3547_v6 = vor.u32 %v2959_v49, %v2799_v58  ;;  %v2773_v43 = vld [vmem:[#allocation5 + $0x80] sm:$0xf]  ;;  %v2775_v27 = vld [vmem:[#allocation5 + $0x90] sm:$0xf0] }
  0x58   :  { %826 = vmatpush.bf16.msra.mxu3 %v3535_v24  ;;  %4743 = vst [vmem:[#allocation80_spill] sm:$0xff] %v3540_v54  ;;  %v2954_v24 = vld [vmem:[#allocation5 + $0x84] sm:$0xf]  ;;  %v3552_v44 = vor.u32 %v2956_v21, %v2773_v43  ;;  %v2781_v19 = vld [vmem:[#allocation5 + $0x88] sm:$0xf] }
  0x59   :  { %4744 = vst [vmem:[#allocation81_spill] sm:$0xff] %v3542_v3  ;;  %801 = vmatpush.bf16.msra.mxu1 %v3542_v3  ;;  %v2957_v61 = vld [vmem:[#allocation5 + $0x94] sm:$0xf0]  ;;  %v3554_v5 = vor.u32 %v2954_v24, %v2775_v27  ;;  %v2955_v49 = vld [vmem:[#allocation5 + $0x8c] sm:$0xf] }
  0x5a   :  { %4745 = vst [vmem:[#allocation82_spill] sm:$0xff] %v3544_v31  ;;  %788 = vmatpush.bf16.msra.mxu0 %v3540_v54  ;;  %v3556_v23 = vor.u32 %v2957_v61, %v2781_v19  ;;  %v2783_v58 = vld [vmem:[#allocation5 + $0x98] sm:$0xf0]  ;;  %v2952_v54 = vld [vmem:[#allocation5 + $0x6c] sm:$0xf0] }
  0x5b   :  { %4746 = vst [vmem:[#allocation83_spill] sm:$0xff] %v3547_v6  ;;  %814 = vmatpush.bf16.msra.mxu2 %v3544_v31  ;;  %v3559_v3 = vor.u32 %v2955_v49, %v2783_v58  ;;  %v2757_v31 = vld [vmem:[#allocation5 + $0x60] sm:$0xf]  ;;  %v2759_v43 = vld [vmem:[#allocation5 + $0x70] sm:$0xf0] }
  0x5c   :  { %827 = vmatpush.bf16.msra.mxu3 %v3547_v6  ;;  %4747 = vst [vmem:[#allocation84_spill] sm:$0xff] %v3552_v44  ;;  %v2950_v6 = vld [vmem:[#allocation5 + $0x64] sm:$0xf]  ;;  %v3564_v21 = vor.u32 %v2952_v54, %v2757_v31  ;;  %v2765_v24 = vld [vmem:[#allocation5 + $0x68] sm:$0xf] }
  0x5d   :  { %4748 = vst [vmem:[#allocation85_spill] sm:$0xff] %v3554_v5  ;;  %802 = vmatpush.bf16.msra.mxu1 %v3554_v5  ;;  %v2953_v27 = vld [vmem:[#allocation5 + $0x74] sm:$0xf0]  ;;  %v3566_v19 = vor.u32 %v2950_v6, %v2759_v43  ;;  %v2951_v49 = vld [vmem:[#allocation5 + $0x6c] sm:$0xf] }
  0x5e   :  { %4749 = vst [vmem:[#allocation86_spill] sm:$0xff] %v3556_v23  ;;  %789 = vmatpush.bf16.msra.mxu0 %v3552_v44  ;;  %v3568_v61 = vor.u32 %v2953_v27, %v2765_v24  ;;  %v2767_v58 = vld [vmem:[#allocation5 + $0x78] sm:$0xf0]  ;;  %v2948_v44 = vld [vmem:[#allocation5 + $0x4c] sm:$0xf0] }
  0x5f   :  { %4750 = vst [vmem:[#allocation87_spill] sm:$0xff] %v3559_v3  ;;  %815 = vmatpush.bf16.msra.mxu2 %v3556_v23  ;;  %v3571_v5 = vor.u32 %v2951_v49, %v2767_v58  ;;  %v2741_v23 = vld [vmem:[#allocation5 + $0x40] sm:$0xf]  ;;  %v2743_v6 = vld [vmem:[#allocation5 + $0x50] sm:$0xf0] }
  0x60   :  { %828 = vmatpush.bf16.msra.mxu3 %v3559_v3  ;;  %4751 = vst [vmem:[#allocation88_spill] sm:$0xff] %v3564_v21  ;;  %v2946_v3 = vld [vmem:[#allocation5 + $0x44] sm:$0xf]  ;;  %v3576_v54 = vor.u32 %v2948_v44, %v2741_v23  ;;  %v2749_v31 = vld [vmem:[#allocation5 + $0x48] sm:$0xf] }
  0x61   :  { %4752 = vst [vmem:[#allocation89_spill] sm:$0xff] %v3566_v19  ;;  %803 = vmatpush.bf16.msra.mxu1 %v3566_v19  ;;  %v2949_v43 = vld [vmem:[#allocation5 + $0x54] sm:$0xf0]  ;;  %v3578_v24 = vor.u32 %v2946_v3, %v2743_v6  ;;  %v2947_v49 = vld [vmem:[#allocation5 + $0x4c] sm:$0xf] }
  0x62   :  { %4753 = vst [vmem:[#allocation90_spill] sm:$0xff] %v3568_v61  ;;  %790 = vmatpush.bf16.msra.mxu0 %v3564_v21  ;;  %v3580_v27 = vor.u32 %v2949_v43, %v2749_v31  ;;  %v2751_v58 = vld [vmem:[#allocation5 + $0x58] sm:$0xf0]  ;;  %v152_v19 = vld [vmem:[%s4475_s1] sm:$0xf]  ;;  %s2421_s1 = sshll.u32 %s3239_s16, 4  ;;  %s2422_s1 = int_to_ptr.vmem [resolvable:$true] %s2421_s1 }
  0x63   :  { %4754 = vst [vmem:[#allocation91_spill] sm:$0xff] %v3571_v5  ;;  %816 = vmatpush.bf16.msra.mxu2 %v3568_v61  ;;  %v3586_v61 = vor.u32 %v2947_v49, %v2751_v58  ;;  %v2725_v44 = vld [vmem:[#allocation5 + $0x20] sm:$0xf]  ;;  %v2944_v23 = vld [vmem:[#allocation5 + $0x2c] sm:$0xf0]  ;;  %v3593_v21 = vperm.slane %v152_v19, 0 }
  0x64   :  { %829 = vmatpush.bf16.msra.mxu3 %v3571_v5  ;;  %4755 = vst [vmem:[#allocation92_spill] sm:$0xff] %v3576_v54  ;;  %v2942_v5 = vld [vmem:[#allocation5 + $0x24] sm:$0xf]  ;;  %v3591_v3 = vor.u32 %v2944_v23, %v2725_v44  ;;  %v2727_v6 = vld [vmem:[#allocation5 + $0x30] sm:$0xf0] }
  0x65   :  { %4756 = vst [vmem:[#allocation93_spill] sm:$0xff] %v3578_v24  ;;  %804 = vmatpush.bf16.msra.mxu1 %v3578_v24  ;;  %v2733_v31 = vld [vmem:[#allocation5 + $0x28] sm:$0xf]  ;;  %v2945_v43 = vld [vmem:[#allocation5 + $0x34] sm:$0xf0]  ;;  %v3595_v37 = vor.u32 %v2942_v5, %v2727_v6 }
  0x66   :  { %4757 = vst [vmem:[#allocation94_spill] sm:$0xff] %v3580_v27  ;;  %791 = vmatpush.bf16.msra.mxu0 %v3576_v54  ;;  %v3597_v49 = vor.u32 %v2945_v43, %v2733_v31  ;;  %v2943_v58 = vld [vmem:[#allocation5 + $0x2c] sm:$0xf]  ;;  %v2735_v24 = vld [vmem:[#allocation5 + $0x38] sm:$0xf0]  ;;  %v3599_v54 = vperm.slane %v152_v19, 1 }
  0x67   :  { %4758 = vst [vmem:[#allocation95_spill] sm:$0xff] %v3586_v61  ;;  %817 = vmatpush.bf16.msra.mxu2 %v3580_v27  ;;  %v3602_v27 = vor.u32 %v2943_v58, %v2735_v24  ;;  %v2709_v44 = vld [vmem:[#allocation5] sm:$0xf]  ;;  %v2940_v23 = vld [vmem:[#allocation5 + $0xc] sm:$0xf0] }
  0x68   :  { %830 = vmatpush.bf16.msra.mxu3 %v3586_v61  ;;  %4759 = vst [vmem:[#allocation96_spill] sm:$0xff] %v3591_v3  ;;  %v2938_v61 = vld [vmem:[#allocation5 + $0x4] sm:$0xf]  ;;  %v3607_v5 = vor.u32 %v2940_v23, %v2709_v44  ;;  %v2711_v6 = vld [vmem:[#allocation5 + $0x10] sm:$0xf0] }
  0x69   :  { %4760 = vst [vmem:[#allocation97_spill] sm:$0xff] %v3593_v21  ;;  %805 = vmatpush.bf16.msra.mxu1 %v3595_v37  ;;  %v2717_v31 = vld [vmem:[#allocation5 + $0x8] sm:$0xf]  ;;  %v2941_v43 = vld [vmem:[#allocation5 + $0x14] sm:$0xf0] }
  0x6a   :  { %4761 = vst [vmem:[#allocation98_spill] sm:$0xff] %v3595_v37  ;;  %792 = vmatpush.bf16.msra.mxu0 %v3591_v3  ;;  %v3610_v3 = vor.u32 %v2938_v61, %v2711_v6  ;;  %v3612_v24 = vor.u32 %v2941_v43, %v2717_v31  ;;  %v2939_v58 = vld [vmem:[#allocation5 + $0xc] sm:$0xf]  ;;  %v2719_v37 = vld [vmem:[#allocation5 + $0x18] sm:$0xf0]  ;;  %v3624_v31 = vperm.slane %v152_v19, 2 }
  0x6b   :  { %4762 = vst [vmem:[#allocation99_spill] sm:$0xff] %v3597_v49  ;;  %818 = vmatpush.bf16.msra.mxu2 %v3597_v49  ;;  %v3616_v49 = vor.u32 %v2939_v58, %v2719_v37  ;;  %v3627_v43 = vperm.slane %v152_v19, 3 }
  0x6c   :  { %4763 = vst [vmem:[#allocation100_spill] sm:$0xff] %v3599_v54  ;;  %831 = vmatpush.bf16.msra.mxu3 %v3602_v27 }
  0x6d   :  { %806 = vmatpush.bf16.msra.mxu1 %v3610_v3  ;;  %4764 = vst [vmem:[#allocation101_spill] sm:$0xff] %v3624_v31 }
  0x6e   :  { %793 = vmatpush.bf16.msra.mxu0 %v3607_v5  ;;  %4765 = vst [vmem:[#allocation102_spill] sm:$0xff] %v3627_v43 }
  0x6f   :  { %819 = vmatpush.bf16.msra.mxu2 %v3612_v24 }
  0x70   :  { %832 = vmatpush.bf16.msra.mxu3 %v3616_v49 }
  0x71   :  { %872 = vmatpush.bf16.msrb.mxu1 %v3283_v8 }
  0x72   :  { %859 = vmatpush.bf16.msrb.mxu0 %v3281_v4 }
  0x73   :  { %885 = vmatpush.bf16.msrb.mxu2 %v3285_v9 }
  0x74   :  { %898 = vmatpush.bf16.msrb.mxu3 %v3288_v13 }
  0x75   :  { %873 = vmatpush.bf16.msrb.mxu1 %v3294_v18 }
  0x76   :  { %860 = vmatpush.bf16.msrb.mxu0 %v3292_v17 }
  0x77   :  { %886 = vmatpush.bf16.msrb.mxu2 %v3297_v22 }
  0x78   :  { %899 = vmatpush.bf16.msrb.mxu3 %v3299_v26 }
  0x79   :  { %874 = vmatpush.bf16.msrb.mxu1 %v3306_v34 }
  0x7a   :  { %861 = vmatpush.bf16.msrb.mxu0 %v3302_v30 }
  0x7b   :  { %887 = vmatpush.bf16.msrb.mxu2 %v3308_v35 }
  0x7c   :  { %900 = vmatpush.bf16.msrb.mxu3 %v3311_v39 }
  0x7d   :  { %875 = vmatpush.bf16.msrb.mxu1 %v3318_v46 }
  0x7e   :  { %862 = vmatpush.bf16.msrb.mxu0 %v3314_v45 }
  0x7f   :  { %888 = vmatpush.bf16.msrb.mxu2 %v3320_v47 }
  0x80   :  { %901 = vmatpush.bf16.msrb.mxu3 %v3323_v51 }
  0x81   :  { %876 = vmatpush.bf16.msrb.mxu1 %v3330_v59 }
  0x82   :  { %863 = vmatpush.bf16.msrb.mxu0 %v3326_v57 }
  0x83   :  { %889 = vmatpush.bf16.msrb.mxu2 %v3332_v60 }
  0x84   :  { %902 = vmatpush.bf16.msrb.mxu3 %v3338_v1 }
  0x85   :  { %877 = vmatpush.bf16.msrb.mxu1 %v3345_v12 }
  0x86   :  { %864 = vmatpush.bf16.msrb.mxu0 %v3341_v10 }
  0x87   :  { %890 = vmatpush.bf16.msrb.mxu2 %v3347_v14 }
  0x88   :  { %v588_v55 = vpop.permute.xlu0 %587  ;;  %903 = vmatpush.bf16.msrb.mxu3 %v3352_v20 }
  0x89   :  { %v599_v36 = vmul.f32 %v3593_v21, %v588_v55  ;;  %v600_v28 = vmul.f32 %v3599_v54, %v588_v55  ;;  %878 = vmatpush.bf16.msrb.mxu1 %v3362_v32 }
  0x8a   :  { %865 = vmatpush.bf16.msrb.mxu0 %v3358_v29 }
  0x8b   :  { %891 = vmatpush.bf16.msrb.mxu2 %v3364_v33 }
  0x8c   :  { %904 = vmatpush.bf16.msrb.mxu3 %v3367_v40 }
  0x8d   :  { %879 = vmatpush.bf16.msrb.mxu1 %v3375_v52 }
  0x8e   :  { %866 = vmatpush.bf16.msrb.mxu0 %v3371_v48 }
  0x8f   :  { %892 = vmatpush.bf16.msrb.mxu2 %v3377_v53 }
  0x90   :  { %905 = vmatpush.bf16.msrb.mxu3 %v3390_v56 }
  0xae   :  { %v489_v44 = vpop.f32.mrf.mxu0 }
  0xaf   :  { %v603_v61 = vadd.f32 %v599_v36, %v489_v44  ;;  %v502_v23 = vpop.f32.mrf.mxu1  ;;  %v601_v36 = vmul.f32 %v3624_v31, %v588_v55  ;;  %v602_v44 = vmul.f32 %v3627_v43, %v588_v55 }
  0xb0   :  { %v604_v6 = vadd.f32 %v600_v28, %v502_v23 }
  0xb1   :  { %v607_v37 = vmul.f32 0.5, %v603_v61 }
  0xb2   :  { %v611_v58 = vmul.f32 0.5, %v604_v6 }
  0xb3   :  { %2992 = vtanh.f32 %v607_v37 }
  0xb4   :  { %2994 = vtanh.f32 %v611_v58 }
  0xb5   :  { %v515_v28 = vpop.f32.mrf.mxu2 }
  0xb6   :  { %v605_v19 = vadd.f32 %v601_v36, %v515_v28  ;;  %v528_v61 = vpop.f32.mrf.mxu3  ;;  %v491_v23 = vpop.f32.mrf.mxu0 }
  0xb7   :  { %v606_v54 = vadd.f32 %v602_v44, %v528_v61  ;;  %v504_v6 = vpop.f32.mrf.mxu1 }
  0xb8   :  { %2996 = vtanh.f32 %v605_v19 }
  0xb9   :  { %v2993_v37 = vpop.eup %2992  ;;  %v616_v58 = vmul.f32 0.5, %v606_v54 }
  0xba   :  { %v2995_v31 = vpop.eup %2994  ;;  %v609_v55 = vmul.f32 0.5, %v2993_v37 }
  0xbb   :  { %v613_v43 = vmul.f32 0.5, %v2995_v31  ;;  %2998 = vtanh.f32 %v616_v58 }
  0xbc   :  { %v610_v36 = vadd.f32 0.5, %v609_v55 }
  0xbd   :  { %v614_v28 = vadd.f32 0.5, %v613_v43  ;;  %v517_v44 = vpop.f32.mrf.mxu2 }
  0xbe   :  { %v2997_v19 = vpop.eup %2996  ;;  %v530_v61 = vpop.f32.mrf.mxu3  ;;  %v4767_v44 = vld [vmem:[#allocation54_spill] sm:$0xff] }
  0xbf   :  { %v620_v54 = vmul.f32 0.0, %v614_v28  ;;  %v621_v23 = vmul.f32 %v2997_v19, %v610_v36  ;;  %v4766_v28 = vld [vmem:[#allocation53_spill] sm:$0xff]  ;;  %v4768_v19 = vld [vmem:[#allocation55_spill] sm:$0xff]  ;;  %v4769_v61 = vld [vmem:[#allocation56_spill] sm:$0xff] }
  0xc1   :  { %v2999_v31 = vpop.eup %2998  ;;  %v3647_v6 = vadd.f32 %v621_v23, %v620_v54  ;;  %v4770_v54 = vld [vmem:[#allocation57_spill] sm:$0xff]  ;;  %v4771_v23 = vld [vmem:[#allocation58_spill] sm:$0xff] }
  0xc2   :  { %v618_v43 = vmul.f32 0.5, %v2999_v31  ;;  %v4772_v31 = vld [vmem:[#allocation59_spill] sm:$0xff] }
  0xc3   :  { %3000 = vtanh.f32 %v3647_v6 }
  0xc4   :  { %v619_v37 = vadd.f32 0.5, %v618_v43  ;;  %v4773_v43 = vld [vmem:[#allocation60_spill] sm:$0xff] }
  0xc9   :  { %v3001_v58 = vpop.eup %3000 }
  0xca   :  { %v3659_v55 = vmul.f32 %v3001_v58, %v619_v37  ;;  %v4774_v37 = vld [vmem:[#allocation61_spill] sm:$0xff]  ;;  %v4775_v58 = vld [vmem:[#allocation62_spill] sm:$0xff] }
  0xcc   :  { %v625_v36 = vpack.c.bf16 %v3659_v55, %v3659_v55 }
  0xce   :  { %794 = vmatmul.bf16.vlgmr.msra.gmra.mxu0 %v625_v36  ;;  %807 = vmatmul.bf16.vlgmr.msra.gmra.mxu1 %v625_v36 }
  0xcf   :  { %820 = vmatmul.bf16.vlgmr.msra.gmra.mxu2 %v625_v36  ;;  %833 = vmatmul.bf16.vlgmr.msra.gmra.mxu3 %v625_v36  ;;  %v4776_v36 = vld [vmem:[#allocation63_spill] sm:$0xff] }
  0xd0   :  { %911 = vmatpush.bf16.msra.mxu0 %v3397_v7  ;;  %924 = vmatpush.bf16.msra.mxu1 %v3392_v63 }
  0xd1   :  { %937 = vmatpush.bf16.msra.mxu2 %v3400_v11  ;;  %950 = vmatpush.bf16.msra.mxu3 %v3402_v15 }
  0xd4   :  { %912 = vmatpush.bf16.msra.mxu0 %v3420_v38  ;;  %925 = vmatpush.bf16.msra.mxu1 %v3408_v25 }
  0xd5   :  { %938 = vmatpush.bf16.msra.mxu2 %v3424_v41  ;;  %951 = vmatpush.bf16.msra.mxu3 %v3426_v42 }
  0xd8   :  { %913 = vmatpush.bf16.msra.mxu0 %v3432_v62  ;;  %926 = vmatpush.bf16.msra.mxu1 %v3429_v50 }
  0xd9   :  { %939 = vmatpush.bf16.msra.mxu2 %v3436_v0  ;;  %952 = vmatpush.bf16.msra.mxu3 %v3438_v2  ;;  %v580_v2 = vpop.f32.mrf.mxu3 }
  0xdc   :  { %914 = vmatpush.bf16.msra.mxu0 %v3444_v16  ;;  %927 = vmatpush.bf16.msra.mxu1 %v4766_v28  ;;  %v4777_v28 = vld [vmem:[#allocation64_spill] sm:$0xff]  ;;  %v567_v16 = vpop.f32.mrf.mxu2 }
  0xdd   :  { %940 = vmatpush.bf16.msra.mxu2 %v4767_v44  ;;  %953 = vmatpush.bf16.msra.mxu3 %v4768_v19  ;;  %v4778_v44 = vld [vmem:[#allocation65_spill] sm:$0xff]  ;;  %v4779_v19 = vld [vmem:[#allocation66_spill] sm:$0xff] }
  0xe0   :  { %915 = vmatpush.bf16.msra.mxu0 %v4769_v61  ;;  %928 = vmatpush.bf16.msra.mxu1 %v4770_v54  ;;  %v4780_v61 = vld [vmem:[#allocation67_spill] sm:$0xff]  ;;  %v4781_v54 = vld [vmem:[#allocation68_spill] sm:$0xff] }
  0xe1   :  { %941 = vmatpush.bf16.msra.mxu2 %v4771_v23  ;;  %954 = vmatpush.bf16.msra.mxu3 %v4772_v31  ;;  %v4782_v23 = vld [vmem:[#allocation69_spill] sm:$0xff]  ;;  %v4783_v31 = vld [vmem:[#allocation70_spill] sm:$0xff] }
  0xe4   :  { %916 = vmatpush.bf16.msra.mxu0 %v4773_v43  ;;  %929 = vmatpush.bf16.msra.mxu1 %v4774_v37  ;;  %v4784_v43 = vld [vmem:[#allocation71_spill] sm:$0xff]  ;;  %v541_v37 = vpop.f32.mrf.mxu0  ;;  %v569_v0 = vpop.f32.mrf.mxu2 }
  0xe5   :  { %942 = vmatpush.bf16.msra.mxu2 %v4775_v58  ;;  %955 = vmatpush.bf16.msra.mxu3 %v4776_v36  ;;  %v554_v58 = vpop.f32.mrf.mxu1 }
  0xe8   :  { %917 = vmatpush.bf16.msra.mxu0 %v4777_v28  ;;  %930 = vmatpush.bf16.msra.mxu1 %v4778_v44  ;;  %v582_v44 = vpop.f32.mrf.mxu3 }
  0xe9   :  { %943 = vmatpush.bf16.msra.mxu2 %v4779_v19  ;;  %956 = vmatpush.bf16.msra.mxu3 %v4780_v61 }
  0xec   :  { %918 = vmatpush.bf16.msra.mxu0 %v4781_v54  ;;  %931 = vmatpush.bf16.msra.mxu1 %v4782_v23  ;;  %v543_v36 = vpop.f32.mrf.mxu0 }
  0xed   :  { %944 = vmatpush.bf16.msra.mxu2 %v4783_v31  ;;  %957 = vmatpush.bf16.msra.mxu3 %v4784_v43  ;;  %v556_v28 = vpop.f32.mrf.mxu1 }
 0x14b   :  { %v795_v50 = vpop.f32.mrf.mxu0  ;;  %v808_v19 = vpop.f32.mrf.mxu1 }
 0x14c   :  { %v796_v62 = vadd.f32 %v795_v50, %v541_v37  ;;  %v809_v61 = vadd.f32 %v808_v19, %v554_v58 }
 0x14e   :  { %v838_v42 = vmul.f32 0.5, %v796_v62  ;;  %v842_v54 = vmul.f32 0.5, %v809_v61 }
 0x150   :  { %3002 = vtanh.f32 %v838_v42 }
 0x151   :  { %3004 = vtanh.f32 %v842_v54 }
 0x152   :  { %v821_v23 = vpop.f32.mrf.mxu2  ;;  %v834_v31 = vpop.f32.mrf.mxu3 }
 0x153   :  { %v822_v41 = vadd.f32 %v821_v23, %v567_v16  ;;  %v835_v43 = vadd.f32 %v834_v31, %v580_v2  ;;  %v797_v25 = vpop.f32.mrf.mxu0  ;;  %v810_v38 = vpop.f32.mrf.mxu1  ;;  %v3238_v16 = vmov 0.0  }
 0x154   :  { %v3703_v23 = vsel %vm155_vm0, 1.0, %v3238_v16  ;;  %v4802_v16 = vld [vmem:[#allocation88_spill] sm:$0xff] }
 0x155   :  { %3006 = vtanh.f32 %v822_v41  ;;  %v847_v36 = vmul.f32 0.5, %v835_v43 }
 0x156   :  { %v3003_v15 = vpop.eup %3002 }
 0x157   :  { %v3005_v28 = vpop.eup %3004  ;;  %v840_v0 = vmul.f32 0.5, %v3003_v15  ;;  %3008 = vtanh.f32 %v847_v36  ;;  %v4803_v15 = vld [vmem:[#allocation89_spill] sm:$0xff] }
 0x158   :  { %v844_v44 = vmul.f32 0.5, %v3005_v28  ;;  %v4787_v28 = vld [vmem:[#allocation73_spill] sm:$0xff] }
 0x159   :  { %v841_v11 = vadd.f32 0.5, %v840_v0  ;;  %v4788_v0 = vld [vmem:[#allocation74_spill] sm:$0xff] }
 0x15a   :  { %v845_v50 = vadd.f32 0.5, %v844_v44  ;;  %v823_v19 = vpop.f32.mrf.mxu2  ;;  %v836_v62 = vpop.f32.mrf.mxu3  ;;  %v4789_v44 = vld [vmem:[#allocation75_spill] sm:$0xff] }
 0x15b   :  { %v3007_v61 = vpop.eup %3006  ;;  %v4791_v19 = vld [vmem:[#allocation77_spill] sm:$0xff]  ;;  %v4793_v62 = vld [vmem:[#allocation79_spill] sm:$0xff] }
 0x15c   :  { %v851_v42 = vmul.f32 0.0, %v845_v50  ;;  %v852_v54 = vmul.f32 %v3007_v61, %v841_v11  ;;  %v4786_v11 = vld [vmem:[#allocation72_spill] sm:$0xff] }
 0x15d   :  { %v3009_v37 = vpop.eup %3008  ;;  %v4790_v50 = vld [vmem:[#allocation76_spill] sm:$0xff] }
 0x15e   :  { %v3698_v58 = vadd.f32 %v852_v54, %v851_v42  ;;  %v849_v25 = vmul.f32 0.5, %v3009_v37  ;;  %v4794_v61 = vld [vmem:[#allocation80_spill] sm:$0xff]  ;;  %v4795_v42 = vld [vmem:[#allocation81_spill] sm:$0xff]  ;;  %v4796_v54 = vld [vmem:[#allocation82_spill] sm:$0xff] }
 0x15f   :  { %v4797_v37 = vld [vmem:[#allocation83_spill] sm:$0xff] }
 0x160   :  { %3010 = vtanh.f32 %v3698_v58  ;;  %v850_v38 = vadd.f32 0.5, %v849_v25  ;;  %v4798_v25 = vld [vmem:[#allocation84_spill] sm:$0xff] }
 0x166   :  { %v3011_v41 = vpop.eup %3010 }
 0x167   :  { %v855_v2 = vmul.f32 %v3011_v41, %v850_v38  ;;  %v4799_v38 = vld [vmem:[#allocation85_spill] sm:$0xff]  ;;  %v4800_v41 = vld [vmem:[#allocation86_spill] sm:$0xff] }
 0x169   :  { %v856_v31 = vadd.f32 %v855_v2, %v3659_v55  ;;  %v4792_v55 = vld [vmem:[#allocation78_spill] sm:$0xff]  ;;  %v4801_v2 = vld [vmem:[#allocation87_spill] sm:$0xff] }
 0x16b   :  { %v857_v43 = vadd.f32 %v3703_v23, %v856_v31  ;;  %v4804_v31 = vld [vmem:[#allocation90_spill] sm:$0xff] }
 0x16d   :  { %v858_v36 = vpack.c.bf16 %v857_v43, %v857_v43  ;;  %v4805_v43 = vld [vmem:[#allocation91_spill] sm:$0xff] }
 0x16f   :  { %867 = vmatmul.bf16.vlgmr.msrb.gmra.mxu0 %v858_v36  ;;  %880 = vmatmul.bf16.vlgmr.msrb.gmra.mxu1 %v858_v36 }
 0x170   :  { %893 = vmatmul.bf16.vlgmr.msrb.gmra.mxu2 %v858_v36  ;;  %906 = vmatmul.bf16.vlgmr.msrb.gmra.mxu3 %v858_v36 }
 0x171   :  { %997 = vmatpush.bf16.msrb.mxu0 %v4786_v11  ;;  %1010 = vmatpush.bf16.msrb.mxu1 %v4787_v28 }
 0x172   :  { %1023 = vmatpush.bf16.msrb.mxu2 %v4788_v0  ;;  %1036 = vmatpush.bf16.msrb.mxu3 %v4789_v44 }
 0x175   :  { %998 = vmatpush.bf16.msrb.mxu0 %v4790_v50  ;;  %1011 = vmatpush.bf16.msrb.mxu1 %v4791_v19 }
 0x176   :  { %1024 = vmatpush.bf16.msrb.mxu2 %v4792_v55  ;;  %1037 = vmatpush.bf16.msrb.mxu3 %v4793_v62 }
 0x179   :  { %999 = vmatpush.bf16.msrb.mxu0 %v4794_v61  ;;  %1012 = vmatpush.bf16.msrb.mxu1 %v4795_v42 }
 0x17a   :  { %1025 = vmatpush.bf16.msrb.mxu2 %v4796_v54  ;;  %1038 = vmatpush.bf16.msrb.mxu3 %v4797_v37  ;;  %v4806_v37 = vld [vmem:[#allocation92_spill] sm:$0xff]  ;;  %v4811_v54 = vld [vmem:[#allocation98_spill] sm:$0xff] }
 0x17d   :  { %1000 = vmatpush.bf16.msrb.mxu0 %v4798_v25  ;;  %1013 = vmatpush.bf16.msrb.mxu1 %v4799_v38  ;;  %v4807_v25 = vld [vmem:[#allocation93_spill] sm:$0xff]  ;;  %v4808_v38 = vld [vmem:[#allocation94_spill] sm:$0xff] }
 0x17e   :  { %1026 = vmatpush.bf16.msrb.mxu2 %v4800_v41  ;;  %1039 = vmatpush.bf16.msrb.mxu3 %v4801_v2  ;;  %v4809_v41 = vld [vmem:[#allocation95_spill] sm:$0xff]  ;;  %v4810_v2 = vld [vmem:[#allocation96_spill] sm:$0xff] }
 0x17f   :  { %919 = vmatmul.bf16.vlgmr.msra.gmra.mxu0 %v858_v36  ;;  %932 = vmatmul.bf16.vlgmr.msra.gmra.mxu1 %v858_v36 }
 0x180   :  { %945 = vmatmul.bf16.vlgmr.msra.gmra.mxu2 %v858_v36  ;;  %958 = vmatmul.bf16.vlgmr.msra.gmra.mxu3 %v858_v36  ;;  %v4812_v36 = vld [vmem:[#allocation99_spill] sm:$0xff] }
 0x181   :  { %1001 = vmatpush.bf16.msrb.mxu0 %v4802_v16  ;;  %1014 = vmatpush.bf16.msrb.mxu1 %v4803_v15 }
 0x182   :  { %1027 = vmatpush.bf16.msrb.mxu2 %v4804_v31  ;;  %1040 = vmatpush.bf16.msrb.mxu3 %v4805_v43 }
 0x185   :  { %1002 = vmatpush.bf16.msrb.mxu0 %v4806_v37  ;;  %1015 = vmatpush.bf16.msrb.mxu1 %v4807_v25 }
 0x186   :  { %1028 = vmatpush.bf16.msrb.mxu2 %v4808_v38  ;;  %1041 = vmatpush.bf16.msrb.mxu3 %v4809_v41 }
 0x189   :  { %1003 = vmatpush.bf16.msrb.mxu0 %v4810_v2  ;;  %1016 = vmatpush.bf16.msrb.mxu1 %v4811_v54 }
 0x18a   :  { %1029 = vmatpush.bf16.msrb.mxu2 %v4812_v36  ;;  %1042 = vmatpush.bf16.msrb.mxu3 %v3602_v27 }
 0x18d   :  { %1004 = vmatpush.bf16.msrb.mxu0 %v3607_v5  ;;  %1017 = vmatpush.bf16.msrb.mxu1 %v3610_v3 }
 0x18e   :  { %1030 = vmatpush.bf16.msrb.mxu2 %v3612_v24  ;;  %1043 = vmatpush.bf16.msrb.mxu3 %v3616_v49 }
 0x191   :  { %1070 = vmatpush.bf16.msra.mxu0 %v3281_v4  ;;  %1083 = vmatpush.bf16.msra.mxu1 %v3283_v8 }
 0x192   :  { %1096 = vmatpush.bf16.msra.mxu2 %v3285_v9  ;;  %1109 = vmatpush.bf16.msra.mxu3 %v3288_v13 }
 0x195   :  { %1071 = vmatpush.bf16.msra.mxu0 %v3292_v17  ;;  %1084 = vmatpush.bf16.msra.mxu1 %v3294_v18 }
 0x196   :  { %1097 = vmatpush.bf16.msra.mxu2 %v3297_v22  ;;  %1110 = vmatpush.bf16.msra.mxu3 %v3299_v26 }
 0x199   :  { %1072 = vmatpush.bf16.msra.mxu0 %v3302_v30  ;;  %1085 = vmatpush.bf16.msra.mxu1 %v3306_v34 }
 0x19a   :  { %1098 = vmatpush.bf16.msra.mxu2 %v3308_v35  ;;  %1111 = vmatpush.bf16.msra.mxu3 %v3311_v39 }
 0x19d   :  { %1073 = vmatpush.bf16.msra.mxu0 %v3314_v45  ;;  %1086 = vmatpush.bf16.msra.mxu1 %v3318_v46 }
 0x19e   :  { %1099 = vmatpush.bf16.msra.mxu2 %v3320_v47  ;;  %1112 = vmatpush.bf16.msra.mxu3 %v3323_v51 }
 0x1a1   :  { %1074 = vmatpush.bf16.msra.mxu0 %v3326_v57  ;;  %1087 = vmatpush.bf16.msra.mxu1 %v3330_v59 }
 0x1a2   :  { %1100 = vmatpush.bf16.msra.mxu2 %v3332_v60  ;;  %1113 = vmatpush.bf16.msra.mxu3 %v3338_v1 }
 0x1a5   :  { %1075 = vmatpush.bf16.msra.mxu0 %v3341_v10  ;;  %1088 = vmatpush.bf16.msra.mxu1 %v3345_v12  ;;  %v968_v12 = vpop.permute.xlu0 %967 }
 0x1a6   :  { %1101 = vmatpush.bf16.msra.mxu2 %v3347_v14  ;;  %1114 = vmatpush.bf16.msra.mxu3 %v3352_v20  ;;  %v970_v14 = vmul.f32 %v968_v12, %v3593_v21  ;;  %v4813_v20 = vld [vmem:[#allocation100_spill] sm:$0xff] }
 0x1a7   :  { %v971_v10 = vmul.f32 %v968_v12, %v4813_v20 }
 0x1a9   :  { %1076 = vmatpush.bf16.msra.mxu0 %v3358_v29  ;;  %1089 = vmatpush.bf16.msra.mxu1 %v3362_v32 }
 0x1aa   :  { %1102 = vmatpush.bf16.msra.mxu2 %v3364_v33  ;;  %1115 = vmatpush.bf16.msra.mxu3 %v3367_v40 }
 0x1ad   :  { %1077 = vmatpush.bf16.msra.mxu0 %v3371_v48  ;;  %1090 = vmatpush.bf16.msra.mxu1 %v3375_v52  ;;  %v4814_v48 = vld [vmem:[#allocation101_spill] sm:$0xff]  ;;  %v4815_v52 = vld [vmem:[#allocation102_spill] sm:$0xff] }
 0x1ae   :  { %1103 = vmatpush.bf16.msra.mxu2 %v3377_v53  ;;  %1116 = vmatpush.bf16.msra.mxu3 %v3390_v56  ;;  %v972_v40 = vmul.f32 %v968_v12, %v4814_v48  ;;  %v973_v57 = vmul.f32 %v968_v12, %v4815_v52 }
 0x1ec   :  { %v868_v29 = vpop.f32.mrf.mxu0  ;;  %v881_v1 = vpop.f32.mrf.mxu1 }
 0x1ed   :  { %v974_v32 = vadd.f32 %v970_v14, %v868_v29  ;;  %v975_v60 = vadd.f32 %v971_v10, %v881_v1 }
 0x1ef   :  { %v978_v33 = vmul.f32 0.5, %v974_v32  ;;  %v982_v59 = vmul.f32 0.5, %v975_v60 }
 0x1f1   :  { %3012 = vtanh.f32 %v978_v33 }
 0x1f2   :  { %3014 = vtanh.f32 %v982_v59 }
 0x1f3   :  { %v894_v53 = vpop.f32.mrf.mxu2  ;;  %v907_v51 = vpop.f32.mrf.mxu3 }
 0x1f4   :  { %v976_v56 = vadd.f32 %v972_v40, %v894_v53  ;;  %v977_v47 = vadd.f32 %v973_v57, %v907_v51  ;;  %v870_v46 = vpop.f32.mrf.mxu0  ;;  %v883_v21 = vpop.f32.mrf.mxu1 }
 0x1f6   :  { %3016 = vtanh.f32 %v976_v56  ;;  %v987_v20 = vmul.f32 0.5, %v977_v47 }
 0x1f7   :  { %v3013_v45 = vpop.eup %3012 }
 0x1f8   :  { %v3015_v39 = vpop.eup %3014  ;;  %v980_v14 = vmul.f32 0.5, %v3013_v45  ;;  %3018 = vtanh.f32 %v987_v20 }
 0x1f9   :  { %v984_v1 = vmul.f32 0.5, %v3015_v39 }
 0x1fa   :  { %v981_v60 = vadd.f32 0.5, %v980_v14 }
 0x1fb   :  { %v985_v10 = vadd.f32 0.5, %v984_v1  ;;  %v896_v59 = vpop.f32.mrf.mxu2  ;;  %v909_v29 = vpop.f32.mrf.mxu3 }
 0x1fc   :  { %v3017_v32 = vpop.eup %3016  ;;  %v920_v33 = vpop.f32.mrf.mxu0  ;;  %v4819_v59 = vld [vmem:[#allocation44_spill] sm:$0xff]  ;;  %v4820_v29 = vld [vmem:[#allocation46_spill] sm:$0xff] }
 0x1fd   :  { %v933_v12 = vpop.f32.mrf.mxu1  ;;  %v991_v52 = vmul.f32 %v985_v10, %v3647_v6  ;;  %v992_v40 = vmul.f32 %v3017_v32, %v981_v60  ;;  %v4817_v60 = vld [vmem:[#allocation43_spill] sm:$0xff]  ;;  %v4818_v10 = vld [vmem:[#allocation45_spill] sm:$0xff] }
 0x1fe   :  { %v3019_v51 = vpop.eup %3018  ;;  %v4821_v32 = vld [vmem:[#allocation47_spill] sm:$0xff] }
 0x1ff   :  { %v3776_v46 = vadd.f32 %v992_v40, %v991_v52  ;;  %v989_v47 = vmul.f32 0.5, %v3019_v51  ;;  %v4816_v52 = vld [vmem:[#allocation42_spill] sm:$0xff]  ;;  %v4822_v40 = vld [vmem:[#allocation49_spill] sm:$0xff]  ;;  %v4823_v51 = vld [vmem:[#allocation48_spill] sm:$0xff] }
 0x201   :  { %3020 = vtanh.f32 %v3776_v46  ;;  %v990_v53 = vadd.f32 0.5, %v989_v47  ;;  %v4824_v47 = vld [vmem:[#allocation50_spill] sm:$0xff] }
 0x203   :  { %v946_v57 = vpop.f32.mrf.mxu2  ;;  %v959_v45 = vpop.f32.mrf.mxu3 }
 0x204   :  { %v922_v39 = vpop.f32.mrf.mxu0 }
 0x205   :  { %v935_v20 = vpop.f32.mrf.mxu1  ;;  %v4825_v39 = vld [vmem:[#allocation51_spill] sm:$0xff] }
 0x206   :  { %v4826_v20 = vld [vmem:[#allocation52_spill] sm:$0xff] }
 0x207   :  { %v3021_v56 = vpop.eup %3020 }
 0x208   :  { %v3779_v21 = vmul.f32 %v3021_v56, %v990_v53  ;;  %v4827_v53 = vld [vmem:[#allocation53_spill] sm:$0xff]  ;;  %v4828_v56 = vld [vmem:[#allocation54_spill] sm:$0xff] }
 0x20a   :  { %v996_v14 = vpack.c.bf16 %v3779_v21, %v3779_v21 }
 0x20b   :  { %v948_v1 = vpop.f32.mrf.mxu2  ;;  %v961_v6 = vpop.f32.mrf.mxu3 }
 0x20c   :  { %1005 = vmatmul.bf16.vlgmr.msrb.gmra.mxu0 %v996_v14  ;;  %1018 = vmatmul.bf16.vlgmr.msrb.gmra.mxu1 %v996_v14  ;;  %v4830_v1 = vld [vmem:[#allocation56_spill] sm:$0xff]  ;;  %v4831_v6 = vld [vmem:[#allocation57_spill] sm:$0xff] }
 0x20d   :  { %1031 = vmatmul.bf16.vlgmr.msrb.gmra.mxu2 %v996_v14  ;;  %1044 = vmatmul.bf16.vlgmr.msrb.gmra.mxu3 %v996_v14  ;;  %v4829_v14 = vld [vmem:[#allocation55_spill] sm:$0xff] }
 0x20e   :  { %1122 = vmatpush.bf16.msrb.mxu0 %v3397_v7  ;;  %1135 = vmatpush.bf16.msrb.mxu1 %v3392_v63 }
 0x20f   :  { %1148 = vmatpush.bf16.msrb.mxu2 %v4816_v52  ;;  %1161 = vmatpush.bf16.msrb.mxu3 %v4817_v60 }
 0x212   :  { %1123 = vmatpush.bf16.msrb.mxu0 %v4818_v10  ;;  %1136 = vmatpush.bf16.msrb.mxu1 %v4819_v59 }
 0x213   :  { %1149 = vmatpush.bf16.msrb.mxu2 %v4820_v29  ;;  %1162 = vmatpush.bf16.msrb.mxu3 %v4821_v32  ;;  %v4832_v32 = vld [vmem:[#allocation58_spill] sm:$0xff] }
 0x216   :  { %1124 = vmatpush.bf16.msrb.mxu0 %v4822_v40  ;;  %1137 = vmatpush.bf16.msrb.mxu1 %v4823_v51  ;;  %v4833_v40 = vld [vmem:[#allocation59_spill] sm:$0xff]  ;;  %v4834_v51 = vld [vmem:[#allocation60_spill] sm:$0xff] }
 0x217   :  { %1150 = vmatpush.bf16.msrb.mxu2 %v4824_v47  ;;  %1163 = vmatpush.bf16.msrb.mxu3 %v4825_v39  ;;  %v4835_v47 = vld [vmem:[#allocation61_spill] sm:$0xff]  ;;  %v4836_v39 = vld [vmem:[#allocation62_spill] sm:$0xff] }
 0x21a   :  { %1125 = vmatpush.bf16.msrb.mxu0 %v4826_v20  ;;  %1138 = vmatpush.bf16.msrb.mxu1 %v4827_v53  ;;  %v4837_v20 = vld [vmem:[#allocation63_spill] sm:$0xff]  ;;  %v4838_v53 = vld [vmem:[#allocation64_spill] sm:$0xff] }
 0x21b   :  { %1151 = vmatpush.bf16.msrb.mxu2 %v4828_v56  ;;  %1164 = vmatpush.bf16.msrb.mxu3 %v4829_v14  ;;  %v4839_v56 = vld [vmem:[#allocation65_spill] sm:$0xff]  ;;  %v4840_v14 = vld [vmem:[#allocation66_spill] sm:$0xff] }
 0x21e   :  { %1126 = vmatpush.bf16.msrb.mxu0 %v4830_v1  ;;  %1139 = vmatpush.bf16.msrb.mxu1 %v4831_v6  ;;  %v4841_v1 = vld [vmem:[#allocation67_spill] sm:$0xff]  ;;  %v4842_v6 = vld [vmem:[#allocation68_spill] sm:$0xff] }
 0x21f   :  { %1152 = vmatpush.bf16.msrb.mxu2 %v4832_v32  ;;  %1165 = vmatpush.bf16.msrb.mxu3 %v4833_v40  ;;  %v4843_v32 = vld [vmem:[#allocation69_spill] sm:$0xff]  ;;  %v4844_v40 = vld [vmem:[#allocation70_spill] sm:$0xff] }
 0x222   :  { %1127 = vmatpush.bf16.msrb.mxu0 %v4834_v51  ;;  %1140 = vmatpush.bf16.msrb.mxu1 %v4835_v47  ;;  %v4845_v51 = vld [vmem:[#allocation71_spill] sm:$0xff] }
 0x223   :  { %1153 = vmatpush.bf16.msrb.mxu2 %v4836_v39  ;;  %1166 = vmatpush.bf16.msrb.mxu3 %v4837_v20  ;;  %v2836_v20 = vld [vmem:[%s4474_s0 + $0x10] sm:$0xff] }
 0x224   :  { %1178 = vperm.xlu1 %2989, %v2836_v20  }
 0x226   :  { %1128 = vmatpush.bf16.msrb.mxu0 %v4838_v53  ;;  %1141 = vmatpush.bf16.msrb.mxu1 %v4839_v56 }
 0x227   :  { %1154 = vmatpush.bf16.msrb.mxu2 %v4840_v14  ;;  %1167 = vmatpush.bf16.msrb.mxu3 %v4841_v1 }
 0x22a   :  { %1129 = vmatpush.bf16.msrb.mxu0 %v4842_v6  ;;  %1142 = vmatpush.bf16.msrb.mxu1 %v4843_v32  ;;  %v2837_v32 = vld [vmem:[%s4474_s0 + $0x18] sm:$0xff] }
 0x22b   :  { %1155 = vmatpush.bf16.msrb.mxu2 %v4844_v40  ;;  %1168 = vmatpush.bf16.msrb.mxu3 %v4845_v51 }
 0x22c   :  { %1389 = vperm.xlu1 %2989, %v2837_v32  }
 0x289   :  { %v1006_v53 = vpop.f32.mrf.mxu0  ;;  %v1019_v39 = vpop.f32.mrf.mxu1 }
 0x28a   :  { %v1007_v56 = vadd.f32 %v1006_v53, %v920_v33  ;;  %v1020_v47 = vadd.f32 %v1019_v39, %v933_v12  ;;  %v2841_v33 = vld [vmem:[%s4474_s0 + $0x38] sm:$0xff] }
 0x28b   :  { %2233 = vperm.xlu1 %2989, %v2841_v33  }
 0x28c   :  { %v1049_v14 = vmul.f32 0.5, %v1007_v56  ;;  %v1053_v29 = vmul.f32 0.5, %v1020_v47 }
 0x28e   :  { %3022 = vtanh.f32 %v1049_v14 }
 0x28f   :  { %3024 = vtanh.f32 %v1053_v29 }
 0x290   :  { %v1032_v40 = vpop.f32.mrf.mxu2  ;;  %v1045_v51 = vpop.f32.mrf.mxu3 }
 0x291   :  { %v1033_v6 = vadd.f32 %v1032_v40, %v946_v57  ;;  %v1046_v1 = vadd.f32 %v1045_v51, %v959_v45  ;;  %v1008_v59 = vpop.f32.mrf.mxu0  ;;  %v1021_v10 = vpop.f32.mrf.mxu1 }
 0x293   :  { %3026 = vtanh.f32 %v1033_v6  ;;  %v1058_v20 = vmul.f32 0.5, %v1046_v1 }
 0x294   :  { %v3023_v60 = vpop.eup %3022 }
 0x295   :  { %v3025_v12 = vpop.eup %3024  ;;  %v1051_v47 = vmul.f32 0.5, %v3023_v60  ;;  %3028 = vtanh.f32 %v1058_v20 }
 0x296   :  { %v1055_v39 = vmul.f32 0.5, %v3025_v12  ;;  %v4848_v12 = vld [vmem:[#allocation84_spill] sm:$0xff] }
 0x297   :  { %v1052_v53 = vadd.f32 0.5, %v1051_v47  ;;  %v4849_v47 = vld [vmem:[#allocation85_spill] sm:$0xff] }
 0x298   :  { %v1056_v29 = vadd.f32 0.5, %v1055_v39  ;;  %v1034_v32 = vpop.f32.mrf.mxu2  ;;  %v1047_v56 = vpop.f32.mrf.mxu3  ;;  %v4850_v39 = vld [vmem:[#allocation86_spill] sm:$0xff] }
 0x299   :  { %v3027_v57 = vpop.eup %3026  ;;  %v4853_v32 = vld [vmem:[#allocation19_spill] sm:$0xff]  ;;  %v4854_v56 = vld [vmem:[#allocation20_spill] sm:$0xff] }
 0x29a   :  { %v1062_v45 = vmul.f32 %v1056_v29, %v3698_v58  ;;  %v1063_v10 = vmul.f32 %v3027_v57, %v1052_v53  ;;  %v4846_v58 = vld [vmem:[#allocation82_spill] sm:$0xff]  ;;  %v4851_v53 = vld [vmem:[#allocation87_spill] sm:$0xff]  ;;  %v4855_v57 = vld [vmem:[#allocation21_spill] sm:$0xff] }
 0x29b   :  { %v3029_v59 = vpop.eup %3028  ;;  %v4852_v29 = vld [vmem:[#allocation18_spill] sm:$0xff] }
 0x29c   :  { %v3825_v40 = vadd.f32 %v1063_v10, %v1062_v45  ;;  %v1060_v51 = vmul.f32 0.5, %v3029_v59  ;;  %v4856_v45 = vld [vmem:[#allocation22_spill] sm:$0xff]  ;;  %v4857_v10 = vld [vmem:[#allocation23_spill] sm:$0xff]  ;;  %v4858_v59 = vld [vmem:[#allocation24_spill] sm:$0xff] }
 0x29e   :  { %3030 = vtanh.f32 %v3825_v40  ;;  %v1061_v14 = vadd.f32 0.5, %v1060_v51  ;;  %v4859_v51 = vld [vmem:[#allocation25_spill] sm:$0xff] }
 0x2a4   :  { %v3031_v1 = vpop.eup %3030 }
 0x2a5   :  { %v1066_v60 = vmul.f32 %v3031_v1, %v1061_v14  ;;  %v4860_v14 = vld [vmem:[#allocation26_spill] sm:$0xff]  ;;  %v4861_v1 = vld [vmem:[#allocation27_spill] sm:$0xff] }
 0x2a7   :  { %v1067_v6 = vadd.f32 %v1066_v60, %v3779_v21  ;;  %v4847_v21 = vld [vmem:[#allocation83_spill] sm:$0xff]  ;;  %v4862_v60 = vld [vmem:[#allocation28_spill] sm:$0xff] }
 0x2a9   :  { %v1068_v20 = vadd.f32 %v3703_v23, %v1067_v6  ;;  %v4863_v6 = vld [vmem:[#allocation29_spill] sm:$0xff] }
 0x2ab   :  { %v1069_v33 = vpack.c.bf16 %v1068_v20, %v1068_v20  ;;  %v4864_v20 = vld [vmem:[#allocation31_spill] sm:$0xff] }
 0x2ad   :  { %1078 = vmatmul.bf16.vlgmr.msra.gmra.mxu0 %v1069_v33  ;;  %1091 = vmatmul.bf16.vlgmr.msra.gmra.mxu1 %v1069_v33 }
 0x2ae   :  { %1104 = vmatmul.bf16.vlgmr.msra.gmra.mxu2 %v1069_v33  ;;  %1117 = vmatmul.bf16.vlgmr.msra.gmra.mxu3 %v1069_v33 }
 0x2af   :  { %1208 = vmatpush.bf16.msra.mxu0 %v4786_v11  ;;  %1221 = vmatpush.bf16.msra.mxu1 %v4787_v28 }
 0x2b0   :  { %1234 = vmatpush.bf16.msra.mxu2 %v4788_v0  ;;  %1247 = vmatpush.bf16.msra.mxu3 %v4789_v44 }
 0x2b3   :  { %1209 = vmatpush.bf16.msra.mxu0 %v4790_v50  ;;  %1222 = vmatpush.bf16.msra.mxu1 %v4791_v19 }
 0x2b4   :  { %1235 = vmatpush.bf16.msra.mxu2 %v4792_v55  ;;  %1248 = vmatpush.bf16.msra.mxu3 %v4793_v62 }
 0x2b7   :  { %1210 = vmatpush.bf16.msra.mxu0 %v4794_v61  ;;  %1223 = vmatpush.bf16.msra.mxu1 %v4795_v42 }
 0x2b8   :  { %1236 = vmatpush.bf16.msra.mxu2 %v4846_v58  ;;  %1249 = vmatpush.bf16.msra.mxu3 %v4847_v21 }
 0x2bb   :  { %1211 = vmatpush.bf16.msra.mxu0 %v4848_v12  ;;  %1224 = vmatpush.bf16.msra.mxu1 %v4849_v47 }
 0x2bc   :  { %1237 = vmatpush.bf16.msra.mxu2 %v4850_v39  ;;  %1250 = vmatpush.bf16.msra.mxu3 %v4851_v53 }
 0x2bd   :  { %1130 = vmatmul.bf16.vlgmr.msrb.gmra.mxu0 %v1069_v33  ;;  %1143 = vmatmul.bf16.vlgmr.msrb.gmra.mxu1 %v1069_v33 }
 0x2be   :  { %1156 = vmatmul.bf16.vlgmr.msrb.gmra.mxu2 %v1069_v33  ;;  %1169 = vmatmul.bf16.vlgmr.msrb.gmra.mxu3 %v1069_v33  ;;  %v4865_v33 = vld [vmem:[#allocation32_spill] sm:$0xff] }
 0x2bf   :  { %1212 = vmatpush.bf16.msra.mxu0 %v4802_v16  ;;  %1225 = vmatpush.bf16.msra.mxu1 %v4803_v15 }
 0x2c0   :  { %1238 = vmatpush.bf16.msra.mxu2 %v4804_v31  ;;  %1251 = vmatpush.bf16.msra.mxu3 %v4805_v43 }
 0x2c3   :  { %1213 = vmatpush.bf16.msra.mxu0 %v4806_v37  ;;  %1226 = vmatpush.bf16.msra.mxu1 %v4807_v25 }
 0x2c4   :  { %1239 = vmatpush.bf16.msra.mxu2 %v4808_v38  ;;  %1252 = vmatpush.bf16.msra.mxu3 %v4809_v41 }
 0x2c7   :  { %1214 = vmatpush.bf16.msra.mxu0 %v4810_v2  ;;  %1227 = vmatpush.bf16.msra.mxu1 %v4811_v54 }
 0x2c8   :  { %1240 = vmatpush.bf16.msra.mxu2 %v4812_v36  ;;  %1253 = vmatpush.bf16.msra.mxu3 %v3602_v27 }
 0x2cb   :  { %1215 = vmatpush.bf16.msra.mxu0 %v3607_v5  ;;  %1228 = vmatpush.bf16.msra.mxu1 %v3610_v3 }
 0x2cc   :  { %1241 = vmatpush.bf16.msra.mxu2 %v3612_v24  ;;  %1254 = vmatpush.bf16.msra.mxu3 %v3616_v49 }
 0x2cf   :  { %1281 = vmatpush.bf16.msrb.mxu0 %v3281_v4  ;;  %1294 = vmatpush.bf16.msrb.mxu1 %v3283_v8 }
 0x2d0   :  { %1307 = vmatpush.bf16.msrb.mxu2 %v3285_v9  ;;  %1320 = vmatpush.bf16.msrb.mxu3 %v3288_v13 }
 0x2d3   :  { %1282 = vmatpush.bf16.msrb.mxu0 %v3292_v17  ;;  %1295 = vmatpush.bf16.msrb.mxu1 %v3294_v18 }
 0x2d4   :  { %1308 = vmatpush.bf16.msrb.mxu2 %v3297_v22  ;;  %1321 = vmatpush.bf16.msrb.mxu3 %v3299_v26 }
 0x2d7   :  { %1283 = vmatpush.bf16.msrb.mxu0 %v3302_v30  ;;  %1296 = vmatpush.bf16.msrb.mxu1 %v3306_v34 }
 0x2d8   :  { %1309 = vmatpush.bf16.msrb.mxu2 %v3308_v35  ;;  %1322 = vmatpush.bf16.msrb.mxu3 %v4852_v29 }
 0x2db   :  { %1284 = vmatpush.bf16.msrb.mxu0 %v4853_v32  ;;  %1297 = vmatpush.bf16.msrb.mxu1 %v4854_v56 }
 0x2dc   :  { %1310 = vmatpush.bf16.msrb.mxu2 %v4855_v57  ;;  %1323 = vmatpush.bf16.msrb.mxu3 %v4856_v45  ;;  %v4866_v57 = vld [vmem:[#allocation33_spill] sm:$0xff]  ;;  %v4867_v45 = vld [vmem:[#allocation34_spill] sm:$0xff] }
 0x2df   :  { %1285 = vmatpush.bf16.msrb.mxu0 %v4857_v10  ;;  %1298 = vmatpush.bf16.msrb.mxu1 %v4858_v59  ;;  %v4868_v10 = vld [vmem:[#allocation35_spill] sm:$0xff]  ;;  %v4869_v59 = vld [vmem:[#allocation36_spill] sm:$0xff] }
 0x2e0   :  { %1311 = vmatpush.bf16.msrb.mxu2 %v4859_v51  ;;  %1324 = vmatpush.bf16.msrb.mxu3 %v4860_v14  ;;  %v4870_v51 = vld [vmem:[#allocation37_spill] sm:$0xff]  ;;  %v4871_v14 = vld [vmem:[#allocation38_spill] sm:$0xff] }
 0x2e3   :  { %1286 = vmatpush.bf16.msrb.mxu0 %v4861_v1  ;;  %1299 = vmatpush.bf16.msrb.mxu1 %v4862_v60  ;;  %v4872_v1 = vld [vmem:[#allocation39_spill] sm:$0xff]  ;;  %v1179_v60 = vpop.permute.xlu1 %1178 }
 0x2e4   :  { %1312 = vmatpush.bf16.msrb.mxu2 %v4863_v6  ;;  %1325 = vmatpush.bf16.msrb.mxu3 %v4864_v20  ;;  %v4873_v6 = vld [vmem:[#allocation97_spill] sm:$0xff]  ;;  %v4874_v20 = vld [vmem:[#allocation100_spill] sm:$0xff] }
 0x2e5   :  { %v1181_v56 = vmul.f32 %v1179_v60, %v4873_v6  ;;  %v1182_v32 = vmul.f32 %v1179_v60, %v4874_v20 }
 0x2e7   :  { %1287 = vmatpush.bf16.msrb.mxu0 %v4865_v33  ;;  %1300 = vmatpush.bf16.msrb.mxu1 %v4866_v57 }
 0x2e8   :  { %1313 = vmatpush.bf16.msrb.mxu2 %v4867_v45  ;;  %1326 = vmatpush.bf16.msrb.mxu3 %v4868_v10 }
 0x2eb   :  { %1288 = vmatpush.bf16.msrb.mxu0 %v4869_v59  ;;  %1301 = vmatpush.bf16.msrb.mxu1 %v4870_v51  ;;  %v1183_v59 = vmul.f32 %v1179_v60, %v4814_v48  ;;  %v4875_v51 = vld [vmem:[#allocation102_spill] sm:$0xff] }
 0x2ec   :  { %1314 = vmatpush.bf16.msrb.mxu2 %v4871_v14  ;;  %1327 = vmatpush.bf16.msrb.mxu3 %v4872_v1  ;;  %v1184_v10 = vmul.f32 %v1179_v60, %v4875_v51 }
 0x32a   :  { %v1079_v33 = vpop.f32.mrf.mxu0  ;;  %v1092_v29 = vpop.f32.mrf.mxu1 }
 0x32b   :  { %v1185_v57 = vadd.f32 %v1181_v56, %v1079_v33  ;;  %v1186_v35 = vadd.f32 %v1182_v32, %v1092_v29 }
 0x32d   :  { %v1189_v45 = vmul.f32 0.5, %v1185_v57  ;;  %v1193_v34 = vmul.f32 0.5, %v1186_v35 }
 0x32f   :  { %3032 = vtanh.f32 %v1189_v45 }
 0x330   :  { %3034 = vtanh.f32 %v1193_v34 }
 0x331   :  { %v1105_v14 = vpop.f32.mrf.mxu2  ;;  %v1118_v30 = vpop.f32.mrf.mxu3 }
 0x332   :  { %v1187_v1 = vadd.f32 %v1183_v59, %v1105_v14  ;;  %v1188_v26 = vadd.f32 %v1184_v10, %v1118_v30  ;;  %v1081_v22 = vpop.f32.mrf.mxu0  ;;  %v1094_v6 = vpop.f32.mrf.mxu1 }
 0x334   :  { %3036 = vtanh.f32 %v1187_v1  ;;  %v1198_v20 = vmul.f32 0.5, %v1188_v26 }
 0x335   :  { %v3033_v18 = vpop.eup %3032 }
 0x336   :  { %v3035_v17 = vpop.eup %3034  ;;  %v1191_v56 = vmul.f32 0.5, %v3033_v18  ;;  %3038 = vtanh.f32 %v1198_v20 }
 0x337   :  { %v1195_v29 = vmul.f32 0.5, %v3035_v17 }
 0x338   :  { %v1192_v35 = vadd.f32 0.5, %v1191_v56 }
 0x339   :  { %v1196_v32 = vadd.f32 0.5, %v1195_v29  ;;  %v1107_v34 = vpop.f32.mrf.mxu2  ;;  %v1120_v57 = vpop.f32.mrf.mxu3 }
 0x33a   :  { %v3037_v45 = vpop.eup %3036  ;;  %v1131_v33 = vpop.f32.mrf.mxu0  ;;  %v4879_v34 = vld [vmem:[#allocation46_spill] sm:$0xff]  ;;  %v4880_v57 = vld [vmem:[#allocation47_spill] sm:$0xff] }
 0x33b   :  { %v1144_v60 = vpop.f32.mrf.mxu1  ;;  %v1202_v51 = vmul.f32 %v1196_v32, %v3776_v46  ;;  %v1203_v59 = vmul.f32 %v3037_v45, %v1192_v35  ;;  %v4877_v35 = vld [vmem:[#allocation45_spill] sm:$0xff]  ;;  %v4878_v32 = vld [vmem:[#allocation44_spill] sm:$0xff] }
 0x33c   :  { %v3039_v30 = vpop.eup %3038  ;;  %v4881_v45 = vld [vmem:[#allocation49_spill] sm:$0xff] }
 0x33d   :  { %v3899_v22 = vadd.f32 %v1203_v59, %v1202_v51  ;;  %v1200_v26 = vmul.f32 0.5, %v3039_v30  ;;  %v4876_v51 = vld [vmem:[#allocation43_spill] sm:$0xff]  ;;  %v4882_v59 = vld [vmem:[#allocation48_spill] sm:$0xff]  ;;  %v4883_v30 = vld [vmem:[#allocation50_spill] sm:$0xff] }
 0x33f   :  { %3040 = vtanh.f32 %v3899_v22  ;;  %v1201_v1 = vadd.f32 0.5, %v1200_v26  ;;  %v4884_v26 = vld [vmem:[#allocation51_spill] sm:$0xff] }
 0x341   :  { %v1157_v10 = vpop.f32.mrf.mxu2  ;;  %v1170_v18 = vpop.f32.mrf.mxu3 }
 0x342   :  { %v1133_v17 = vpop.f32.mrf.mxu0 }
 0x343   :  { %v1146_v14 = vpop.f32.mrf.mxu1  ;;  %v4885_v17 = vld [vmem:[#allocation52_spill] sm:$0xff] }
 0x344   :  { %v4886_v14 = vld [vmem:[#allocation53_spill] sm:$0xff] }
 0x345   :  { %v3041_v6 = vpop.eup %3040 }
 0x346   :  { %v3902_v20 = vmul.f32 %v3041_v6, %v1201_v1  ;;  %v4887_v1 = vld [vmem:[#allocation54_spill] sm:$0xff]  ;;  %v4888_v6 = vld [vmem:[#allocation55_spill] sm:$0xff] }
 0x348   :  { %v1207_v56 = vpack.c.bf16 %v3902_v20, %v3902_v20 }
 0x349   :  { %v1159_v29 = vpop.f32.mrf.mxu2  ;;  %v1172_v46 = vpop.f32.mrf.mxu3 }
 0x34a   :  { %1216 = vmatmul.bf16.vlgmr.msra.gmra.mxu0 %v1207_v56  ;;  %1229 = vmatmul.bf16.vlgmr.msra.gmra.mxu1 %v1207_v56  ;;  %v4890_v29 = vld [vmem:[#allocation57_spill] sm:$0xff]  ;;  %v4891_v46 = vld [vmem:[#allocation58_spill] sm:$0xff] }
 0x34b   :  { %1242 = vmatmul.bf16.vlgmr.msra.gmra.mxu2 %v1207_v56  ;;  %1255 = vmatmul.bf16.vlgmr.msra.gmra.mxu3 %v1207_v56  ;;  %v4889_v56 = vld [vmem:[#allocation56_spill] sm:$0xff] }
 0x34c   :  { %1333 = vmatpush.bf16.msra.mxu0 %v3397_v7  ;;  %1346 = vmatpush.bf16.msra.mxu1 %v3392_v63 }
 0x34d   :  { %1359 = vmatpush.bf16.msra.mxu2 %v4816_v52  ;;  %1372 = vmatpush.bf16.msra.mxu3 %v4876_v51 }
 0x350   :  { %1334 = vmatpush.bf16.msra.mxu0 %v4877_v35  ;;  %1347 = vmatpush.bf16.msra.mxu1 %v4878_v32 }
 0x351   :  { %1360 = vmatpush.bf16.msra.mxu2 %v4879_v34  ;;  %1373 = vmatpush.bf16.msra.mxu3 %v4880_v57 }
 0x354   :  { %1335 = vmatpush.bf16.msra.mxu0 %v4881_v45  ;;  %1348 = vmatpush.bf16.msra.mxu1 %v4882_v59  ;;  %v4892_v45 = vld [vmem:[#allocation59_spill] sm:$0xff]  ;;  %v4893_v59 = vld [vmem:[#allocation60_spill] sm:$0xff] }
 0x355   :  { %1361 = vmatpush.bf16.msra.mxu2 %v4883_v30  ;;  %1374 = vmatpush.bf16.msra.mxu3 %v4884_v26  ;;  %v4894_v30 = vld [vmem:[#allocation61_spill] sm:$0xff]  ;;  %v4895_v26 = vld [vmem:[#allocation62_spill] sm:$0xff] }
 0x358   :  { %1336 = vmatpush.bf16.msra.mxu0 %v4885_v17  ;;  %1349 = vmatpush.bf16.msra.mxu1 %v4886_v14  ;;  %v4896_v17 = vld [vmem:[#allocation63_spill] sm:$0xff]  ;;  %v4897_v14 = vld [vmem:[#allocation64_spill] sm:$0xff] }
 0x359   :  { %1362 = vmatpush.bf16.msra.mxu2 %v4887_v1  ;;  %1375 = vmatpush.bf16.msra.mxu3 %v4888_v6  ;;  %v4898_v1 = vld [vmem:[#allocation65_spill] sm:$0xff]  ;;  %v4899_v6 = vld [vmem:[#allocation66_spill] sm:$0xff] }
 0x35c   :  { %1337 = vmatpush.bf16.msra.mxu0 %v4889_v56  ;;  %1350 = vmatpush.bf16.msra.mxu1 %v4890_v29  ;;  %v4900_v56 = vld [vmem:[#allocation67_spill] sm:$0xff]  ;;  %v4901_v29 = vld [vmem:[#allocation68_spill] sm:$0xff] }
 0x35d   :  { %1363 = vmatpush.bf16.msra.mxu2 %v4891_v46  ;;  %1376 = vmatpush.bf16.msra.mxu3 %v4892_v45  ;;  %v4902_v46 = vld [vmem:[#allocation69_spill] sm:$0xff]  ;;  %v4903_v45 = vld [vmem:[#allocation70_spill] sm:$0xff] }
 0x360   :  { %1338 = vmatpush.bf16.msra.mxu0 %v4893_v59  ;;  %1351 = vmatpush.bf16.msra.mxu1 %v4894_v30  ;;  %v4904_v59 = vld [vmem:[#allocation71_spill] sm:$0xff] }
 0x361   :  { %1364 = vmatpush.bf16.msra.mxu2 %v4895_v26  ;;  %1377 = vmatpush.bf16.msra.mxu3 %v4896_v17 }
 0x364   :  { %1339 = vmatpush.bf16.msra.mxu0 %v4897_v14  ;;  %1352 = vmatpush.bf16.msra.mxu1 %v4898_v1 }
 0x365   :  { %1365 = vmatpush.bf16.msra.mxu2 %v4899_v6  ;;  %1378 = vmatpush.bf16.msra.mxu3 %v4900_v56 }
 0x368   :  { %1340 = vmatpush.bf16.msra.mxu0 %v4901_v29  ;;  %1353 = vmatpush.bf16.msra.mxu1 %v4902_v46 }
 0x369   :  { %1366 = vmatpush.bf16.msra.mxu2 %v4903_v45  ;;  %1379 = vmatpush.bf16.msra.mxu3 %v4904_v59 }
 0x3c7   :  { %v1217_v30 = vpop.f32.mrf.mxu0  ;;  %v1230_v26 = vpop.f32.mrf.mxu1 }
 0x3c8   :  { %v1218_v57 = vadd.f32 %v1217_v30, %v1131_v33  ;;  %v1231_v17 = vadd.f32 %v1230_v26, %v1144_v60 }
 0x3ca   :  { %v1260_v34 = vmul.f32 0.5, %v1218_v57  ;;  %v1264_v14 = vmul.f32 0.5, %v1231_v17 }
 0x3cc   :  { %3042 = vtanh.f32 %v1260_v34 }
 0x3cd   :  { %3044 = vtanh.f32 %v1264_v14 }
 0x3ce   :  { %v1243_v1 = vpop.f32.mrf.mxu2  ;;  %v1256_v6 = vpop.f32.mrf.mxu3 }
 0x3cf   :  { %v1244_v32 = vadd.f32 %v1243_v1, %v1157_v10  ;;  %v1257_v56 = vadd.f32 %v1256_v6, %v1170_v18  ;;  %v1219_v35 = vpop.f32.mrf.mxu0  ;;  %v1232_v29 = vpop.f32.mrf.mxu1  ;;  %v4909_v1 = vld [vmem:[#allocation15_spill] sm:$0xff]  ;;  %v4910_v6 = vld [vmem:[#allocation16_spill] sm:$0xff] }
 0x3d0   :  { %v4912_v29 = vld [vmem:[#allocation18_spill] sm:$0xff] }
 0x3d1   :  { %3046 = vtanh.f32 %v1244_v32  ;;  %v1269_v46 = vmul.f32 0.5, %v1257_v56  ;;  %v4911_v56 = vld [vmem:[#allocation17_spill] sm:$0xff] }
 0x3d2   :  { %v3043_v51 = vpop.eup %3042 }
 0x3d3   :  { %v3045_v45 = vpop.eup %3044  ;;  %v1262_v52 = vmul.f32 0.5, %v3043_v51  ;;  %3048 = vtanh.f32 %v1269_v46  ;;  %v4913_v46 = vld [vmem:[#allocation19_spill] sm:$0xff] }
 0x3d4   :  { %v1266_v59 = vmul.f32 0.5, %v3045_v45 }
 0x3d5   :  { %v1263_v63 = vadd.f32 0.5, %v1262_v52 }
 0x3d6   :  { %v1267_v33 = vadd.f32 0.5, %v1266_v59  ;;  %v1245_v60 = vpop.f32.mrf.mxu2  ;;  %v1258_v57 = vpop.f32.mrf.mxu3  ;;  %v4908_v59 = vld [vmem:[#allocation14_spill] sm:$0xff] }
 0x3d7   :  { %v3047_v30 = vpop.eup %3046  ;;  %v4915_v60 = vld [vmem:[#allocation21_spill] sm:$0xff]  ;;  %v4916_v57 = vld [vmem:[#allocation22_spill] sm:$0xff] }
 0x3d8   :  { %v1273_v34 = vmul.f32 %v1267_v33, %v3825_v40  ;;  %v1274_v26 = vmul.f32 %v3047_v30, %v1263_v63  ;;  %v4905_v63 = vld [vmem:[#allocation11_spill] sm:$0xff]  ;;  %v4906_v40 = vld [vmem:[#allocation12_spill] sm:$0xff] }
 0x3d9   :  { %v3049_v17 = vpop.eup %3048  ;;  %v4914_v33 = vld [vmem:[#allocation20_spill] sm:$0xff]  ;;  %v4917_v30 = vld [vmem:[#allocation23_spill] sm:$0xff] }
 0x3da   :  { %v3939_v10 = vadd.f32 %v1274_v26, %v1273_v34  ;;  %v1271_v18 = vmul.f32 0.5, %v3049_v17  ;;  %v4918_v34 = vld [vmem:[#allocation24_spill] sm:$0xff]  ;;  %v4919_v26 = vld [vmem:[#allocation25_spill] sm:$0xff]  ;;  %v4920_v17 = vld [vmem:[#allocation26_spill] sm:$0xff] }
 0x3dc   :  { %3050 = vtanh.f32 %v3939_v10  ;;  %v1272_v35 = vadd.f32 0.5, %v1271_v18  ;;  %v4921_v18 = vld [vmem:[#allocation27_spill] sm:$0xff] }
 0x3e2   :  { %v3051_v32 = vpop.eup %3050 }
 0x3e3   :  { %v1277_v14 = vmul.f32 %v3051_v32, %v1272_v35  ;;  %v4922_v35 = vld [vmem:[#allocation28_spill] sm:$0xff]  ;;  %v4923_v32 = vld [vmem:[#allocation29_spill] sm:$0xff] }
 0x3e5   :  { %v1278_v51 = vadd.f32 %v1277_v14, %v3902_v20  ;;  %v4907_v20 = vld [vmem:[#allocation13_spill] sm:$0xff]  ;;  %v4924_v14 = vld [vmem:[#allocation31_spill] sm:$0xff] }
 0x3e7   :  { %v1279_v52 = vadd.f32 %v3703_v23, %v1278_v51  ;;  %v4925_v51 = vld [vmem:[#allocation32_spill] sm:$0xff] }
 0x3e9   :  { %v1280_v45 = vpack.c.bf16 %v1279_v52, %v1279_v52  ;;  %v4926_v52 = vld [vmem:[#allocation33_spill] sm:$0xff] }
 0x3eb   :  { %1289 = vmatmul.bf16.vlgmr.msrb.gmra.mxu0 %v1280_v45  ;;  %1302 = vmatmul.bf16.vlgmr.msrb.gmra.mxu1 %v1280_v45 }
 0x3ec   :  { %1315 = vmatmul.bf16.vlgmr.msrb.gmra.mxu2 %v1280_v45  ;;  %1328 = vmatmul.bf16.vlgmr.msrb.gmra.mxu3 %v1280_v45 }
 0x3ed   :  { %1419 = vmatpush.bf16.msrb.mxu0 %v4786_v11  ;;  %1432 = vmatpush.bf16.msrb.mxu1 %v4787_v28 }
 0x3ee   :  { %1445 = vmatpush.bf16.msrb.mxu2 %v4788_v0  ;;  %1458 = vmatpush.bf16.msrb.mxu3 %v4789_v44 }
 0x3f1   :  { %1420 = vmatpush.bf16.msrb.mxu0 %v4790_v50  ;;  %1433 = vmatpush.bf16.msrb.mxu1 %v4791_v19 }
 0x3f2   :  { %1446 = vmatpush.bf16.msrb.mxu2 %v4792_v55  ;;  %1459 = vmatpush.bf16.msrb.mxu3 %v4793_v62 }
 0x3f5   :  { %1421 = vmatpush.bf16.msrb.mxu0 %v4794_v61  ;;  %1434 = vmatpush.bf16.msrb.mxu1 %v4795_v42 }
 0x3f6   :  { %1447 = vmatpush.bf16.msrb.mxu2 %v4846_v58  ;;  %1460 = vmatpush.bf16.msrb.mxu3 %v4847_v21 }
 0x3f9   :  { %1422 = vmatpush.bf16.msrb.mxu0 %v4848_v12  ;;  %1435 = vmatpush.bf16.msrb.mxu1 %v4849_v47 }
 0x3fa   :  { %1448 = vmatpush.bf16.msrb.mxu2 %v4850_v39  ;;  %1461 = vmatpush.bf16.msrb.mxu3 %v4851_v53 }
 0x3fb   :  { %1341 = vmatmul.bf16.vlgmr.msra.gmra.mxu0 %v1280_v45  ;;  %1354 = vmatmul.bf16.vlgmr.msra.gmra.mxu1 %v1280_v45 }
 0x3fc   :  { %1367 = vmatmul.bf16.vlgmr.msra.gmra.mxu2 %v1280_v45  ;;  %1380 = vmatmul.bf16.vlgmr.msra.gmra.mxu3 %v1280_v45  ;;  %v4927_v45 = vld [vmem:[#allocation34_spill] sm:$0xff] }
 0x3fd   :  { %1423 = vmatpush.bf16.msrb.mxu0 %v4802_v16  ;;  %1436 = vmatpush.bf16.msrb.mxu1 %v4803_v15 }
 0x3fe   :  { %1449 = vmatpush.bf16.msrb.mxu2 %v4804_v31  ;;  %1462 = vmatpush.bf16.msrb.mxu3 %v4805_v43 }
 0x401   :  { %1424 = vmatpush.bf16.msrb.mxu0 %v4806_v37  ;;  %1437 = vmatpush.bf16.msrb.mxu1 %v4807_v25 }
 0x402   :  { %1450 = vmatpush.bf16.msrb.mxu2 %v4808_v38  ;;  %1463 = vmatpush.bf16.msrb.mxu3 %v4809_v41 }
 0x405   :  { %1425 = vmatpush.bf16.msrb.mxu0 %v4810_v2  ;;  %1438 = vmatpush.bf16.msrb.mxu1 %v4811_v54 }
 0x406   :  { %1451 = vmatpush.bf16.msrb.mxu2 %v4812_v36  ;;  %1464 = vmatpush.bf16.msrb.mxu3 %v3602_v27 }
 0x409   :  { %1426 = vmatpush.bf16.msrb.mxu0 %v3607_v5  ;;  %1439 = vmatpush.bf16.msrb.mxu1 %v3610_v3 }
 0x40a   :  { %1452 = vmatpush.bf16.msrb.mxu2 %v3612_v24  ;;  %1465 = vmatpush.bf16.msrb.mxu3 %v3616_v49 }
 0x40d   :  { %1492 = vmatpush.bf16.msra.mxu0 %v3281_v4  ;;  %1505 = vmatpush.bf16.msra.mxu1 %v3283_v8 }
 0x40e   :  { %1518 = vmatpush.bf16.msra.mxu2 %v3285_v9  ;;  %1531 = vmatpush.bf16.msra.mxu3 %v3288_v13 }
 0x411   :  { %1493 = vmatpush.bf16.msra.mxu0 %v4905_v63  ;;  %1506 = vmatpush.bf16.msra.mxu1 %v4906_v40 }
 0x412   :  { %1519 = vmatpush.bf16.msra.mxu2 %v4907_v20  ;;  %1532 = vmatpush.bf16.msra.mxu3 %v4908_v59 }
 0x415   :  { %1494 = vmatpush.bf16.msra.mxu0 %v4909_v1  ;;  %1507 = vmatpush.bf16.msra.mxu1 %v4910_v6 }
 0x416   :  { %1520 = vmatpush.bf16.msra.mxu2 %v4911_v56  ;;  %1533 = vmatpush.bf16.msra.mxu3 %v4912_v29 }
 0x419   :  { %1495 = vmatpush.bf16.msra.mxu0 %v4913_v46  ;;  %1508 = vmatpush.bf16.msra.mxu1 %v4914_v33 }
 0x41a   :  { %1521 = vmatpush.bf16.msra.mxu2 %v4915_v60  ;;  %1534 = vmatpush.bf16.msra.mxu3 %v4916_v57 }
 0x41d   :  { %1496 = vmatpush.bf16.msra.mxu0 %v4917_v30  ;;  %1509 = vmatpush.bf16.msra.mxu1 %v4918_v34  ;;  %v4928_v30 = vld [vmem:[#allocation35_spill] sm:$0xff]  ;;  %v4929_v34 = vld [vmem:[#allocation36_spill] sm:$0xff] }
 0x41e   :  { %1522 = vmatpush.bf16.msra.mxu2 %v4919_v26  ;;  %1535 = vmatpush.bf16.msra.mxu3 %v4920_v17  ;;  %v4930_v26 = vld [vmem:[#allocation37_spill] sm:$0xff]  ;;  %v4931_v17 = vld [vmem:[#allocation38_spill] sm:$0xff] }
 0x421   :  { %1497 = vmatpush.bf16.msra.mxu0 %v4921_v18  ;;  %1510 = vmatpush.bf16.msra.mxu1 %v4922_v35  ;;  %v4932_v18 = vld [vmem:[#allocation39_spill] sm:$0xff]  ;;  %v1390_v35 = vpop.permute.xlu1 %1389 }
 0x422   :  { %1523 = vmatpush.bf16.msra.mxu2 %v4923_v32  ;;  %1536 = vmatpush.bf16.msra.mxu3 %v4924_v14  ;;  %v4933_v32 = vld [vmem:[#allocation97_spill] sm:$0xff]  ;;  %v4934_v14 = vld [vmem:[#allocation100_spill] sm:$0xff] }
 0x423   :  { %v1392_v57 = vmul.f32 %v1390_v35, %v4933_v32  ;;  %v1393_v60 = vmul.f32 %v1390_v35, %v4934_v14 }
 0x425   :  { %1498 = vmatpush.bf16.msra.mxu0 %v4925_v51  ;;  %1511 = vmatpush.bf16.msra.mxu1 %v4926_v52 }
 0x426   :  { %1524 = vmatpush.bf16.msra.mxu2 %v4927_v45  ;;  %1537 = vmatpush.bf16.msra.mxu3 %v4928_v30 }
 0x429   :  { %1499 = vmatpush.bf16.msra.mxu0 %v4929_v34  ;;  %1512 = vmatpush.bf16.msra.mxu1 %v4930_v26  ;;  %v1394_v34 = vmul.f32 %v1390_v35, %v4814_v48  ;;  %v4935_v26 = vld [vmem:[#allocation102_spill] sm:$0xff] }
 0x42a   :  { %1525 = vmatpush.bf16.msra.mxu2 %v4931_v17  ;;  %1538 = vmatpush.bf16.msra.mxu3 %v4932_v18  ;;  %v1395_v30 = vmul.f32 %v1390_v35, %v4935_v26 }
 0x468   :  { %v1290_v51 = vpop.f32.mrf.mxu0  ;;  %v1303_v33 = vpop.f32.mrf.mxu1 }
 0x469   :  { %v1396_v52 = vadd.f32 %v1392_v57, %v1290_v51  ;;  %v1397_v46 = vadd.f32 %v1393_v60, %v1303_v33 }
 0x46b   :  { %v1400_v45 = vmul.f32 0.5, %v1396_v52  ;;  %v1404_v29 = vmul.f32 0.5, %v1397_v46 }
 0x46d   :  { %3052 = vtanh.f32 %v1400_v45 }
 0x46e   :  { %3054 = vtanh.f32 %v1404_v29 }
 0x46f   :  { %v1316_v17 = vpop.f32.mrf.mxu2  ;;  %v1329_v56 = vpop.f32.mrf.mxu3 }
 0x470   :  { %v1398_v18 = vadd.f32 %v1394_v34, %v1316_v17  ;;  %v1399_v6 = vadd.f32 %v1395_v30, %v1329_v56  ;;  %v1292_v1 = vpop.f32.mrf.mxu0  ;;  %v1305_v32 = vpop.f32.mrf.mxu1 }
 0x472   :  { %3056 = vtanh.f32 %v1398_v18  ;;  %v1409_v14 = vmul.f32 0.5, %v1399_v6 }
 0x473   :  { %v3053_v59 = vpop.eup %3052 }
 0x474   :  { %v3055_v20 = vpop.eup %3054  ;;  %v1402_v57 = vmul.f32 0.5, %v3053_v59  ;;  %3058 = vtanh.f32 %v1409_v14 }
 0x475   :  { %v1406_v33 = vmul.f32 0.5, %v3055_v20 }
 0x476   :  { %v1403_v46 = vadd.f32 0.5, %v1402_v57 }
 0x477   :  { %v1407_v60 = vadd.f32 0.5, %v1406_v33  ;;  %v1318_v29 = vpop.f32.mrf.mxu2  ;;  %v1331_v51 = vpop.f32.mrf.mxu3 }
 0x478   :  { %v3057_v52 = vpop.eup %3056  ;;  %v1342_v45 = vpop.f32.mrf.mxu0  ;;  %v4940_v29 = vld [vmem:[#allocation45_spill] sm:$0xff]  ;;  %v4941_v51 = vld [vmem:[#allocation44_spill] sm:$0xff] }
 0x479   :  { %v1355_v35 = vpop.f32.mrf.mxu1  ;;  %v1413_v26 = vmul.f32 %v1407_v60, %v3899_v22  ;;  %v1414_v34 = vmul.f32 %v3057_v52, %v1403_v46  ;;  %v4938_v46 = vld [vmem:[#allocation42_spill] sm:$0xff]  ;;  %v4939_v60 = vld [vmem:[#allocation43_spill] sm:$0xff] }
 0x47a   :  { %v3059_v56 = vpop.eup %3058  ;;  %v4942_v52 = vld [vmem:[#allocation46_spill] sm:$0xff] }
 0x47b   :  { %v4013_v1 = vadd.f32 %v1414_v34, %v1413_v26  ;;  %v1411_v6 = vmul.f32 0.5, %v3059_v56  ;;  %v4937_v26 = vld [vmem:[#allocation40_spill] sm:$0xff]  ;;  %v4943_v34 = vld [vmem:[#allocation47_spill] sm:$0xff]  ;;  %v4944_v56 = vld [vmem:[#allocation49_spill] sm:$0xff] }
 0x47d   :  { %4936 = vst [vmem:[#allocation30_spill] sm:$0xff] %v4013_v1  ;;  %3060 = vtanh.f32 %v4013_v1  ;;  %v1412_v18 = vadd.f32 0.5, %v1411_v6  ;;  %v4945_v6 = vld [vmem:[#allocation48_spill] sm:$0xff] }
 0x47f   :  { %v1368_v30 = vpop.f32.mrf.mxu2  ;;  %v1381_v59 = vpop.f32.mrf.mxu3 }
 0x480   :  { %v1344_v20 = vpop.f32.mrf.mxu0 }
 0x481   :  { %v1357_v17 = vpop.f32.mrf.mxu1  ;;  %v4946_v20 = vld [vmem:[#allocation50_spill] sm:$0xff] }
 0x482   :  { %v4947_v17 = vld [vmem:[#allocation51_spill] sm:$0xff] }
 0x483   :  { %v3061_v32 = vpop.eup %3060 }
 0x484   :  { %v4016_v14 = vmul.f32 %v3061_v32, %v1412_v18  ;;  %v4948_v18 = vld [vmem:[#allocation52_spill] sm:$0xff]  ;;  %v4949_v32 = vld [vmem:[#allocation53_spill] sm:$0xff] }
 0x486   :  { %v1418_v57 = vpack.c.bf16 %v4016_v14, %v4016_v14 }
 0x487   :  { %v1370_v33 = vpop.f32.mrf.mxu2  ;;  %v1383_v22 = vpop.f32.mrf.mxu3 }
 0x488   :  { %1427 = vmatmul.bf16.vlgmr.msrb.gmra.mxu0 %v1418_v57  ;;  %1440 = vmatmul.bf16.vlgmr.msrb.gmra.mxu1 %v1418_v57  ;;  %v4951_v33 = vld [vmem:[#allocation55_spill] sm:$0xff]  ;;  %v4952_v22 = vld [vmem:[#allocation56_spill] sm:$0xff] }
 0x489   :  { %1453 = vmatmul.bf16.vlgmr.msrb.gmra.mxu2 %v1418_v57  ;;  %1466 = vmatmul.bf16.vlgmr.msrb.gmra.mxu3 %v1418_v57  ;;  %v4950_v57 = vld [vmem:[#allocation54_spill] sm:$0xff] }
 0x48a   :  { %1544 = vmatpush.bf16.msrb.mxu0 %v3397_v7  ;;  %1557 = vmatpush.bf16.msrb.mxu1 %v4937_v26 }
 0x48b   :  { %1570 = vmatpush.bf16.msrb.mxu2 %v4938_v46  ;;  %1583 = vmatpush.bf16.msrb.mxu3 %v4939_v60 }
 0x48e   :  { %1545 = vmatpush.bf16.msrb.mxu0 %v4940_v29  ;;  %1558 = vmatpush.bf16.msrb.mxu1 %v4941_v51 }
 0x48f   :  { %1571 = vmatpush.bf16.msrb.mxu2 %v4942_v52  ;;  %1584 = vmatpush.bf16.msrb.mxu3 %v4943_v34  ;;  %v4953_v52 = vld [vmem:[#allocation57_spill] sm:$0xff]  ;;  %v4954_v34 = vld [vmem:[#allocation58_spill] sm:$0xff] }
 0x492   :  { %1546 = vmatpush.bf16.msrb.mxu0 %v4944_v56  ;;  %1559 = vmatpush.bf16.msrb.mxu1 %v4945_v6  ;;  %v4955_v56 = vld [vmem:[#allocation59_spill] sm:$0xff]  ;;  %v4956_v6 = vld [vmem:[#allocation60_spill] sm:$0xff] }
 0x493   :  { %1572 = vmatpush.bf16.msrb.mxu2 %v4946_v20  ;;  %1585 = vmatpush.bf16.msrb.mxu3 %v4947_v17  ;;  %v4957_v20 = vld [vmem:[#allocation61_spill] sm:$0xff]  ;;  %v4958_v17 = vld [vmem:[#allocation62_spill] sm:$0xff] }
 0x496   :  { %1547 = vmatpush.bf16.msrb.mxu0 %v4948_v18  ;;  %1560 = vmatpush.bf16.msrb.mxu1 %v4949_v32  ;;  %v4959_v18 = vld [vmem:[#allocation63_spill] sm:$0xff]  ;;  %v4960_v32 = vld [vmem:[#allocation64_spill] sm:$0xff] }
 0x497   :  { %1573 = vmatpush.bf16.msrb.mxu2 %v4950_v57  ;;  %1586 = vmatpush.bf16.msrb.mxu3 %v4951_v33  ;;  %v4961_v57 = vld [vmem:[#allocation65_spill] sm:$0xff]  ;;  %v4962_v33 = vld [vmem:[#allocation66_spill] sm:$0xff] }
 0x49a   :  { %1548 = vmatpush.bf16.msrb.mxu0 %v4952_v22  ;;  %1561 = vmatpush.bf16.msrb.mxu1 %v4953_v52  ;;  %v4963_v22 = vld [vmem:[#allocation67_spill] sm:$0xff]  ;;  %v4964_v52 = vld [vmem:[#allocation68_spill] sm:$0xff] }
 0x49b   :  { %1574 = vmatpush.bf16.msrb.mxu2 %v4954_v34  ;;  %1587 = vmatpush.bf16.msrb.mxu3 %v4955_v56  ;;  %v4965_v34 = vld [vmem:[#allocation69_spill] sm:$0xff]  ;;  %v4966_v56 = vld [vmem:[#allocation70_spill] sm:$0xff] }
 0x49e   :  { %1549 = vmatpush.bf16.msrb.mxu0 %v4956_v6  ;;  %1562 = vmatpush.bf16.msrb.mxu1 %v4957_v20  ;;  %v4967_v6 = vld [vmem:[#allocation71_spill] sm:$0xff] }
 0x49f   :  { %1575 = vmatpush.bf16.msrb.mxu2 %v4958_v17  ;;  %1588 = vmatpush.bf16.msrb.mxu3 %v4959_v18 }
 0x4a2   :  { %1550 = vmatpush.bf16.msrb.mxu0 %v4960_v32  ;;  %1563 = vmatpush.bf16.msrb.mxu1 %v4961_v57 }
 0x4a3   :  { %1576 = vmatpush.bf16.msrb.mxu2 %v4962_v33  ;;  %1589 = vmatpush.bf16.msrb.mxu3 %v4963_v22 }
 0x4a6   :  { %1551 = vmatpush.bf16.msrb.mxu0 %v4964_v52  ;;  %1564 = vmatpush.bf16.msrb.mxu1 %v4965_v34 }
 0x4a7   :  { %1577 = vmatpush.bf16.msrb.mxu2 %v4966_v56  ;;  %1590 = vmatpush.bf16.msrb.mxu3 %v4967_v6 }
 0x505   :  { %v1428_v20 = vpop.f32.mrf.mxu0  ;;  %v1441_v17 = vpop.f32.mrf.mxu1 }
 0x506   :  { %v1429_v51 = vadd.f32 %v1428_v20, %v1342_v45  ;;  %v1442_v18 = vadd.f32 %v1441_v17, %v1355_v35 }
 0x508   :  { %v1471_v29 = vmul.f32 0.5, %v1429_v51  ;;  %v1475_v32 = vmul.f32 0.5, %v1442_v18 }
 0x50a   :  { %3062 = vtanh.f32 %v1471_v29 }
 0x50b   :  { %3064 = vtanh.f32 %v1475_v32  ;;  %v4971_v32 = vld [vmem:[#allocation16_spill] sm:$0xff] }
 0x50c   :  { %v1454_v57 = vpop.f32.mrf.mxu2  ;;  %v1467_v33 = vpop.f32.mrf.mxu3 }
 0x50d   :  { %v1455_v60 = vadd.f32 %v1454_v57, %v1368_v30  ;;  %v1468_v22 = vadd.f32 %v1467_v33, %v1381_v59  ;;  %v1430_v46 = vpop.f32.mrf.mxu0  ;;  %v1443_v52 = vpop.f32.mrf.mxu1  ;;  %v2838_v59 = vld [vmem:[%s4474_s0 + $0x20] sm:$0xff]  ;;  %v4972_v57 = vld [vmem:[#allocation17_spill] sm:$0xff] }
 0x50e   :  { %1600 = vperm.xlu2 %2990, %v2838_v59   ;;  %v4973_v33 = vld [vmem:[#allocation18_spill] sm:$0xff]  ;;  %v4982_v59 = vld [vmem:[#allocation27_spill] sm:$0xff] }
 0x50f   :  { %3066 = vtanh.f32 %v1455_v60  ;;  %v1480_v34 = vmul.f32 0.5, %v1468_v22  ;;  %v2839_v60 = vld [vmem:[%s4474_s0 + $0x28] sm:$0xff] }
 0x510   :  { %v3063_v26 = vpop.eup %3062  ;;  %v4974_v22 = vld [vmem:[#allocation19_spill] sm:$0xff] }
 0x511   :  { %v3065_v56 = vpop.eup %3064  ;;  %v1473_v7 = vmul.f32 0.5, %v3063_v26  ;;  %3068 = vtanh.f32 %v1480_v34 }
 0x512   :  { %v1477_v6 = vmul.f32 0.5, %v3065_v56  ;;  %v4969_v56 = vld [vmem:[#allocation14_spill] sm:$0xff] }
 0x513   :  { %v1474_v1 = vadd.f32 0.5, %v1473_v7 }
 0x514   :  { %v1478_v45 = vadd.f32 0.5, %v1477_v6  ;;  %v1456_v35 = vpop.f32.mrf.mxu2  ;;  %v1469_v51 = vpop.f32.mrf.mxu3  ;;  %v4970_v6 = vld [vmem:[#allocation15_spill] sm:$0xff] }
 0x515   :  { %v3067_v20 = vpop.eup %3066  ;;  %v4976_v35 = vld [vmem:[#allocation21_spill] sm:$0xff]  ;;  %v4977_v51 = vld [vmem:[#allocation22_spill] sm:$0xff] }
 0x516   :  { %v1484_v29 = vmul.f32 %v1478_v45, %v3939_v10  ;;  %v1485_v17 = vmul.f32 %v3067_v20, %v1474_v1  ;;  %1811 = vperm.xlu2 %2990, %v2839_v60   ;;  %v4975_v45 = vld [vmem:[#allocation20_spill] sm:$0xff]  ;;  %v4978_v20 = vld [vmem:[#allocation23_spill] sm:$0xff] }
 0x517   :  { %v3069_v18 = vpop.eup %3068  ;;  %v4986_v60 = vld [vmem:[#allocation32_spill] sm:$0xff] }
 0x518   :  { %v4053_v30 = vadd.f32 %v1485_v17, %v1484_v29  ;;  %v1482_v26 = vmul.f32 0.5, %v3069_v18  ;;  %v4979_v29 = vld [vmem:[#allocation24_spill] sm:$0xff]  ;;  %v4980_v17 = vld [vmem:[#allocation25_spill] sm:$0xff]  ;;  %v4981_v18 = vld [vmem:[#allocation26_spill] sm:$0xff] }
 0x51a   :  { %3070 = vtanh.f32 %v4053_v30  ;;  %v1483_v46 = vadd.f32 0.5, %v1482_v26  ;;  %v4983_v26 = vld [vmem:[#allocation28_spill] sm:$0xff] }
 0x520   :  { %v3071_v7 = vpop.eup %3070 }
 0x521   :  { %v1488_v52 = vmul.f32 %v3071_v7, %v1483_v46  ;;  %v4984_v46 = vld [vmem:[#allocation29_spill] sm:$0xff]  ;;  %v4985_v7 = vld [vmem:[#allocation31_spill] sm:$0xff] }
 0x523   :  { %v1489_v10 = vadd.f32 %v1488_v52, %v4016_v14  ;;  %v4968_v14 = vld [vmem:[#allocation13_spill] sm:$0xff] }
 0x524   :  { %v4987_v52 = vld [vmem:[#allocation33_spill] sm:$0xff] }
 0x525   :  { %v1490_v1 = vadd.f32 %v3703_v23, %v1489_v10  ;;  %v4988_v10 = vld [vmem:[#allocation34_spill] sm:$0xff] }
 0x527   :  { %v1491_v34 = vpack.c.bf16 %v1490_v1, %v1490_v1  ;;  %v4989_v1 = vld [vmem:[#allocation35_spill] sm:$0xff] }
 0x529   :  { %1500 = vmatmul.bf16.vlgmr.msra.gmra.mxu0 %v1491_v34  ;;  %1513 = vmatmul.bf16.vlgmr.msra.gmra.mxu1 %v1491_v34 }
 0x52a   :  { %1526 = vmatmul.bf16.vlgmr.msra.gmra.mxu2 %v1491_v34  ;;  %1539 = vmatmul.bf16.vlgmr.msra.gmra.mxu3 %v1491_v34 }
 0x52b   :  { %1630 = vmatpush.bf16.msra.mxu0 %v4786_v11  ;;  %1643 = vmatpush.bf16.msra.mxu1 %v4787_v28 }
 0x52c   :  { %1656 = vmatpush.bf16.msra.mxu2 %v4788_v0  ;;  %1669 = vmatpush.bf16.msra.mxu3 %v4789_v44 }
 0x52f   :  { %1631 = vmatpush.bf16.msra.mxu0 %v4790_v50  ;;  %1644 = vmatpush.bf16.msra.mxu1 %v4791_v19 }
 0x530   :  { %1657 = vmatpush.bf16.msra.mxu2 %v4792_v55  ;;  %1670 = vmatpush.bf16.msra.mxu3 %v4793_v62 }
 0x533   :  { %1632 = vmatpush.bf16.msra.mxu0 %v4794_v61  ;;  %1645 = vmatpush.bf16.msra.mxu1 %v4795_v42 }
 0x534   :  { %1658 = vmatpush.bf16.msra.mxu2 %v4846_v58  ;;  %1671 = vmatpush.bf16.msra.mxu3 %v4847_v21 }
 0x537   :  { %1633 = vmatpush.bf16.msra.mxu0 %v4848_v12  ;;  %1646 = vmatpush.bf16.msra.mxu1 %v4849_v47 }
 0x538   :  { %1659 = vmatpush.bf16.msra.mxu2 %v4850_v39  ;;  %1672 = vmatpush.bf16.msra.mxu3 %v4851_v53 }
 0x539   :  { %1552 = vmatmul.bf16.vlgmr.msrb.gmra.mxu0 %v1491_v34  ;;  %1565 = vmatmul.bf16.vlgmr.msrb.gmra.mxu1 %v1491_v34 }
 0x53a   :  { %1578 = vmatmul.bf16.vlgmr.msrb.gmra.mxu2 %v1491_v34  ;;  %1591 = vmatmul.bf16.vlgmr.msrb.gmra.mxu3 %v1491_v34  ;;  %v4990_v34 = vld [vmem:[#allocation36_spill] sm:$0xff] }
 0x53b   :  { %1634 = vmatpush.bf16.msra.mxu0 %v4802_v16  ;;  %1647 = vmatpush.bf16.msra.mxu1 %v4803_v15 }
 0x53c   :  { %1660 = vmatpush.bf16.msra.mxu2 %v4804_v31  ;;  %1673 = vmatpush.bf16.msra.mxu3 %v4805_v43 }
 0x53f   :  { %1635 = vmatpush.bf16.msra.mxu0 %v4806_v37  ;;  %1648 = vmatpush.bf16.msra.mxu1 %v4807_v25 }
 0x540   :  { %1661 = vmatpush.bf16.msra.mxu2 %v4808_v38  ;;  %1674 = vmatpush.bf16.msra.mxu3 %v4809_v41 }
 0x543   :  { %1636 = vmatpush.bf16.msra.mxu0 %v4810_v2  ;;  %1649 = vmatpush.bf16.msra.mxu1 %v4811_v54 }
 0x544   :  { %1662 = vmatpush.bf16.msra.mxu2 %v4812_v36  ;;  %1675 = vmatpush.bf16.msra.mxu3 %v3602_v27 }
 0x547   :  { %1637 = vmatpush.bf16.msra.mxu0 %v3607_v5  ;;  %1650 = vmatpush.bf16.msra.mxu1 %v3610_v3 }
 0x548   :  { %1663 = vmatpush.bf16.msra.mxu2 %v3612_v24  ;;  %1676 = vmatpush.bf16.msra.mxu3 %v3616_v49 }
 0x54b   :  { %1703 = vmatpush.bf16.msrb.mxu0 %v3281_v4  ;;  %1716 = vmatpush.bf16.msrb.mxu1 %v3283_v8 }
 0x54c   :  { %1729 = vmatpush.bf16.msrb.mxu2 %v3285_v9  ;;  %1742 = vmatpush.bf16.msrb.mxu3 %v3288_v13 }
 0x54f   :  { %1704 = vmatpush.bf16.msrb.mxu0 %v4905_v63  ;;  %1717 = vmatpush.bf16.msrb.mxu1 %v4906_v40 }
 0x550   :  { %1730 = vmatpush.bf16.msrb.mxu2 %v4968_v14  ;;  %1743 = vmatpush.bf16.msrb.mxu3 %v4969_v56 }
 0x553   :  { %1705 = vmatpush.bf16.msrb.mxu0 %v4970_v6  ;;  %1718 = vmatpush.bf16.msrb.mxu1 %v4971_v32 }
 0x554   :  { %1731 = vmatpush.bf16.msrb.mxu2 %v4972_v57  ;;  %1744 = vmatpush.bf16.msrb.mxu3 %v4973_v33 }
 0x557   :  { %1706 = vmatpush.bf16.msrb.mxu0 %v4974_v22  ;;  %1719 = vmatpush.bf16.msrb.mxu1 %v4975_v45 }
 0x558   :  { %1732 = vmatpush.bf16.msrb.mxu2 %v4976_v35  ;;  %1745 = vmatpush.bf16.msrb.mxu3 %v4977_v51 }
 0x55b   :  { %1707 = vmatpush.bf16.msrb.mxu0 %v4978_v20  ;;  %1720 = vmatpush.bf16.msrb.mxu1 %v4979_v29 }
 0x55c   :  { %1733 = vmatpush.bf16.msrb.mxu2 %v4980_v17  ;;  %1746 = vmatpush.bf16.msrb.mxu3 %v4981_v18  ;;  %v4991_v17 = vld [vmem:[#allocation37_spill] sm:$0xff]  ;;  %v4992_v18 = vld [vmem:[#allocation38_spill] sm:$0xff] }
 0x55f   :  { %1708 = vmatpush.bf16.msrb.mxu0 %v4982_v59  ;;  %1721 = vmatpush.bf16.msrb.mxu1 %v4983_v26  ;;  %v4993_v59 = vld [vmem:[#allocation39_spill] sm:$0xff] }
 0x560   :  { %1734 = vmatpush.bf16.msrb.mxu2 %v4984_v46  ;;  %1747 = vmatpush.bf16.msrb.mxu3 %v4985_v7  ;;  %v4994_v46 = vld [vmem:[#allocation97_spill] sm:$0xff]  ;;  %v4995_v7 = vld [vmem:[#allocation100_spill] sm:$0xff] }
 0x563   :  { %1709 = vmatpush.bf16.msrb.mxu0 %v4986_v60  ;;  %1722 = vmatpush.bf16.msrb.mxu1 %v4987_v52 }
 0x564   :  { %1735 = vmatpush.bf16.msrb.mxu2 %v4988_v10  ;;  %1748 = vmatpush.bf16.msrb.mxu3 %v4989_v1 }
 0x567   :  { %1710 = vmatpush.bf16.msrb.mxu0 %v4990_v34  ;;  %1723 = vmatpush.bf16.msrb.mxu1 %v4991_v17  ;;  %v4996_v17 = vld [vmem:[#allocation102_spill] sm:$0xff] }
 0x568   :  { %1736 = vmatpush.bf16.msrb.mxu2 %v4992_v18  ;;  %1749 = vmatpush.bf16.msrb.mxu3 %v4993_v59  ;;  %v1601_v26 = vpop.permute.xlu2 %1600 }
 0x569   :  { %v1603_v29 = vmul.f32 %v1601_v26, %v4994_v46  ;;  %v1604_v20 = vmul.f32 %v1601_v26, %v4995_v7  ;;  %v1605_v34 = vmul.f32 %v1601_v26, %v4814_v48  ;;  %v1606_v1 = vmul.f32 %v1601_v26, %v4996_v17  ;;  %v4997_v17 = vld [vmem:[#allocation30_spill] sm:$0xff] }
 0x5a6   :  { %v1501_v60 = vpop.f32.mrf.mxu0  ;;  %v1514_v51 = vpop.f32.mrf.mxu1 }
 0x5a7   :  { %v1607_v52 = vadd.f32 %v1603_v29, %v1501_v60  ;;  %v1608_v35 = vadd.f32 %v1604_v20, %v1514_v51 }
 0x5a9   :  { %v1611_v10 = vmul.f32 0.5, %v1607_v52  ;;  %v1615_v45 = vmul.f32 0.5, %v1608_v35 }
 0x5ab   :  { %3072 = vtanh.f32 %v1611_v10 }
 0x5ac   :  { %3074 = vtanh.f32 %v1615_v45 }
 0x5ad   :  { %v1527_v18 = vpop.f32.mrf.mxu2  ;;  %v1540_v22 = vpop.f32.mrf.mxu3 }
 0x5ae   :  { %v1609_v59 = vadd.f32 %v1605_v34, %v1527_v18  ;;  %v1610_v33 = vadd.f32 %v1606_v1, %v1540_v22  ;;  %v1503_v57 = vpop.f32.mrf.mxu0  ;;  %v1516_v46 = vpop.f32.mrf.mxu1 }
 0x5b0   :  { %3076 = vtanh.f32 %v1609_v59  ;;  %v1620_v7 = vmul.f32 0.5, %v1610_v33 }
 0x5b1   :  { %v3073_v32 = vpop.eup %3072 }
 0x5b2   :  { %v3075_v6 = vpop.eup %3074  ;;  %v1613_v29 = vmul.f32 0.5, %v3073_v32  ;;  %3078 = vtanh.f32 %v1620_v7 }
 0x5b3   :  { %v1617_v51 = vmul.f32 0.5, %v3075_v6 }
 0x5b4   :  { %v1614_v35 = vadd.f32 0.5, %v1613_v29 }
 0x5b5   :  { %v1618_v20 = vadd.f32 0.5, %v1617_v51  ;;  %v1529_v45 = vpop.f32.mrf.mxu2  ;;  %v1542_v60 = vpop.f32.mrf.mxu3 }
 0x5b6   :  { %v3077_v52 = vpop.eup %3076  ;;  %v1553_v10 = vpop.f32.mrf.mxu0  ;;  %v5002_v45 = vld [vmem:[#allocation43_spill] sm:$0xff]  ;;  %v5003_v60 = vld [vmem:[#allocation45_spill] sm:$0xff] }
 0x5b7   :  { %v1566_v26 = vpop.f32.mrf.mxu1  ;;  %v1624_v48 = vmul.f32 %v1618_v20, %v4997_v17  ;;  %v1625_v18 = vmul.f32 %v3077_v52, %v1614_v35  ;;  %v5000_v35 = vld [vmem:[#allocation40_spill] sm:$0xff]  ;;  %v5001_v20 = vld [vmem:[#allocation42_spill] sm:$0xff] }
 0x5b8   :  { %v3079_v22 = vpop.eup %3078  ;;  %v5004_v52 = vld [vmem:[#allocation44_spill] sm:$0xff] }
 0x5b9   :  { %v4133_v57 = vadd.f32 %v1625_v18, %v1624_v48  ;;  %v1622_v33 = vmul.f32 0.5, %v3079_v22  ;;  %v4999_v48 = vld [vmem:[#allocation41_spill] sm:$0xff]  ;;  %v5005_v18 = vld [vmem:[#allocation46_spill] sm:$0xff]  ;;  %v5006_v22 = vld [vmem:[#allocation47_spill] sm:$0xff] }
 0x5bb   :  { %4998 = vst [vmem:[#allocation72_spill] sm:$0xff] %v4133_v57  ;;  %3080 = vtanh.f32 %v4133_v57  ;;  %v1623_v7 = vadd.f32 0.5, %v1622_v33  ;;  %v5007_v33 = vld [vmem:[#allocation49_spill] sm:$0xff] }
 0x5bd   :  { %v1579_v59 = vpop.f32.mrf.mxu2  ;;  %v1592_v32 = vpop.f32.mrf.mxu3 }
 0x5be   :  { %v1555_v6 = vpop.f32.mrf.mxu0 }
 0x5bf   :  { %v1568_v46 = vpop.f32.mrf.mxu1  ;;  %v5008_v6 = vld [vmem:[#allocation48_spill] sm:$0xff] }
 0x5c0   :  { %v5009_v46 = vld [vmem:[#allocation50_spill] sm:$0xff] }
 0x5c1   :  { %v3081_v1 = vpop.eup %3080 }
 0x5c2   :  { %v4136_v34 = vmul.f32 %v3081_v1, %v1623_v7  ;;  %v5010_v7 = vld [vmem:[#allocation51_spill] sm:$0xff]  ;;  %v5011_v1 = vld [vmem:[#allocation52_spill] sm:$0xff] }
 0x5c4   :  { %v1629_v29 = vpack.c.bf16 %v4136_v34, %v4136_v34 }
 0x5c5   :  { %v1581_v51 = vpop.f32.mrf.mxu2  ;;  %v1594_v17 = vpop.f32.mrf.mxu3 }
 0x5c6   :  { %1638 = vmatmul.bf16.vlgmr.msra.gmra.mxu0 %v1629_v29  ;;  %1651 = vmatmul.bf16.vlgmr.msra.gmra.mxu1 %v1629_v29  ;;  %v5013_v51 = vld [vmem:[#allocation54_spill] sm:$0xff]  ;;  %v5014_v17 = vld [vmem:[#allocation55_spill] sm:$0xff] }
 0x5c7   :  { %1664 = vmatmul.bf16.vlgmr.msra.gmra.mxu2 %v1629_v29  ;;  %1677 = vmatmul.bf16.vlgmr.msra.gmra.mxu3 %v1629_v29  ;;  %v5012_v29 = vld [vmem:[#allocation53_spill] sm:$0xff] }
 0x5c8   :  { %1755 = vmatpush.bf16.msra.mxu0 %v4999_v48  ;;  %1768 = vmatpush.bf16.msra.mxu1 %v5000_v35 }
 0x5c9   :  { %1781 = vmatpush.bf16.msra.mxu2 %v5001_v20  ;;  %1794 = vmatpush.bf16.msra.mxu3 %v5002_v45 }
 0x5cc   :  { %1756 = vmatpush.bf16.msra.mxu0 %v5003_v60  ;;  %1769 = vmatpush.bf16.msra.mxu1 %v5004_v52  ;;  %v5015_v52 = vld [vmem:[#allocation56_spill] sm:$0xff] }
 0x5cd   :  { %1782 = vmatpush.bf16.msra.mxu2 %v5005_v18  ;;  %1795 = vmatpush.bf16.msra.mxu3 %v5006_v22  ;;  %v5016_v18 = vld [vmem:[#allocation57_spill] sm:$0xff]  ;;  %v5017_v22 = vld [vmem:[#allocation58_spill] sm:$0xff] }
 0x5d0   :  { %1757 = vmatpush.bf16.msra.mxu0 %v5007_v33  ;;  %1770 = vmatpush.bf16.msra.mxu1 %v5008_v6  ;;  %v5018_v33 = vld [vmem:[#allocation59_spill] sm:$0xff]  ;;  %v5019_v6 = vld [vmem:[#allocation60_spill] sm:$0xff] }
 0x5d1   :  { %1783 = vmatpush.bf16.msra.mxu2 %v5009_v46  ;;  %1796 = vmatpush.bf16.msra.mxu3 %v5010_v7  ;;  %v5020_v46 = vld [vmem:[#allocation61_spill] sm:$0xff]  ;;  %v5021_v7 = vld [vmem:[#allocation62_spill] sm:$0xff] }
 0x5d4   :  { %1758 = vmatpush.bf16.msra.mxu0 %v5011_v1  ;;  %1771 = vmatpush.bf16.msra.mxu1 %v5012_v29  ;;  %v5022_v1 = vld [vmem:[#allocation63_spill] sm:$0xff]  ;;  %v5023_v29 = vld [vmem:[#allocation64_spill] sm:$0xff] }
 0x5d5   :  { %1784 = vmatpush.bf16.msra.mxu2 %v5013_v51  ;;  %1797 = vmatpush.bf16.msra.mxu3 %v5014_v17  ;;  %v5024_v51 = vld [vmem:[#allocation65_spill] sm:$0xff]  ;;  %v5025_v17 = vld [vmem:[#allocation66_spill] sm:$0xff] }
 0x5d8   :  { %1759 = vmatpush.bf16.msra.mxu0 %v5015_v52  ;;  %1772 = vmatpush.bf16.msra.mxu1 %v5016_v18  ;;  %v5026_v52 = vld [vmem:[#allocation67_spill] sm:$0xff]  ;;  %v5027_v18 = vld [vmem:[#allocation68_spill] sm:$0xff] }
 0x5d9   :  { %1785 = vmatpush.bf16.msra.mxu2 %v5017_v22  ;;  %1798 = vmatpush.bf16.msra.mxu3 %v5018_v33  ;;  %v5028_v22 = vld [vmem:[#allocation69_spill] sm:$0xff]  ;;  %v5029_v33 = vld [vmem:[#allocation70_spill] sm:$0xff] }
 0x5dc   :  { %1760 = vmatpush.bf16.msra.mxu0 %v5019_v6  ;;  %1773 = vmatpush.bf16.msra.mxu1 %v5020_v46  ;;  %v5030_v6 = vld [vmem:[#allocation71_spill] sm:$0xff] }
 0x5dd   :  { %1786 = vmatpush.bf16.msra.mxu2 %v5021_v7  ;;  %1799 = vmatpush.bf16.msra.mxu3 %v5022_v1 }
 0x5e0   :  { %1761 = vmatpush.bf16.msra.mxu0 %v5023_v29  ;;  %1774 = vmatpush.bf16.msra.mxu1 %v5024_v51 }
 0x5e1   :  { %1787 = vmatpush.bf16.msra.mxu2 %v5025_v17  ;;  %1800 = vmatpush.bf16.msra.mxu3 %v5026_v52 }
 0x5e4   :  { %1762 = vmatpush.bf16.msra.mxu0 %v5027_v18  ;;  %1775 = vmatpush.bf16.msra.mxu1 %v5028_v22 }
 0x5e5   :  { %1788 = vmatpush.bf16.msra.mxu2 %v5029_v33  ;;  %1801 = vmatpush.bf16.msra.mxu3 %v5030_v6 }
 0x643   :  { %v1639_v46 = vpop.f32.mrf.mxu0  ;;  %v1652_v7 = vpop.f32.mrf.mxu1 }
 0x644   :  { %v1640_v60 = vadd.f32 %v1639_v46, %v1553_v10  ;;  %v1653_v1 = vadd.f32 %v1652_v7, %v1566_v26 }
 0x646   :  { %v1682_v45 = vmul.f32 0.5, %v1640_v60  ;;  %v1686_v29 = vmul.f32 0.5, %v1653_v1 }
 0x648   :  { %3082 = vtanh.f32 %v1682_v45 }
 0x649   :  { %3084 = vtanh.f32 %v1686_v29  ;;  %v5037_v29 = vld [vmem:[#allocation20_spill] sm:$0xff] }
 0x64a   :  { %v1665_v51 = vpop.f32.mrf.mxu2  ;;  %v1678_v17 = vpop.f32.mrf.mxu3 }
 0x64b   :  { %v1666_v20 = vadd.f32 %v1665_v51, %v1579_v59  ;;  %v1679_v52 = vadd.f32 %v1678_v17, %v1592_v32  ;;  %v1641_v35 = vpop.f32.mrf.mxu0  ;;  %v1654_v18 = vpop.f32.mrf.mxu1  ;;  %v5038_v51 = vld [vmem:[#allocation21_spill] sm:$0xff]  ;;  %v5039_v17 = vld [vmem:[#allocation22_spill] sm:$0xff] }
 0x64d   :  { %3086 = vtanh.f32 %v1666_v20  ;;  %v1691_v22 = vmul.f32 0.5, %v1679_v52 }
 0x64e   :  { %v3083_v48 = vpop.eup %3082 }
 0x64f   :  { %v3085_v33 = vpop.eup %3084  ;;  %v1684_v57 = vmul.f32 0.5, %v3083_v48  ;;  %3088 = vtanh.f32 %v1691_v22  ;;  %v5034_v22 = vld [vmem:[#allocation17_spill] sm:$0xff] }
 0x650   :  { %v1688_v6 = vmul.f32 0.5, %v3085_v33  ;;  %v5035_v33 = vld [vmem:[#allocation18_spill] sm:$0xff] }
 0x651   :  { %v1685_v56 = vadd.f32 0.5, %v1684_v57 }
 0x652   :  { %v1689_v10 = vadd.f32 0.5, %v1688_v6  ;;  %v1667_v26 = vpop.f32.mrf.mxu2  ;;  %v1680_v60 = vpop.f32.mrf.mxu3  ;;  %v5036_v6 = vld [vmem:[#allocation19_spill] sm:$0xff] }
 0x653   :  { %v3087_v46 = vpop.eup %3086  ;;  %v5041_v26 = vld [vmem:[#allocation24_spill] sm:$0xff]  ;;  %v5042_v60 = vld [vmem:[#allocation25_spill] sm:$0xff] }
 0x654   :  { %v1695_v45 = vmul.f32 %v1689_v10, %v4053_v30  ;;  %v1696_v7 = vmul.f32 %v3087_v46, %v1685_v56  ;;  %v5031_v30 = vld [vmem:[#allocation14_spill] sm:$0xff]  ;;  %v5032_v56 = vld [vmem:[#allocation15_spill] sm:$0xff] }
 0x655   :  { %v3089_v1 = vpop.eup %3088  ;;  %v5040_v10 = vld [vmem:[#allocation23_spill] sm:$0xff]  ;;  %v5043_v46 = vld [vmem:[#allocation26_spill] sm:$0xff] }
 0x656   :  { %v4173_v59 = vadd.f32 %v1696_v7, %v1695_v45  ;;  %v1693_v32 = vmul.f32 0.5, %v3089_v1  ;;  %v5044_v45 = vld [vmem:[#allocation27_spill] sm:$0xff]  ;;  %v5045_v7 = vld [vmem:[#allocation28_spill] sm:$0xff]  ;;  %v5046_v1 = vld [vmem:[#allocation29_spill] sm:$0xff] }
 0x658   :  { %3090 = vtanh.f32 %v4173_v59  ;;  %v1694_v35 = vadd.f32 0.5, %v1693_v32  ;;  %v5047_v32 = vld [vmem:[#allocation31_spill] sm:$0xff] }
 0x65e   :  { %v3091_v20 = vpop.eup %3090 }
 0x65f   :  { %v1699_v52 = vmul.f32 %v3091_v20, %v1694_v35  ;;  %v5048_v35 = vld [vmem:[#allocation32_spill] sm:$0xff]  ;;  %v5049_v20 = vld [vmem:[#allocation33_spill] sm:$0xff] }
 0x661   :  { %v1700_v48 = vadd.f32 %v1699_v52, %v4136_v34  ;;  %v5033_v34 = vld [vmem:[#allocation16_spill] sm:$0xff]  ;;  %v5050_v52 = vld [vmem:[#allocation34_spill] sm:$0xff] }
 0x663   :  { %v1701_v57 = vadd.f32 %v3703_v23, %v1700_v48  ;;  %v5051_v48 = vld [vmem:[#allocation35_spill] sm:$0xff] }
 0x665   :  { %v1702_v18 = vpack.c.bf16 %v1701_v57, %v1701_v57  ;;  %v5052_v57 = vld [vmem:[#allocation36_spill] sm:$0xff] }
 0x667   :  { %1711 = vmatmul.bf16.vlgmr.msrb.gmra.mxu0 %v1702_v18  ;;  %1724 = vmatmul.bf16.vlgmr.msrb.gmra.mxu1 %v1702_v18 }
 0x668   :  { %1737 = vmatmul.bf16.vlgmr.msrb.gmra.mxu2 %v1702_v18  ;;  %1750 = vmatmul.bf16.vlgmr.msrb.gmra.mxu3 %v1702_v18 }
 0x669   :  { %1841 = vmatpush.bf16.msrb.mxu0 %v4786_v11  ;;  %1854 = vmatpush.bf16.msrb.mxu1 %v4787_v28 }
 0x66a   :  { %1867 = vmatpush.bf16.msrb.mxu2 %v4788_v0  ;;  %1880 = vmatpush.bf16.msrb.mxu3 %v4789_v44 }
 0x66d   :  { %1842 = vmatpush.bf16.msrb.mxu0 %v4790_v50  ;;  %1855 = vmatpush.bf16.msrb.mxu1 %v4791_v19 }
 0x66e   :  { %1868 = vmatpush.bf16.msrb.mxu2 %v4792_v55  ;;  %1881 = vmatpush.bf16.msrb.mxu3 %v4793_v62 }
 0x671   :  { %1843 = vmatpush.bf16.msrb.mxu0 %v4794_v61  ;;  %1856 = vmatpush.bf16.msrb.mxu1 %v4795_v42 }
 0x672   :  { %1869 = vmatpush.bf16.msrb.mxu2 %v4846_v58  ;;  %1882 = vmatpush.bf16.msrb.mxu3 %v4847_v21 }
 0x675   :  { %1844 = vmatpush.bf16.msrb.mxu0 %v4848_v12  ;;  %1857 = vmatpush.bf16.msrb.mxu1 %v4849_v47 }
 0x676   :  { %1870 = vmatpush.bf16.msrb.mxu2 %v4850_v39  ;;  %1883 = vmatpush.bf16.msrb.mxu3 %v4851_v53 }
 0x677   :  { %1763 = vmatmul.bf16.vlgmr.msra.gmra.mxu0 %v1702_v18  ;;  %1776 = vmatmul.bf16.vlgmr.msra.gmra.mxu1 %v1702_v18 }
 0x678   :  { %1789 = vmatmul.bf16.vlgmr.msra.gmra.mxu2 %v1702_v18  ;;  %1802 = vmatmul.bf16.vlgmr.msra.gmra.mxu3 %v1702_v18  ;;  %v5053_v18 = vld [vmem:[#allocation37_spill] sm:$0xff] }
 0x679   :  { %1845 = vmatpush.bf16.msrb.mxu0 %v4802_v16  ;;  %1858 = vmatpush.bf16.msrb.mxu1 %v4803_v15 }
 0x67a   :  { %1871 = vmatpush.bf16.msrb.mxu2 %v4804_v31  ;;  %1884 = vmatpush.bf16.msrb.mxu3 %v4805_v43 }
 0x67d   :  { %1846 = vmatpush.bf16.msrb.mxu0 %v4806_v37  ;;  %1859 = vmatpush.bf16.msrb.mxu1 %v4807_v25 }
 0x67e   :  { %1872 = vmatpush.bf16.msrb.mxu2 %v4808_v38  ;;  %1885 = vmatpush.bf16.msrb.mxu3 %v4809_v41 }
 0x681   :  { %1847 = vmatpush.bf16.msrb.mxu0 %v4810_v2  ;;  %1860 = vmatpush.bf16.msrb.mxu1 %v4811_v54 }
 0x682   :  { %1873 = vmatpush.bf16.msrb.mxu2 %v4812_v36  ;;  %1886 = vmatpush.bf16.msrb.mxu3 %v3602_v27 }
 0x685   :  { %1848 = vmatpush.bf16.msrb.mxu0 %v3607_v5  ;;  %1861 = vmatpush.bf16.msrb.mxu1 %v3610_v3 }
 0x686   :  { %1874 = vmatpush.bf16.msrb.mxu2 %v3612_v24  ;;  %1887 = vmatpush.bf16.msrb.mxu3 %v3616_v49 }
 0x689   :  { %1914 = vmatpush.bf16.msra.mxu0 %v3281_v4  ;;  %1927 = vmatpush.bf16.msra.mxu1 %v3283_v8 }
 0x68a   :  { %1940 = vmatpush.bf16.msra.mxu2 %v3285_v9  ;;  %1953 = vmatpush.bf16.msra.mxu3 %v3288_v13 }
 0x68d   :  { %1915 = vmatpush.bf16.msra.mxu0 %v4905_v63  ;;  %1928 = vmatpush.bf16.msra.mxu1 %v4906_v40 }
 0x68e   :  { %1941 = vmatpush.bf16.msra.mxu2 %v4968_v14  ;;  %1954 = vmatpush.bf16.msra.mxu3 %v5031_v30 }
 0x691   :  { %1916 = vmatpush.bf16.msra.mxu0 %v5032_v56  ;;  %1929 = vmatpush.bf16.msra.mxu1 %v5033_v34 }
 0x692   :  { %1942 = vmatpush.bf16.msra.mxu2 %v5034_v22  ;;  %1955 = vmatpush.bf16.msra.mxu3 %v5035_v33 }
 0x695   :  { %1917 = vmatpush.bf16.msra.mxu0 %v5036_v6  ;;  %1930 = vmatpush.bf16.msra.mxu1 %v5037_v29 }
 0x696   :  { %1943 = vmatpush.bf16.msra.mxu2 %v5038_v51  ;;  %1956 = vmatpush.bf16.msra.mxu3 %v5039_v17 }
 0x699   :  { %1918 = vmatpush.bf16.msra.mxu0 %v5040_v10  ;;  %1931 = vmatpush.bf16.msra.mxu1 %v5041_v26 }
 0x69a   :  { %1944 = vmatpush.bf16.msra.mxu2 %v5042_v60  ;;  %1957 = vmatpush.bf16.msra.mxu3 %v5043_v46  ;;  %v5054_v46 = vld [vmem:[#allocation38_spill] sm:$0xff] }
 0x69d   :  { %1919 = vmatpush.bf16.msra.mxu0 %v5044_v45  ;;  %1932 = vmatpush.bf16.msra.mxu1 %v5045_v7  ;;  %v5055_v45 = vld [vmem:[#allocation39_spill] sm:$0xff]  ;;  %v1812_v7 = vpop.permute.xlu2 %1811 }
 0x69e   :  { %1945 = vmatpush.bf16.msra.mxu2 %v5046_v1  ;;  %1958 = vmatpush.bf16.msra.mxu3 %v5047_v32  ;;  %v5056_v1 = vld [vmem:[#allocation97_spill] sm:$0xff]  ;;  %v5057_v32 = vld [vmem:[#allocation100_spill] sm:$0xff] }
 0x69f   :  { %v1814_v60 = vmul.f32 %v1812_v7, %v5056_v1  ;;  %v1815_v26 = vmul.f32 %v1812_v7, %v5057_v32 }
 0x6a1   :  { %1920 = vmatpush.bf16.msra.mxu0 %v5048_v35  ;;  %1933 = vmatpush.bf16.msra.mxu1 %v5049_v20 }
 0x6a2   :  { %1946 = vmatpush.bf16.msra.mxu2 %v5050_v52  ;;  %1959 = vmatpush.bf16.msra.mxu3 %v5051_v48 }
 0x6a5   :  { %1921 = vmatpush.bf16.msra.mxu0 %v5052_v57  ;;  %1934 = vmatpush.bf16.msra.mxu1 %v5053_v18  ;;  %v5058_v57 = vld [vmem:[#allocation101_spill] sm:$0xff]  ;;  %v5059_v18 = vld [vmem:[#allocation102_spill] sm:$0xff] }
 0x6a6   :  { %1947 = vmatpush.bf16.msra.mxu2 %v5054_v46  ;;  %1960 = vmatpush.bf16.msra.mxu3 %v5055_v45  ;;  %v1816_v48 = vmul.f32 %v1812_v7, %v5058_v57  ;;  %v1817_v29 = vmul.f32 %v1812_v7, %v5059_v18  ;;  %v5060_v18 = vld [vmem:[#allocation72_spill] sm:$0xff] }
 0x6e4   :  { %v1712_v35 = vpop.f32.mrf.mxu0  ;;  %v1725_v10 = vpop.f32.mrf.mxu1 }
 0x6e5   :  { %v1818_v20 = vadd.f32 %v1814_v60, %v1712_v35  ;;  %v1819_v17 = vadd.f32 %v1815_v26, %v1725_v10 }
 0x6e7   :  { %v1822_v52 = vmul.f32 0.5, %v1818_v20  ;;  %v1826_v51 = vmul.f32 0.5, %v1819_v17 }
 0x6e9   :  { %3092 = vtanh.f32 %v1822_v52 }
 0x6ea   :  { %3094 = vtanh.f32 %v1826_v51 }
 0x6eb   :  { %v1738_v46 = vpop.f32.mrf.mxu2  ;;  %v1751_v6 = vpop.f32.mrf.mxu3 }
 0x6ec   :  { %v1820_v45 = vadd.f32 %v1816_v48, %v1738_v46  ;;  %v1821_v33 = vadd.f32 %v1817_v29, %v1751_v6  ;;  %v1714_v22 = vpop.f32.mrf.mxu0  ;;  %v1727_v1 = vpop.f32.mrf.mxu1 }
 0x6ee   :  { %3096 = vtanh.f32 %v1820_v45  ;;  %v1831_v32 = vmul.f32 0.5, %v1821_v33 }
 0x6ef   :  { %v3093_v34 = vpop.eup %3092 }
 0x6f0   :  { %v3095_v56 = vpop.eup %3094  ;;  %v1824_v60 = vmul.f32 0.5, %v3093_v34  ;;  %3098 = vtanh.f32 %v1831_v32 }
 0x6f1   :  { %v1828_v10 = vmul.f32 0.5, %v3095_v56 }
 0x6f2   :  { %v1825_v17 = vadd.f32 0.5, %v1824_v60 }
 0x6f3   :  { %v1829_v26 = vadd.f32 0.5, %v1828_v10  ;;  %v1740_v51 = vpop.f32.mrf.mxu2  ;;  %v1753_v35 = vpop.f32.mrf.mxu3 }
 0x6f4   :  { %v3097_v20 = vpop.eup %3096  ;;  %v1764_v52 = vpop.f32.mrf.mxu0  ;;  %v5065_v51 = vld [vmem:[#allocation43_spill] sm:$0xff]  ;;  %v5066_v35 = vld [vmem:[#allocation45_spill] sm:$0xff] }
 0x6f5   :  { %v1777_v7 = vpop.f32.mrf.mxu1  ;;  %v1835_v57 = vmul.f32 %v1829_v26, %v5060_v18  ;;  %v1836_v46 = vmul.f32 %v3097_v20, %v1825_v17  ;;  %v5063_v17 = vld [vmem:[#allocation40_spill] sm:$0xff]  ;;  %v5064_v26 = vld [vmem:[#allocation42_spill] sm:$0xff] }
 0x6f6   :  { %v3099_v6 = vpop.eup %3098  ;;  %v5067_v20 = vld [vmem:[#allocation44_spill] sm:$0xff] }
 0x6f7   :  { %v4247_v22 = vadd.f32 %v1836_v46, %v1835_v57  ;;  %v1833_v33 = vmul.f32 0.5, %v3099_v6  ;;  %v5062_v57 = vld [vmem:[#allocation41_spill] sm:$0xff]  ;;  %v5068_v46 = vld [vmem:[#allocation46_spill] sm:$0xff]  ;;  %v5069_v6 = vld [vmem:[#allocation47_spill] sm:$0xff] }
 0x6f9   :  { %5061 = vst [vmem:[#allocation73_spill] sm:$0xff] %v4247_v22  ;;  %3100 = vtanh.f32 %v4247_v22  ;;  %v1834_v1 = vadd.f32 0.5, %v1833_v33  ;;  %v5070_v33 = vld [vmem:[#allocation49_spill] sm:$0xff] }
 0x6fb   :  { %v1790_v29 = vpop.f32.mrf.mxu2  ;;  %v1803_v34 = vpop.f32.mrf.mxu3 }
 0x6fc   :  { %v1766_v56 = vpop.f32.mrf.mxu0 }
 0x6fd   :  { %v1779_v45 = vpop.f32.mrf.mxu1  ;;  %v5071_v56 = vld [vmem:[#allocation48_spill] sm:$0xff] }
 0x6fe   :  { %v5072_v45 = vld [vmem:[#allocation50_spill] sm:$0xff] }
 0x6ff   :  { %v3101_v32 = vpop.eup %3100 }
 0x700   :  { %v4250_v48 = vmul.f32 %v3101_v32, %v1834_v1  ;;  %v5073_v1 = vld [vmem:[#allocation51_spill] sm:$0xff]  ;;  %v5074_v32 = vld [vmem:[#allocation52_spill] sm:$0xff] }
 0x702   :  { %v1840_v60 = vpack.c.bf16 %v4250_v48, %v4250_v48 }
 0x703   :  { %v1792_v10 = vpop.f32.mrf.mxu2  ;;  %v1805_v18 = vpop.f32.mrf.mxu3 }
 0x704   :  { %1849 = vmatmul.bf16.vlgmr.msrb.gmra.mxu0 %v1840_v60  ;;  %1862 = vmatmul.bf16.vlgmr.msrb.gmra.mxu1 %v1840_v60  ;;  %v5076_v10 = vld [vmem:[#allocation54_spill] sm:$0xff]  ;;  %v5077_v18 = vld [vmem:[#allocation55_spill] sm:$0xff] }
 0x705   :  { %1875 = vmatmul.bf16.vlgmr.msrb.gmra.mxu2 %v1840_v60  ;;  %1888 = vmatmul.bf16.vlgmr.msrb.gmra.mxu3 %v1840_v60  ;;  %v5075_v60 = vld [vmem:[#allocation53_spill] sm:$0xff] }
 0x706   :  { %1966 = vmatpush.bf16.msrb.mxu0 %v5062_v57  ;;  %1979 = vmatpush.bf16.msrb.mxu1 %v5063_v17 }
 0x707   :  { %1992 = vmatpush.bf16.msrb.mxu2 %v5064_v26  ;;  %2005 = vmatpush.bf16.msrb.mxu3 %v5065_v51 }
 0x70a   :  { %1967 = vmatpush.bf16.msrb.mxu0 %v5066_v35  ;;  %1980 = vmatpush.bf16.msrb.mxu1 %v5067_v20  ;;  %v5078_v20 = vld [vmem:[#allocation56_spill] sm:$0xff] }
 0x70b   :  { %1993 = vmatpush.bf16.msrb.mxu2 %v5068_v46  ;;  %2006 = vmatpush.bf16.msrb.mxu3 %v5069_v6  ;;  %v5079_v46 = vld [vmem:[#allocation57_spill] sm:$0xff]  ;;  %v5080_v6 = vld [vmem:[#allocation58_spill] sm:$0xff] }
 0x70e   :  { %1968 = vmatpush.bf16.msrb.mxu0 %v5070_v33  ;;  %1981 = vmatpush.bf16.msrb.mxu1 %v5071_v56  ;;  %v5081_v33 = vld [vmem:[#allocation59_spill] sm:$0xff]  ;;  %v5082_v56 = vld [vmem:[#allocation60_spill] sm:$0xff] }
 0x70f   :  { %1994 = vmatpush.bf16.msrb.mxu2 %v5072_v45  ;;  %2007 = vmatpush.bf16.msrb.mxu3 %v5073_v1  ;;  %v5083_v45 = vld [vmem:[#allocation61_spill] sm:$0xff]  ;;  %v5084_v1 = vld [vmem:[#allocation62_spill] sm:$0xff] }
 0x712   :  { %1969 = vmatpush.bf16.msrb.mxu0 %v5074_v32  ;;  %1982 = vmatpush.bf16.msrb.mxu1 %v5075_v60  ;;  %v5085_v32 = vld [vmem:[#allocation63_spill] sm:$0xff]  ;;  %v5086_v60 = vld [vmem:[#allocation64_spill] sm:$0xff] }
 0x713   :  { %1995 = vmatpush.bf16.msrb.mxu2 %v5076_v10  ;;  %2008 = vmatpush.bf16.msrb.mxu3 %v5077_v18  ;;  %v5087_v10 = vld [vmem:[#allocation65_spill] sm:$0xff]  ;;  %v5088_v18 = vld [vmem:[#allocation66_spill] sm:$0xff] }
 0x716   :  { %1970 = vmatpush.bf16.msrb.mxu0 %v5078_v20  ;;  %1983 = vmatpush.bf16.msrb.mxu1 %v5079_v46  ;;  %v5089_v20 = vld [vmem:[#allocation67_spill] sm:$0xff]  ;;  %v5090_v46 = vld [vmem:[#allocation68_spill] sm:$0xff] }
 0x717   :  { %1996 = vmatpush.bf16.msrb.mxu2 %v5080_v6  ;;  %2009 = vmatpush.bf16.msrb.mxu3 %v5081_v33  ;;  %v5091_v6 = vld [vmem:[#allocation69_spill] sm:$0xff]  ;;  %v5092_v33 = vld [vmem:[#allocation70_spill] sm:$0xff] }
 0x71a   :  { %1971 = vmatpush.bf16.msrb.mxu0 %v5082_v56  ;;  %1984 = vmatpush.bf16.msrb.mxu1 %v5083_v45  ;;  %v5093_v56 = vld [vmem:[#allocation71_spill] sm:$0xff] }
 0x71b   :  { %1997 = vmatpush.bf16.msrb.mxu2 %v5084_v1  ;;  %2010 = vmatpush.bf16.msrb.mxu3 %v5085_v32 }
 0x71e   :  { %1972 = vmatpush.bf16.msrb.mxu0 %v5086_v60  ;;  %1985 = vmatpush.bf16.msrb.mxu1 %v5087_v10 }
 0x71f   :  { %1998 = vmatpush.bf16.msrb.mxu2 %v5088_v18  ;;  %2011 = vmatpush.bf16.msrb.mxu3 %v5089_v20 }
 0x722   :  { %1973 = vmatpush.bf16.msrb.mxu0 %v5090_v46  ;;  %1986 = vmatpush.bf16.msrb.mxu1 %v5091_v6 }
 0x723   :  { %1999 = vmatpush.bf16.msrb.mxu2 %v5092_v33  ;;  %2012 = vmatpush.bf16.msrb.mxu3 %v5093_v56 }
 0x781   :  { %v1850_v45 = vpop.f32.mrf.mxu0  ;;  %v1863_v1 = vpop.f32.mrf.mxu1 }
 0x782   :  { %v1851_v35 = vadd.f32 %v1850_v45, %v1764_v52  ;;  %v1864_v32 = vadd.f32 %v1863_v1, %v1777_v7 }
 0x784   :  { %v1893_v51 = vmul.f32 0.5, %v1851_v35  ;;  %v1897_v60 = vmul.f32 0.5, %v1864_v32 }
 0x786   :  { %3102 = vtanh.f32 %v1893_v51 }
 0x787   :  { %3104 = vtanh.f32 %v1897_v60  ;;  %v5107_v60 = vld [vmem:[#allocation27_spill] sm:$0xff] }
 0x788   :  { %v1876_v10 = vpop.f32.mrf.mxu2  ;;  %v1889_v18 = vpop.f32.mrf.mxu3 }
 0x789   :  { %v1877_v26 = vadd.f32 %v1876_v10, %v1790_v29  ;;  %v1890_v20 = vadd.f32 %v1889_v18, %v1803_v34  ;;  %v1852_v17 = vpop.f32.mrf.mxu0  ;;  %v1865_v46 = vpop.f32.mrf.mxu1  ;;  %v5108_v10 = vld [vmem:[#allocation28_spill] sm:$0xff]  ;;  %v5109_v18 = vld [vmem:[#allocation29_spill] sm:$0xff] }
 0x78b   :  { %3106 = vtanh.f32 %v1877_v26  ;;  %v1902_v6 = vmul.f32 0.5, %v1890_v20 }
 0x78c   :  { %v3103_v57 = vpop.eup %3102 }
 0x78d   :  { %v3105_v33 = vpop.eup %3104  ;;  %v1895_v22 = vmul.f32 0.5, %v3103_v57  ;;  %3108 = vtanh.f32 %v1902_v6  ;;  %v5097_v6 = vld [vmem:[#allocation17_spill] sm:$0xff] }
 0x78e   :  { %v1899_v56 = vmul.f32 0.5, %v3105_v33  ;;  %v5105_v33 = vld [vmem:[#allocation25_spill] sm:$0xff] }
 0x78f   :  { %v1896_v30 = vadd.f32 0.5, %v1895_v22 }
 0x790   :  { %v1900_v52 = vadd.f32 0.5, %v1899_v56  ;;  %v1878_v7 = vpop.f32.mrf.mxu2  ;;  %v1891_v35 = vpop.f32.mrf.mxu3  ;;  %v5106_v56 = vld [vmem:[#allocation26_spill] sm:$0xff] }
 0x791   :  { %v3107_v45 = vpop.eup %3106  ;;  %v5111_v7 = vld [vmem:[#allocation32_spill] sm:$0xff]  ;;  %v5112_v35 = vld [vmem:[#allocation33_spill] sm:$0xff] }
 0x792   :  { %v1906_v51 = vmul.f32 %v1900_v52, %v4173_v59  ;;  %v1907_v1 = vmul.f32 %v3107_v45, %v1896_v30  ;;  %v5094_v59 = vld [vmem:[#allocation14_spill] sm:$0xff]  ;;  %v5095_v30 = vld [vmem:[#allocation15_spill] sm:$0xff] }
 0x793   :  { %v3109_v32 = vpop.eup %3108  ;;  %v5110_v52 = vld [vmem:[#allocation31_spill] sm:$0xff]  ;;  %v5113_v45 = vld [vmem:[#allocation34_spill] sm:$0xff] }
 0x794   :  { %v4287_v29 = vadd.f32 %v1907_v1, %v1906_v51  ;;  %v1904_v34 = vmul.f32 0.5, %v3109_v32  ;;  %v5114_v51 = vld [vmem:[#allocation35_spill] sm:$0xff]  ;;  %v5115_v1 = vld [vmem:[#allocation36_spill] sm:$0xff]  ;;  %v5116_v32 = vld [vmem:[#allocation37_spill] sm:$0xff] }
 0x796   :  { %3110 = vtanh.f32 %v4287_v29  ;;  %v1905_v17 = vadd.f32 0.5, %v1904_v34  ;;  %v5117_v34 = vld [vmem:[#allocation38_spill] sm:$0xff] }
 0x79c   :  { %v3111_v26 = vpop.eup %3110 }
 0x79d   :  { %v1910_v20 = vmul.f32 %v3111_v26, %v1905_v17  ;;  %v5118_v17 = vld [vmem:[#allocation39_spill] sm:$0xff]  ;;  %v2023_v26 = vpop.permute.xlu0 %2022 }
 0x79f   :  { %v1911_v57 = vadd.f32 %v1910_v20, %v4250_v48  ;;  %v5096_v48 = vld [vmem:[#allocation16_spill] sm:$0xff]  ;;  %v5119_v20 = vld [vmem:[#allocation97_spill] sm:$0xff] }
 0x7a1   :  { %v1912_v22 = vadd.f32 %v3703_v23, %v1911_v57  ;;  %v2025_v57 = vmul.f32 %v2023_v26, %v5119_v20 }
 0x7a3   :  { %v1913_v46 = vpack.c.bf16 %v1912_v22, %v1912_v22  ;;  %v5120_v22 = vld [vmem:[#allocation100_spill] sm:$0xff] }
 0x7a5   :  { %1922 = vmatmul.bf16.vlgmr.msra.gmra.mxu0 %v1913_v46  ;;  %1935 = vmatmul.bf16.vlgmr.msra.gmra.mxu1 %v1913_v46 }
 0x7a6   :  { %1948 = vmatmul.bf16.vlgmr.msra.gmra.mxu2 %v1913_v46  ;;  %1961 = vmatmul.bf16.vlgmr.msra.gmra.mxu3 %v1913_v46 }
 0x7a7   :  { %2052 = vmatpush.bf16.msra.mxu0 %v4786_v11  ;;  %2065 = vmatpush.bf16.msra.mxu1 %v4787_v28 }
 0x7a8   :  { %2078 = vmatpush.bf16.msra.mxu2 %v4788_v0  ;;  %2091 = vmatpush.bf16.msra.mxu3 %v4789_v44 }
 0x7ab   :  { %2053 = vmatpush.bf16.msra.mxu0 %v4790_v50  ;;  %2066 = vmatpush.bf16.msra.mxu1 %v4791_v19 }
 0x7ac   :  { %2079 = vmatpush.bf16.msra.mxu2 %v4792_v55  ;;  %2092 = vmatpush.bf16.msra.mxu3 %v4793_v62 }
 0x7af   :  { %2054 = vmatpush.bf16.msra.mxu0 %v4794_v61  ;;  %2067 = vmatpush.bf16.msra.mxu1 %v4795_v42 }
 0x7b0   :  { %2080 = vmatpush.bf16.msra.mxu2 %v4846_v58  ;;  %2093 = vmatpush.bf16.msra.mxu3 %v4847_v21 }
 0x7b3   :  { %2055 = vmatpush.bf16.msra.mxu0 %v4848_v12  ;;  %2068 = vmatpush.bf16.msra.mxu1 %v4849_v47 }
 0x7b4   :  { %2081 = vmatpush.bf16.msra.mxu2 %v4850_v39  ;;  %2094 = vmatpush.bf16.msra.mxu3 %v4851_v53 }
 0x7b5   :  { %1974 = vmatmul.bf16.vlgmr.msrb.gmra.mxu0 %v1913_v46  ;;  %1987 = vmatmul.bf16.vlgmr.msrb.gmra.mxu1 %v1913_v46 }
 0x7b6   :  { %2000 = vmatmul.bf16.vlgmr.msrb.gmra.mxu2 %v1913_v46  ;;  %2013 = vmatmul.bf16.vlgmr.msrb.gmra.mxu3 %v1913_v46  ;;  %v2026_v46 = vmul.f32 %v2023_v26, %v5120_v22 }
 0x7b7   :  { %2056 = vmatpush.bf16.msra.mxu0 %v4802_v16  ;;  %2069 = vmatpush.bf16.msra.mxu1 %v4803_v15 }
 0x7b8   :  { %2082 = vmatpush.bf16.msra.mxu2 %v4804_v31  ;;  %2095 = vmatpush.bf16.msra.mxu3 %v4805_v43 }
 0x7bb   :  { %2057 = vmatpush.bf16.msra.mxu0 %v4806_v37  ;;  %2070 = vmatpush.bf16.msra.mxu1 %v4807_v25 }
 0x7bc   :  { %2083 = vmatpush.bf16.msra.mxu2 %v4808_v38  ;;  %2096 = vmatpush.bf16.msra.mxu3 %v4809_v41 }
 0x7bf   :  { %2058 = vmatpush.bf16.msra.mxu0 %v4810_v2  ;;  %2071 = vmatpush.bf16.msra.mxu1 %v4811_v54 }
 0x7c0   :  { %2084 = vmatpush.bf16.msra.mxu2 %v4812_v36  ;;  %2097 = vmatpush.bf16.msra.mxu3 %v3602_v27 }
 0x7c3   :  { %2059 = vmatpush.bf16.msra.mxu0 %v3607_v5  ;;  %2072 = vmatpush.bf16.msra.mxu1 %v3610_v3 }
 0x7c4   :  { %2085 = vmatpush.bf16.msra.mxu2 %v3612_v24  ;;  %2098 = vmatpush.bf16.msra.mxu3 %v3616_v49 }
 0x7c7   :  { %2125 = vmatpush.bf16.msrb.mxu0 %v3281_v4  ;;  %2138 = vmatpush.bf16.msrb.mxu1 %v3283_v8  ;;  %v5098_v4 = vld [vmem:[#allocation18_spill] sm:$0xff]  ;;  %v5099_v8 = vld [vmem:[#allocation19_spill] sm:$0xff] }
 0x7c8   :  { %2151 = vmatpush.bf16.msrb.mxu2 %v3285_v9  ;;  %2164 = vmatpush.bf16.msrb.mxu3 %v3288_v13  ;;  %v5100_v9 = vld [vmem:[#allocation20_spill] sm:$0xff]  ;;  %v5101_v13 = vld [vmem:[#allocation21_spill] sm:$0xff] }
 0x7cb   :  { %2126 = vmatpush.bf16.msrb.mxu0 %v4905_v63  ;;  %2139 = vmatpush.bf16.msrb.mxu1 %v4906_v40  ;;  %v5102_v63 = vld [vmem:[#allocation22_spill] sm:$0xff]  ;;  %v5103_v40 = vld [vmem:[#allocation23_spill] sm:$0xff] }
 0x7cc   :  { %2152 = vmatpush.bf16.msrb.mxu2 %v4968_v14  ;;  %2165 = vmatpush.bf16.msrb.mxu3 %v5094_v59  ;;  %v5104_v14 = vld [vmem:[#allocation24_spill] sm:$0xff] }
 0x7cf   :  { %2127 = vmatpush.bf16.msrb.mxu0 %v5095_v30  ;;  %2140 = vmatpush.bf16.msrb.mxu1 %v5096_v48 }
 0x7d0   :  { %2153 = vmatpush.bf16.msrb.mxu2 %v5097_v6  ;;  %2166 = vmatpush.bf16.msrb.mxu3 %v5098_v4 }
 0x7d3   :  { %2128 = vmatpush.bf16.msrb.mxu0 %v5099_v8  ;;  %2141 = vmatpush.bf16.msrb.mxu1 %v5100_v9  ;;  %v5121_v9 = vld [vmem:[#allocation101_spill] sm:$0xff] }
 0x7d4   :  { %2154 = vmatpush.bf16.msrb.mxu2 %v5101_v13  ;;  %2167 = vmatpush.bf16.msrb.mxu3 %v5102_v63  ;;  %v2027_v13 = vmul.f32 %v2023_v26, %v5121_v9  ;;  %v5122_v63 = vld [vmem:[#allocation102_spill] sm:$0xff] }
 0x7d7   :  { %2129 = vmatpush.bf16.msrb.mxu0 %v5103_v40  ;;  %2142 = vmatpush.bf16.msrb.mxu1 %v5104_v14  ;;  %v2028_v40 = vmul.f32 %v2023_v26, %v5122_v63 }
 0x7d8   :  { %2155 = vmatpush.bf16.msrb.mxu2 %v5105_v33  ;;  %2168 = vmatpush.bf16.msrb.mxu3 %v5106_v56 }
 0x7db   :  { %2130 = vmatpush.bf16.msrb.mxu0 %v5107_v60  ;;  %2143 = vmatpush.bf16.msrb.mxu1 %v5108_v10 }
 0x7dc   :  { %2156 = vmatpush.bf16.msrb.mxu2 %v5109_v18  ;;  %2169 = vmatpush.bf16.msrb.mxu3 %v5110_v52 }
 0x7df   :  { %2131 = vmatpush.bf16.msrb.mxu0 %v5111_v7  ;;  %2144 = vmatpush.bf16.msrb.mxu1 %v5112_v35 }
 0x7e0   :  { %2157 = vmatpush.bf16.msrb.mxu2 %v5113_v45  ;;  %2170 = vmatpush.bf16.msrb.mxu3 %v5114_v51 }
 0x7e3   :  { %2132 = vmatpush.bf16.msrb.mxu0 %v5115_v1  ;;  %2145 = vmatpush.bf16.msrb.mxu1 %v5116_v32 }
 0x7e4   :  { %2158 = vmatpush.bf16.msrb.mxu2 %v5117_v34  ;;  %2171 = vmatpush.bf16.msrb.mxu3 %v5118_v17 }
 0x822   :  { %v1923_v59 = vpop.f32.mrf.mxu0  ;;  %v1936_v30 = vpop.f32.mrf.mxu1 }
 0x823   :  { %v2029_v48 = vadd.f32 %v2025_v57, %v1923_v59  ;;  %v2030_v6 = vadd.f32 %v2026_v46, %v1936_v30  ;;  %v5123_v59 = vld [vmem:[#allocation73_spill] sm:$0xff] }
 0x825   :  { %v2033_v4 = vmul.f32 0.5, %v2029_v48  ;;  %v2037_v8 = vmul.f32 0.5, %v2030_v6 }
 0x827   :  { %3112 = vtanh.f32 %v2033_v4 }
 0x828   :  { %3114 = vtanh.f32 %v2037_v8 }
 0x829   :  { %v1949_v14 = vpop.f32.mrf.mxu2  ;;  %v1962_v33 = vpop.f32.mrf.mxu3 }
 0x82a   :  { %v2031_v56 = vadd.f32 %v2027_v13, %v1949_v14  ;;  %v2032_v60 = vadd.f32 %v2028_v40, %v1962_v33  ;;  %v1925_v10 = vpop.f32.mrf.mxu0  ;;  %v1938_v18 = vpop.f32.mrf.mxu1 }
 0x82c   :  { %3116 = vtanh.f32 %v2031_v56  ;;  %v2042_v52 = vmul.f32 0.5, %v2032_v60 }
 0x82d   :  { %v3113_v7 = vpop.eup %3112 }
 0x82e   :  { %v3115_v35 = vpop.eup %3114  ;;  %v2035_v45 = vmul.f32 0.5, %v3113_v7  ;;  %3118 = vtanh.f32 %v2042_v52 }
 0x82f   :  { %v2039_v51 = vmul.f32 0.5, %v3115_v35  ;;  %v5124_v35 = vld [vmem:[#allocation41_spill] sm:$0xff] }
 0x830   :  { %v2036_v1 = vadd.f32 0.5, %v2035_v45  ;;  %v5125_v45 = vld [vmem:[#allocation40_spill] sm:$0xff] }
 0x831   :  { %v2040_v32 = vadd.f32 0.5, %v2039_v51  ;;  %v1951_v34 = vpop.f32.mrf.mxu2  ;;  %v1964_v17 = vpop.f32.mrf.mxu3  ;;  %v5126_v51 = vld [vmem:[#allocation42_spill] sm:$0xff] }
 0x832   :  { %v3117_v57 = vpop.eup %3116  ;;  %v1975_v46 = vpop.f32.mrf.mxu0  ;;  %v5129_v34 = vld [vmem:[#allocation44_spill] sm:$0xff]  ;;  %v5130_v17 = vld [vmem:[#allocation46_spill] sm:$0xff] }
 0x833   :  { %v1988_v26 = vpop.f32.mrf.mxu1  ;;  %v2046_v30 = vmul.f32 %v2040_v32, %v5123_v59  ;;  %v2047_v48 = vmul.f32 %v3117_v57, %v2036_v1  ;;  %v5127_v1 = vld [vmem:[#allocation43_spill] sm:$0xff]  ;;  %v5128_v32 = vld [vmem:[#allocation45_spill] sm:$0xff] }
 0x834   :  { %v3119_v6 = vpop.eup %3118  ;;  %v5131_v57 = vld [vmem:[#allocation47_spill] sm:$0xff]  ;;  %v5132_v59 = vld [vmem:[#allocation49_spill] sm:$0xff] }
 0x835   :  { %v4361_v4 = vadd.f32 %v2047_v48, %v2046_v30  ;;  %v2044_v8 = vmul.f32 0.5, %v3119_v6  ;;  %v5133_v30 = vld [vmem:[#allocation48_spill] sm:$0xff]  ;;  %v5134_v48 = vld [vmem:[#allocation50_spill] sm:$0xff]  ;;  %v5135_v6 = vld [vmem:[#allocation51_spill] sm:$0xff] }
 0x837   :  { %3120 = vtanh.f32 %v4361_v4  ;;  %v2045_v56 = vadd.f32 0.5, %v2044_v8  ;;  %v5136_v8 = vld [vmem:[#allocation52_spill] sm:$0xff] }
 0x839   :  { %v2001_v13 = vpop.f32.mrf.mxu2  ;;  %v2014_v40 = vpop.f32.mrf.mxu3 }
 0x83a   :  { %v1977_v14 = vpop.f32.mrf.mxu0 }
 0x83b   :  { %v1990_v33 = vpop.f32.mrf.mxu1  ;;  %v5137_v14 = vld [vmem:[#allocation53_spill] sm:$0xff] }
 0x83c   :  { %v5138_v33 = vld [vmem:[#allocation54_spill] sm:$0xff] }
 0x83d   :  { %v3121_v60 = vpop.eup %3120 }
 0x83e   :  { %v4364_v10 = vmul.f32 %v3121_v60, %v2045_v56  ;;  %v5139_v56 = vld [vmem:[#allocation55_spill] sm:$0xff]  ;;  %v5140_v60 = vld [vmem:[#allocation56_spill] sm:$0xff] }
 0x840   :  { %v2051_v18 = vpack.c.bf16 %v4364_v10, %v4364_v10 }
 0x841   :  { %v2003_v52 = vpop.f32.mrf.mxu2  ;;  %v2016_v7 = vpop.f32.mrf.mxu3 }
 0x842   :  { %2060 = vmatmul.bf16.vlgmr.msra.gmra.mxu0 %v2051_v18  ;;  %2073 = vmatmul.bf16.vlgmr.msra.gmra.mxu1 %v2051_v18  ;;  %v5142_v52 = vld [vmem:[#allocation58_spill] sm:$0xff]  ;;  %v5143_v7 = vld [vmem:[#allocation59_spill] sm:$0xff] }
 0x843   :  { %2086 = vmatmul.bf16.vlgmr.msra.gmra.mxu2 %v2051_v18  ;;  %2099 = vmatmul.bf16.vlgmr.msra.gmra.mxu3 %v2051_v18  ;;  %v5141_v18 = vld [vmem:[#allocation57_spill] sm:$0xff] }
 0x844   :  { %2177 = vmatpush.bf16.msra.mxu0 %v5124_v35  ;;  %2190 = vmatpush.bf16.msra.mxu1 %v5125_v45  ;;  %v5144_v35 = vld [vmem:[#allocation60_spill] sm:$0xff]  ;;  %v5145_v45 = vld [vmem:[#allocation61_spill] sm:$0xff] }
 0x845   :  { %2203 = vmatpush.bf16.msra.mxu2 %v5126_v51  ;;  %2216 = vmatpush.bf16.msra.mxu3 %v5127_v1  ;;  %v5146_v51 = vld [vmem:[#allocation62_spill] sm:$0xff]  ;;  %v5147_v1 = vld [vmem:[#allocation63_spill] sm:$0xff] }
 0x848   :  { %2178 = vmatpush.bf16.msra.mxu0 %v5128_v32  ;;  %2191 = vmatpush.bf16.msra.mxu1 %v5129_v34  ;;  %v5148_v32 = vld [vmem:[#allocation64_spill] sm:$0xff]  ;;  %v5149_v34 = vld [vmem:[#allocation65_spill] sm:$0xff] }
 0x849   :  { %2204 = vmatpush.bf16.msra.mxu2 %v5130_v17  ;;  %2217 = vmatpush.bf16.msra.mxu3 %v5131_v57  ;;  %v5150_v17 = vld [vmem:[#allocation66_spill] sm:$0xff]  ;;  %v5151_v57 = vld [vmem:[#allocation67_spill] sm:$0xff] }
 0x84c   :  { %2179 = vmatpush.bf16.msra.mxu0 %v5132_v59  ;;  %2192 = vmatpush.bf16.msra.mxu1 %v5133_v30  ;;  %v5152_v59 = vld [vmem:[#allocation68_spill] sm:$0xff]  ;;  %v5153_v30 = vld [vmem:[#allocation69_spill] sm:$0xff] }
 0x84d   :  { %2205 = vmatpush.bf16.msra.mxu2 %v5134_v48  ;;  %2218 = vmatpush.bf16.msra.mxu3 %v5135_v6  ;;  %v5154_v48 = vld [vmem:[#allocation70_spill] sm:$0xff]  ;;  %v5155_v6 = vld [vmem:[#allocation71_spill] sm:$0xff] }
 0x850   :  { %2180 = vmatpush.bf16.msra.mxu0 %v5136_v8  ;;  %2193 = vmatpush.bf16.msra.mxu1 %v5137_v14 }
 0x851   :  { %2206 = vmatpush.bf16.msra.mxu2 %v5138_v33  ;;  %2219 = vmatpush.bf16.msra.mxu3 %v5139_v56 }
 0x854   :  { %2181 = vmatpush.bf16.msra.mxu0 %v5140_v60  ;;  %2194 = vmatpush.bf16.msra.mxu1 %v5141_v18 }
 0x855   :  { %2207 = vmatpush.bf16.msra.mxu2 %v5142_v52  ;;  %2220 = vmatpush.bf16.msra.mxu3 %v5143_v7 }
 0x858   :  { %2182 = vmatpush.bf16.msra.mxu0 %v5144_v35  ;;  %2195 = vmatpush.bf16.msra.mxu1 %v5145_v45 }
 0x859   :  { %2208 = vmatpush.bf16.msra.mxu2 %v5146_v51  ;;  %2221 = vmatpush.bf16.msra.mxu3 %v5147_v1 }
 0x85c   :  { %2183 = vmatpush.bf16.msra.mxu0 %v5148_v32  ;;  %2196 = vmatpush.bf16.msra.mxu1 %v5149_v34 }
 0x85d   :  { %2209 = vmatpush.bf16.msra.mxu2 %v5150_v17  ;;  %2222 = vmatpush.bf16.msra.mxu3 %v5151_v57 }
 0x860   :  { %2184 = vmatpush.bf16.msra.mxu0 %v5152_v59  ;;  %2197 = vmatpush.bf16.msra.mxu1 %v5153_v30 }
 0x861   :  { %2210 = vmatpush.bf16.msra.mxu2 %v5154_v48  ;;  %2223 = vmatpush.bf16.msra.mxu3 %v5155_v6 }
 0x8bf   :  { %v2061_v8 = vpop.f32.mrf.mxu0  ;;  %v2074_v14 = vpop.f32.mrf.mxu1 }
 0x8c0   :  { %v2062_v33 = vadd.f32 %v2061_v8, %v1975_v46  ;;  %v2075_v56 = vadd.f32 %v2074_v14, %v1988_v26 }
 0x8c2   :  { %v2104_v60 = vmul.f32 0.5, %v2062_v33  ;;  %v2108_v18 = vmul.f32 0.5, %v2075_v56 }
 0x8c4   :  { %3122 = vtanh.f32 %v2104_v60 }
 0x8c5   :  { %3124 = vtanh.f32 %v2108_v18 }
 0x8c6   :  { %v2087_v52 = vpop.f32.mrf.mxu2  ;;  %v2100_v7 = vpop.f32.mrf.mxu3 }
 0x8c7   :  { %v2088_v35 = vadd.f32 %v2087_v52, %v2001_v13  ;;  %v2101_v45 = vadd.f32 %v2100_v7, %v2014_v40  ;;  %v2063_v51 = vpop.f32.mrf.mxu0  ;;  %v2076_v1 = vpop.f32.mrf.mxu1 }
 0x8c9   :  { %3126 = vtanh.f32 %v2088_v35  ;;  %v2113_v32 = vmul.f32 0.5, %v2101_v45 }
 0x8ca   :  { %v3123_v34 = vpop.eup %3122 }
 0x8cb   :  { %v3125_v17 = vpop.eup %3124  ;;  %v2106_v57 = vmul.f32 0.5, %v3123_v34  ;;  %3128 = vtanh.f32 %v2113_v32 }
 0x8cc   :  { %v2110_v59 = vmul.f32 0.5, %v3125_v17  ;;  %v2976_v17 = vld [vmem:[%s4478_s4 + $0x30] sm:$0xff] }
 0x8cd   :  { %v2107_v30 = vadd.f32 0.5, %v2106_v57  ;;  %v2975_v57 = vld [vmem:[%s4478_s4 + $0x28] sm:$0xff] }
 0x8ce   :  { %v2111_v46 = vadd.f32 0.5, %v2110_v59  ;;  %v2089_v26 = vpop.f32.mrf.mxu2  ;;  %v2102_v48 = vpop.f32.mrf.mxu3  ;;  %v2974_v59 = vld [vmem:[%s4478_s4 + $0x20] sm:$0xff] }
 0x8cf   :  { %v3127_v6 = vpop.eup %3126  ;;  %v2971_v26 = vld [vmem:[%s4478_s4 + $0x8] sm:$0xff]  ;;  %v2970_v48 = vld [vmem:[%s4478_s4] sm:$0xff] }
 0x8d0   :  { %v2117_v8 = vmul.f32 %v2111_v46, %v4287_v29  ;;  %v2118_v14 = vmul.f32 %v3127_v6, %v2107_v30  ;;  %v2973_v30 = vld [vmem:[%s4478_s4 + $0x18] sm:$0xff]  ;;  %v2972_v46 = vld [vmem:[%s4478_s4 + $0x10] sm:$0xff] }
 0x8d1   :  { %v3129_v33 = vpop.eup %3128 }
 0x8d2   :  { %v4401_v13 = vadd.f32 %v2118_v14, %v2117_v8  ;;  %v2115_v40 = vmul.f32 0.5, %v3129_v33 }
 0x8d4   :  { %3130 = vtanh.f32 %v4401_v13  ;;  %v2116_v56 = vadd.f32 0.5, %v2115_v40 }
 0x8da   :  { %v3131_v60 = vpop.eup %3130 }
 0x8db   :  { %v2121_v18 = vmul.f32 %v3131_v60, %v2116_v56 }
 0x8dd   :  { %v2122_v52 = vadd.f32 %v2121_v18, %v4364_v10 }
 0x8df   :  { %v2123_v7 = vadd.f32 %v3703_v23, %v2122_v52  ;;  %v2234_v23 = vpop.permute.xlu1 %2233 }
 0x8e1   :  { %v2124_v35 = vpack.c.bf16 %v2123_v7, %v2123_v7 }
 0x8e3   :  { %2133 = vmatmul.bf16.vlgmr.msrb.gmra.mxu0 %v2124_v35  ;;  %2146 = vmatmul.bf16.vlgmr.msrb.gmra.mxu1 %v2124_v35 }
 0x8e4   :  { %2159 = vmatmul.bf16.vlgmr.msrb.gmra.mxu2 %v2124_v35  ;;  %2172 = vmatmul.bf16.vlgmr.msrb.gmra.mxu3 %v2124_v35 }
 0x8e5   :  { %2263 = vmatpush.bf16.msrb.mxu0 %v4786_v11  ;;  %2276 = vmatpush.bf16.msrb.mxu1 %v4787_v28  ;;  %v2236_v11 = vmul.f32 %v2234_v23, %v5119_v20  ;;  %v2237_v28 = vmul.f32 %v2234_v23, %v5120_v22 }
 0x8e6   :  { %2289 = vmatpush.bf16.msrb.mxu2 %v4788_v0  ;;  %2302 = vmatpush.bf16.msrb.mxu3 %v4789_v44 }
 0x8e9   :  { %2264 = vmatpush.bf16.msrb.mxu0 %v4790_v50  ;;  %2277 = vmatpush.bf16.msrb.mxu1 %v4791_v19 }
 0x8ea   :  { %2290 = vmatpush.bf16.msrb.mxu2 %v4792_v55  ;;  %2303 = vmatpush.bf16.msrb.mxu3 %v4793_v62 }
 0x8ed   :  { %2265 = vmatpush.bf16.msrb.mxu0 %v4794_v61  ;;  %2278 = vmatpush.bf16.msrb.mxu1 %v4795_v42 }
 0x8ee   :  { %2291 = vmatpush.bf16.msrb.mxu2 %v4846_v58  ;;  %2304 = vmatpush.bf16.msrb.mxu3 %v4847_v21 }
 0x8f1   :  { %2266 = vmatpush.bf16.msrb.mxu0 %v4848_v12  ;;  %2279 = vmatpush.bf16.msrb.mxu1 %v4849_v47 }
 0x8f2   :  { %2292 = vmatpush.bf16.msrb.mxu2 %v4850_v39  ;;  %2305 = vmatpush.bf16.msrb.mxu3 %v4851_v53 }
 0x8f3   :  { %2185 = vmatmul.bf16.vlgmr.msra.gmra.mxu0 %v2124_v35  ;;  %2198 = vmatmul.bf16.vlgmr.msra.gmra.mxu1 %v2124_v35 }
 0x8f4   :  { %2211 = vmatmul.bf16.vlgmr.msra.gmra.mxu2 %v2124_v35  ;;  %2224 = vmatmul.bf16.vlgmr.msra.gmra.mxu3 %v2124_v35 }
 0x8f5   :  { %2267 = vmatpush.bf16.msrb.mxu0 %v4802_v16  ;;  %2280 = vmatpush.bf16.msrb.mxu1 %v4803_v15 }
 0x8f6   :  { %2293 = vmatpush.bf16.msrb.mxu2 %v4804_v31  ;;  %2306 = vmatpush.bf16.msrb.mxu3 %v4805_v43 }
 0x8f9   :  { %2268 = vmatpush.bf16.msrb.mxu0 %v4806_v37  ;;  %2281 = vmatpush.bf16.msrb.mxu1 %v4807_v25 }
 0x8fa   :  { %2294 = vmatpush.bf16.msrb.mxu2 %v4808_v38  ;;  %2307 = vmatpush.bf16.msrb.mxu3 %v4809_v41 }
 0x8fd   :  { %2269 = vmatpush.bf16.msrb.mxu0 %v4810_v2  ;;  %2282 = vmatpush.bf16.msrb.mxu1 %v4811_v54 }
 0x8fe   :  { %2295 = vmatpush.bf16.msrb.mxu2 %v4812_v36  ;;  %2308 = vmatpush.bf16.msrb.mxu3 %v3602_v27  ;;  %v2238_v27 = vmul.f32 %v2234_v23, %v5121_v9 }
 0x901   :  { %2270 = vmatpush.bf16.msrb.mxu0 %v3607_v5  ;;  %2283 = vmatpush.bf16.msrb.mxu1 %v3610_v3  ;;  %v2239_v3 = vmul.f32 %v2234_v23, %v5122_v63 }
 0x902   :  { %2296 = vmatpush.bf16.msrb.mxu2 %v3612_v24  ;;  %2309 = vmatpush.bf16.msrb.mxu3 %v3616_v49 }
 0x960   :  { %v2134_v0 = vpop.f32.mrf.mxu0  ;;  %v2147_v44 = vpop.f32.mrf.mxu1 }
 0x961   :  { %v2240_v50 = vadd.f32 %v2236_v11, %v2134_v0  ;;  %v2241_v19 = vadd.f32 %v2237_v28, %v2147_v44 }
 0x963   :  { %v2244_v55 = vmul.f32 0.5, %v2240_v50  ;;  %v2248_v62 = vmul.f32 0.5, %v2241_v19 }
 0x965   :  { %3132 = vtanh.f32 %v2244_v55 }
 0x966   :  { %3134 = vtanh.f32 %v2248_v62 }
 0x967   :  { %v2160_v5 = vpop.f32.mrf.mxu2  ;;  %v2173_v24 = vpop.f32.mrf.mxu3 }
 0x968   :  { %v2242_v49 = vadd.f32 %v2238_v27, %v2160_v5  ;;  %v2243_v61 = vadd.f32 %v2239_v3, %v2173_v24  ;;  %v2136_v42 = vpop.f32.mrf.mxu0  ;;  %v2149_v54 = vpop.f32.mrf.mxu1 }
 0x96a   :  { %3136 = vtanh.f32 %v2242_v49  ;;  %v2253_v37 = vmul.f32 0.5, %v2243_v61 }
 0x96b   :  { %v3133_v25 = vpop.eup %3132 }
 0x96c   :  { %v3135_v38 = vpop.eup %3134  ;;  %v2246_v41 = vmul.f32 0.5, %v3133_v25  ;;  %3138 = vtanh.f32 %v2253_v37 }
 0x96d   :  { %v2250_v2 = vmul.f32 0.5, %v3135_v38 }
 0x96e   :  { %v2247_v16 = vadd.f32 0.5, %v2246_v41  ;;  %v2991_v41 = vld [vmem:[%s4479_s5] ss:$0 sm:$0xff] }
 0x96f   :  { %v2251_v15 = vadd.f32 0.5, %v2250_v2  ;;  %v2162_v31 = vpop.f32.mrf.mxu2  ;;  %v2175_v43 = vpop.f32.mrf.mxu3 }
 0x970   :  { %v3137_v36 = vpop.eup %3136  ;;  %v2186_v58 = vpop.f32.mrf.mxu0 }
 0x971   :  { %v2199_v21 = vpop.f32.mrf.mxu1  ;;  %v2257_v12 = vmul.f32 %v2251_v15, %v4361_v4  ;;  %v2258_v47 = vmul.f32 %v3137_v36, %v2247_v16  ;;  %v2977_v4 = vld [vmem:[%s4478_s4 + $0x38] sm:$0xff] }
 0x972   :  { %v3139_v39 = vpop.eup %3138  ;;  %2402 = vmatpush.bf16.msra.mxu0 %v2977_v4 }
 0x973   :  { %v2259_v53 = vadd.f32 %v2258_v47, %v2257_v12  ;;  %v2255_v29 = vmul.f32 0.5, %v3139_v39 }
 0x975   :  { %3140 = vtanh.f32 %v2259_v53  ;;  %v2256_v10 = vadd.f32 0.5, %v2255_v29 }
 0x976   :  { %2403 = vmatpush.bf16.msra.mxu0 %v2976_v17 }
 0x977   :  { %v2212_v20 = vpop.f32.mrf.mxu2  ;;  %v2225_v22 = vpop.f32.mrf.mxu3 }
 0x978   :  { %v2188_v9 = vpop.f32.mrf.mxu0 }
 0x979   :  { %v2201_v63 = vpop.f32.mrf.mxu1 }
 0x97a   :  { %2404 = vmatpush.bf16.msra.mxu0 %v2975_v57 }
 0x97b   :  { %v3141_v45 = vpop.eup %3140 }
 0x97c   :  { %v2261_v51 = vmul.f32 %v3141_v45, %v2256_v10 }
 0x97e   :  { %v2262_v1 = vpack.c.bf16 %v2261_v51, %v2261_v51  ;;  %2405 = vmatpush.bf16.msra.mxu0 %v2974_v59 }
 0x97f   :  { %v2214_v32 = vpop.f32.mrf.mxu2  ;;  %v2227_v34 = vpop.f32.mrf.mxu3 }
 0x980   :  { %2271 = vmatmul.bf16.vlgmr.msrb.gmra.mxu0 %v2262_v1  ;;  %2284 = vmatmul.bf16.vlgmr.msrb.gmra.mxu1 %v2262_v1 }
 0x981   :  { %2297 = vmatmul.bf16.vlgmr.msrb.gmra.mxu2 %v2262_v1  ;;  %2310 = vmatmul.bf16.vlgmr.msrb.gmra.mxu3 %v2262_v1 }
 0x982   :  { %2406 = vmatpush.bf16.msra.mxu0 %v2973_v30 }
 0x986   :  { %2407 = vmatpush.bf16.msra.mxu0 %v2972_v46 }
 0x98a   :  { %2408 = vmatpush.bf16.msra.mxu0 %v2971_v26 }
 0x98e   :  { %2409 = vmatpush.bf16.msra.mxu0 %v2970_v48 }
 0x9fd   :  { %v2272_v6 = vpop.f32.mrf.mxu0  ;;  %v2285_v8 = vpop.f32.mrf.mxu1 }
 0x9fe   :  { %v2273_v14 = vadd.f32 %v2272_v6, %v2186_v58  ;;  %v2286_v33 = vadd.f32 %v2285_v8, %v2199_v21 }
 0xa00   :  { %v2315_v40 = vmul.f32 0.5, %v2273_v14  ;;  %v2319_v56 = vmul.f32 0.5, %v2286_v33 }
 0xa02   :  { %3142 = vtanh.f32 %v2315_v40 }
 0xa03   :  { %3144 = vtanh.f32 %v2319_v56 }
 0xa04   :  { %v2298_v60 = vpop.f32.mrf.mxu2  ;;  %v2311_v18 = vpop.f32.mrf.mxu3 }
 0xa05   :  { %v2299_v52 = vadd.f32 %v2298_v60, %v2212_v20  ;;  %v2312_v7 = vadd.f32 %v2311_v18, %v2225_v22  ;;  %v2274_v35 = vpop.f32.mrf.mxu0  ;;  %v2287_v23 = vpop.f32.mrf.mxu1 }
 0xa07   :  { %3146 = vtanh.f32 %v2299_v52  ;;  %v2324_v11 = vmul.f32 0.5, %v2312_v7 }
 0xa08   :  { %v3143_v28 = vpop.eup %3142 }
 0xa09   :  { %v3145_v0 = vpop.eup %3144  ;;  %v2317_v44 = vmul.f32 0.5, %v3143_v28  ;;  %3148 = vtanh.f32 %v2324_v11 }
 0xa0a   :  { %v2321_v50 = vmul.f32 0.5, %v3145_v0 }
 0xa0b   :  { %v2318_v19 = vadd.f32 0.5, %v2317_v44 }
 0xa0c   :  { %v2322_v55 = vadd.f32 0.5, %v2321_v50  ;;  %v2300_v62 = vpop.f32.mrf.mxu2  ;;  %v2313_v27 = vpop.f32.mrf.mxu3 }
 0xa0d   :  { %v3147_v3 = vpop.eup %3146 }
 0xa0e   :  { %v2328_v5 = vmul.f32 %v2322_v55, %v4401_v13  ;;  %v2329_v24 = vmul.f32 %v3147_v3, %v2318_v19 }
 0xa0f   :  { %v3149_v49 = vpop.eup %3148 }
 0xa10   :  { %v2330_v61 = vadd.f32 %v2329_v24, %v2328_v5  ;;  %v2326_v42 = vmul.f32 0.5, %v3149_v49 }
 0xa12   :  { %3150 = vtanh.f32 %v2330_v61  ;;  %v2327_v54 = vadd.f32 0.5, %v2326_v42 }
 0xa18   :  { %v3151_v37 = vpop.eup %3150 }
 0xa19   :  { %v2332_v25 = vmul.f32 %v3151_v37, %v2327_v54 }
 0xa1b   :  { %v2333_v38 = vpack.c.bf16 %v2332_v25, %v2332_v25 }
 0xa1d   :  { %2410 = vmatmul.bf16.vlgmr.msra.gmra.mxu0 %v2333_v38 }
 0xa9a   :  { %v2411_v13 = vpop.f32.mrf.mxu0 }
 0xa9b   :  { %v2412_v2 = vadd.f32 %v2991_v41, %v2411_v13 }
 0xa9d   :  { %2415 = vst [vmem:[#allocation7] sm:$0xff] %v2412_v2 }
 0xa9e   :  { %2426 = dma.vmem_to_hbm [thread:$0]  %s2422_s1, 128, %s2424_s19, [#allocation4]  }
 0xaa2   :  { %v2413_v16 = vpop.f32.mrf.mxu0 }
 0xaa3   :  { %3228 = dma.done.wait [#allocation4], 128  }
 0xaa4   :  { %3229 = vsyncadd [#allocation4], 4294967168 }
 0xaa5   :  { %2431 = vsyncpa [#allocation3], 1 }
 0xaa6   :  { %2432 = vsyncpa [#allocation6], 1 }
 0xaa7   :  { %2433 = vsyncpa [#allocation4], 1 }

</bundles_post_ra>
